<compile_context>
chip_gen: v7x
topology: tpu7x:2x2x1
jax: 0.10.0
libtpu: 0.0.40
codegen_flags: <defaults>
</compile_context>

<pallas_src>
import functools

import jax
import jax.numpy as jnp
from jax.experimental import pallas as pl
from jax.experimental.pallas import tpu as pltpu


def _round_up(x: int, m: int) -> int:
    return ((x + m - 1) // m) * m


# --------------------------------------------------------------------------- kernel
def _bigan_mlp_kernel(x_ref, w1_ref, b1_ref, w2_ref, b2_ref, w3_ref, b3_ref, o_ref):
    cd = w1_ref.dtype
    x = x_ref[...].astype(cd)                      # cast in-kernel (no wrapper pass)

    # fc1 + ReLU: bf16 MXU matmul, f32 accumulate; bias/ReLU in f32 (VPU).
    h1 = jnp.dot(x, w1_ref[...], preferred_element_type=jnp.float32)
    h1 = jnp.maximum(h1 + b1_ref[...], 0.0).astype(w2_ref.dtype)

    # fc2 + ReLU
    h2 = jnp.dot(h1, w2_ref[...], preferred_element_type=jnp.float32)
    h2 = jnp.maximum(h2 + b2_ref[...], 0.0).astype(w3_ref.dtype)

    # fc3 (no activation, matches the PyTorch forward)
    out = jnp.dot(h2, w3_ref[...], preferred_element_type=jnp.float32) + b3_ref[...]
    o_ref[...] = out.astype(o_ref.dtype)


# ------------------------------------------------------------------ one-time params
def prepare_params(w1, b1, w2, b2, w3, b3, compute_dtype=jnp.bfloat16):
    """One-time (outside the per-call hot path): pad hidden/output feature dims to
    lane-dense multiples of 128 and cast weights to the MXU compute dtype.
    Weights are (in_features, out_features) == PyTorch weight.T; biases any shape."""
    d_in, hidden = w1.shape
    d_out = w3.shape[1]
    h_p = _round_up(hidden, 128)
    d_out_p = _round_up(d_out, 128)

    def pad2(a, rows, cols, dtype):
        return jnp.pad(a, ((0, rows - a.shape[0]), (0, cols - a.shape[1]))).astype(dtype)

    w1_p = pad2(w1, d_in, h_p, compute_dtype)          # K (=input_dim) left unpadded
    w2_p = pad2(w2, h_p, h_p, compute_dtype)
    w3_p = pad2(w3, h_p, d_out_p, compute_dtype)
    b1_p = pad2(jnp.reshape(b1, (1, -1)), 1, h_p, jnp.float32)
    b2_p = pad2(jnp.reshape(b2, (1, -1)), 1, h_p, jnp.float32)
    b3_p = pad2(jnp.reshape(b3, (1, -1)), 1, d_out_p, jnp.float32)
    return (w1_p, b1_p, w2_p, b2_p, w3_p, b3_p)


# ------------------------------------------------------------------- sizing helpers
def _physical_vmem_bytes(default=64 << 20):
    """Best-effort physical VMEM query; default is v7x-safe (64 MiB per TC)."""
    try:
        info = pltpu.get_tpu_info()
        for attr in ("vmem_capacity_bytes", "vmem_size_bytes", "vmem_bytes"):
            v = getattr(info, attr, None)
            if v:
                return int(v)
    except Exception:
        pass
    return default


def _vmem_need_bytes(tile_b, d_in, h_p, d_out_p, x_itemsize, out_itemsize,
                     w_bytes, weight_buffers):
    need = w_bytes * weight_buffers                    # resident weights/biases
    need += 2 * tile_b * d_in * x_itemsize             # double-buffered x tiles
    need += 2 * tile_b * d_out_p * out_itemsize        # double-buffered out tiles
    need += 3 * tile_b * h_p * 4                       # f32 h1/h2 intermediates + slack
    return need


def _pick_tile_b(B, desired, need_fn, vmem_phys):
    B128 = _round_up(B, 128)
    tb = max(128, min(_round_up(int(desired), 128), B128))
    # keep batch padding to <= one 128-row block, and keep >=2 grid steps when the
    # batch allows (pipelining / v7x 2-TC sharding).
    while tb > 128 and (_round_up(B, tb) > B128 or B128 // tb < 2):
        tb -= 128
    # shrink further if the estimated VMEM footprint would exceed the chip.
    while tb > 128 and need_fn(tb) > int(0.8 * vmem_phys):
        tb -= 128
    return tb


# ------------------------------------------------------------------------- forward
@functools.partial(
    jax.jit, static_argnames=("d_out", "tile_b", "out_dtype", "weight_buffers"))
def _bigan_mlp_jit(x, params, *, d_out, tile_b, out_dtype, weight_buffers):
    w1_p, b1_p, w2_p, b2_p, w3_p, b3_p = params
    B, d_in = x.shape
    h_p = w1_p.shape[1]
    d_out_p = w3_p.shape[1]

    w_bytes = sum(int(a.size) * a.dtype.itemsize
                  for a in (w1_p, b1_p, w2_p, b2_p, w3_p, b3_p))
    x_itemsize = x.dtype.itemsize
    out_itemsize = jnp.dtype(out_dtype).itemsize
    phys = _physical_vmem_bytes()

    def need_fn(tb):
        return _vmem_need_bytes(tb, d_in, h_p, d_out_p, x_itemsize, out_itemsize,
                                w_bytes, weight_buffers)

    tb = _pick_tile_b(B, tile_b, need_fn, phys)
    b_p = _round_up(B, tb)

    # Batch-only pad of x (no feature pad, no dtype cast); no-op when B % tb == 0.
    x_b = x if b_p == B else jnp.pad(x, ((0, b_p - B), (0, 0)))

    # Derived VMEM limit: actual footprint + margin, capped by physical capacity.
    vmem_limit = max(32 << 20, int(need_fn(tb) * 1.5) + (8 << 20))
    vmem_limit = min(vmem_limit, 100 << 20, int(phys * 0.85))

    # Weights/biases: constant block index -> loaded once, resident across the grid.
    if weight_buffers == 1:
        def resident(shape):
            return pl.BlockSpec(shape, lambda i: (0, 0), pipeline_mode=pl.Buffered(1))
    else:
        def resident(shape):
            return pl.BlockSpec(shape, lambda i: (0, 0))

    # TODO(synk): for very large hidden dims on v7x (64 MiB VMEM), add an inner
    # N-tile split of w2/w3 instead of keeping the full h_p x h_p weight resident.
    out_padded = pl.pallas_call(
        _bigan_mlp_kernel,
        out_shape=jax.ShapeDtypeStruct((b_p, d_out_p), out_dtype),
        grid_spec=pltpu.PrefetchScalarGridSpec(
            num_scalar_prefetch=0,
            grid=(b_p // tb,),
            in_specs=[
                pl.BlockSpec((tb, d_in), lambda i: (i, 0)),   # x: streamed per tile
                resident((d_in, h_p)),
                resident((1, h_p)),
                resident((h_p, h_p)),
                resident((1, h_p)),
                resident((h_p, d_out_p)),
                resident((1, d_out_p)),
            ],
            out_specs=pl.BlockSpec((tb, d_out_p), lambda i: (i, 0)),
        ),
        compiler_params=pltpu.CompilerParams(
            # TODO(synk): evaluate pltpu.CORE_PARALLEL on v7x to force the 2-TC split.
            dimension_semantics=("parallel",),
            vmem_limit_bytes=vmem_limit,
        ),
    )(x_b, w1_p, b1_p, w2_p, b2_p, w3_p, b3_p)

    return out_padded[:B, :d_out]


def bigan_mlp_forward(x, prepared_params, d_out, *, tile_b=512, out_dtype=jnp.float32):
    """BiGanMLP forward. `prepared_params` comes from prepare_params(); d_out = output_dim."""
    try:
        return _bigan_mlp_jit(x, prepared_params, d_out=d_out, tile_b=tile_b,
                              out_dtype=out_dtype, weight_buffers=1)
    except Exception:
        # Fallback: this JAX build rejected pl.Buffered(1) on a top-level pallas_call
        # BlockSpec; keep default double-buffered (grid-invariant) weights.
        return _bigan_mlp_jit(x, prepared_params, d_out=d_out, tile_b=tile_b,
                              out_dtype=out_dtype, weight_buffers=2)


# --------------------------------------------------------------- params & reference
def make_params(key, input_dim, hidden_dim, output_dim):
    """Deterministic synthetic parameters (Kaiming-uniform-ish scale, like nn.Linear)."""
    ks = jax.random.split(key, 6)

    def linear(kw, kb, fan_in, fan_out):
        bound = 1.0 / jnp.sqrt(fan_in)
        # Stored as (in, out): PyTorch's (out, in) weight, pre-transposed.
        w = jax.random.uniform(kw, (fan_in, fan_out), jnp.float32, -bound, bound)
        b = jax.random.uniform(kb, (1, fan_out), jnp.float32, -bound, bound)
        return w, b

    w1, b1 = linear(ks[0], ks[1], input_dim, hidden_dim)
    w2, b2 = linear(ks[2], ks[3], hidden_dim, hidden_dim)
    w3, b3 = linear(ks[4], ks[5], hidden_dim, output_dim)
    return w1, b1, w2, b2, w3, b3


def reference_mlp(x, w1, b1, w2, b2, w3, b3, compute_dtype=jnp.bfloat16):
    """Pure-JAX reference with the same bf16-in / f32-accumulate policy."""
    cd = compute_dtype
    h1 = jnp.dot(x.astype(cd), w1.astype(cd), preferred_element_type=jnp.float32) + b1
    h1 = jnp.maximum(h1, 0.0)
    h2 = jnp.dot(h1.astype(cd), w2.astype(cd), preferred_element_type=jnp.float32) + b2
    h2 = jnp.maximum(h2, 0.0)
    return jnp.dot(h2.astype(cd), w3.astype(cd), preferred_element_type=jnp.float32) + b3


if __name__ == "__main__":
    # Moderate shapes: 4 batch tiles of 512 (exercises the grid and the v7x >=4-tile
    # guidance) with non-128-multiple feature dims to exercise lane padding.
    B, INPUT_DIM, HIDDEN_DIM, OUTPUT_DIM = 2048, 64, 256, 32

    key = jax.random.PRNGKey(0)
    k_x, k_p = jax.random.split(key)

    x = jax.random.normal(k_x, (B, INPUT_DIM), jnp.float32)
    raw_params = make_params(k_p, INPUT_DIM, HIDDEN_DIM, OUTPUT_DIM)

    # One-time parameter preparation (outside the per-call hot path).
    params = jax.block_until_ready(prepare_params(*raw_params))

    out = bigan_mlp_forward(x, params, OUTPUT_DIM, tile_b=512)
    out = jax.block_until_ready(out)

    ref = reference_mlp(x, *raw_params)
    assert out.shape == (B, OUTPUT_DIM)
    assert jnp.allclose(out, ref, atol=2e-3, rtol=2e-3), "Pallas output mismatch vs reference"

    print("KERNEL_OK")
</pallas_src>

<mosaic_0001>
module attributes {stable_mosaic.version = 11 : i64} {
  func.func @_bigan_mlp_kernel(%arg0: i32, %arg1: memref<512x64xf32, #tpu.memory_space<vmem>>, %arg2: memref<64x256xbf16, #tpu.memory_space<vmem>>, %arg3: memref<1x256xf32, #tpu.memory_space<vmem>>, %arg4: memref<256x256xbf16, #tpu.memory_space<vmem>>, %arg5: memref<1x256xf32, #tpu.memory_space<vmem>>, %arg6: memref<256x128xbf16, #tpu.memory_space<vmem>>, %arg7: memref<1x128xf32, #tpu.memory_space<vmem>>, %arg8: memref<512x128xf32, #tpu.memory_space<vmem>>) attributes {dimension_semantics = [#tpu.dimension_semantics<parallel>], iteration_bounds = array<i64: 4>, scalar_prefetch = 0 : i64, scratch_operands = 0 : i64, tpu.core_type = #tpu.core_type<tc>, window_params = [{transform_indices = @transform_0, window_bounds = array<i64: 512, 64>}, {pipeline_mode = #tpu.pipeline_mode<synchronous>, transform_indices = @transform_1, window_bounds = array<i64: 64, 256>}, {pipeline_mode = #tpu.pipeline_mode<synchronous>, transform_indices = @transform_2, window_bounds = array<i64: 1, 256>}, {pipeline_mode = #tpu.pipeline_mode<synchronous>, transform_indices = @transform_3, window_bounds = array<i64: 256, 256>}, {pipeline_mode = #tpu.pipeline_mode<synchronous>, transform_indices = @transform_4, window_bounds = array<i64: 1, 256>}, {pipeline_mode = #tpu.pipeline_mode<synchronous>, transform_indices = @transform_5, window_bounds = array<i64: 256, 128>}, {pipeline_mode = #tpu.pipeline_mode<synchronous>, transform_indices = @transform_6, window_bounds = array<i64: 1, 128>}, {transform_indices = @transform_7, window_bounds = array<i64: 512, 128>}]} {
    %c0 = arith.constant 0 : index
    %c0_0 = arith.constant 0 : index
    %0 = vector.load %arg1[%c0, %c0_0] : memref<512x64xf32, #tpu.memory_space<vmem>>, vector<512x64xf32>
    %1 = arith.truncf %0 : vector<512x64xf32> to vector<512x64xbf16>
    %c0_1 = arith.constant 0 : index
    %c0_2 = arith.constant 0 : index
    %2 = vector.load %arg2[%c0_1, %c0_2] : memref<64x256xbf16, #tpu.memory_space<vmem>>, vector<64x256xbf16>
    %cst = arith.constant dense<0.000000e+00> : vector<512x256xf32>
    %3 = tpu.matmul %1, %2, %cst {dimension_numbers = #tpu.dot_dimension_numbers<[1], [0], [0], [1], [0, 0, 1, 1], [], []>} : vector<512x64xbf16>, vector<64x256xbf16>, vector<512x256xf32> -> vector<512x256xf32>
    %c0_3 = arith.constant 0 : index
    %c0_4 = arith.constant 0 : index
    %4 = vector.load %arg3[%c0_3, %c0_4] : memref<1x256xf32, #tpu.memory_space<vmem>>, vector<1x256xf32>
    %5 = vector.broadcast %4 : vector<1x256xf32> to vector<512x256xf32>
    %6 = arith.addf %3, %5 : vector<512x256xf32>
    %cst_5 = arith.constant 0.000000e+00 : f32
    %7 = vector.broadcast %cst_5 : f32 to vector<512x256xf32>
    %8 = arith.maximumf %6, %7 : vector<512x256xf32>
    %9 = arith.truncf %8 : vector<512x256xf32> to vector<512x256xbf16>
    %c0_6 = arith.constant 0 : index
    %c0_7 = arith.constant 0 : index
    %10 = vector.load %arg4[%c0_6, %c0_7] : memref<256x256xbf16, #tpu.memory_space<vmem>>, vector<256x256xbf16>
    %cst_8 = arith.constant dense<0.000000e+00> : vector<512x256xf32>
    %11 = tpu.matmul %9, %10, %cst_8 {dimension_numbers = #tpu.dot_dimension_numbers<[1], [0], [0], [1], [0, 0, 1, 1], [], []>} : vector<512x256xbf16>, vector<256x256xbf16>, vector<512x256xf32> -> vector<512x256xf32>
    %c0_9 = arith.constant 0 : index
    %c0_10 = arith.constant 0 : index
    %12 = vector.load %arg5[%c0_9, %c0_10] : memref<1x256xf32, #tpu.memory_space<vmem>>, vector<1x256xf32>
    %13 = vector.broadcast %12 : vector<1x256xf32> to vector<512x256xf32>
    %14 = arith.addf %11, %13 : vector<512x256xf32>
    %cst_11 = arith.constant 0.000000e+00 : f32
    %15 = vector.broadcast %cst_11 : f32 to vector<512x256xf32>
    %16 = arith.maximumf %14, %15 : vector<512x256xf32>
    %17 = arith.truncf %16 : vector<512x256xf32> to vector<512x256xbf16>
    %c0_12 = arith.constant 0 : index
    %c0_13 = arith.constant 0 : index
    %18 = vector.load %arg6[%c0_12, %c0_13] : memref<256x128xbf16, #tpu.memory_space<vmem>>, vector<256x128xbf16>
    %cst_14 = arith.constant dense<0.000000e+00> : vector<512x128xf32>
    %19 = tpu.matmul %17, %18, %cst_14 {dimension_numbers = #tpu.dot_dimension_numbers<[1], [0], [0], [1], [0, 0, 1, 1], [], []>} : vector<512x256xbf16>, vector<256x128xbf16>, vector<512x128xf32> -> vector<512x128xf32>
    %c0_15 = arith.constant 0 : index
    %c0_16 = arith.constant 0 : index
    %20 = vector.load %arg7[%c0_15, %c0_16] : memref<1x128xf32, #tpu.memory_space<vmem>>, vector<1x128xf32>
    %21 = vector.broadcast %20 : vector<1x128xf32> to vector<512x128xf32>
    %22 = arith.addf %19, %21 : vector<512x128xf32>
    %c0_17 = arith.constant 0 : index
    %c0_18 = arith.constant 0 : index
    %23 = vector.load %arg8[%c0_17, %c0_18] : memref<512x128xf32, #tpu.memory_space<vmem>>, vector<512x128xf32>
    tpu.vector_store %arg8[%c0_17, %c0_18], %22 {strides = array<i32>} : memref<512x128xf32, #tpu.memory_space<vmem>>, vector<512x128xf32>,
    return
  }
  func.func @transform_0(%arg0: i32) -> (i32, i32) {
    %c0_i32 = arith.constant 0 : i32
    %c0_i32_0 = arith.constant 0 : i32
    return %arg0, %c0_i32 : i32, i32
  }
  func.func @transform_1(%arg0: i32) -> (i32, i32) {
    %c0_i32 = arith.constant 0 : i32
    %c0_i32_0 = arith.constant 0 : i32
    %c0_i32_1 = arith.constant 0 : i32
    return %c0_i32, %c0_i32_0 : i32, i32
  }
  func.func @transform_2(%arg0: i32) -> (i32, i32) {
    %c0_i32 = arith.constant 0 : i32
    %c0_i32_0 = arith.constant 0 : i32
    %c0_i32_1 = arith.constant 0 : i32
    return %c0_i32, %c0_i32_0 : i32, i32
  }
  func.func @transform_3(%arg0: i32) -> (i32, i32) {
    %c0_i32 = arith.constant 0 : i32
    %c0_i32_0 = arith.constant 0 : i32
    %c0_i32_1 = arith.constant 0 : i32
    return %c0_i32, %c0_i32_0 : i32, i32
  }
  func.func @transform_4(%arg0: i32) -> (i32, i32) {
    %c0_i32 = arith.constant 0 : i32
    %c0_i32_0 = arith.constant 0 : i32
    %c0_i32_1 = arith.constant 0 : i32
    return %c0_i32, %c0_i32_0 : i32, i32
  }
  func.func @transform_5(%arg0: i32) -> (i32, i32) {
    %c0_i32 = arith.constant 0 : i32
    %c0_i32_0 = arith.constant 0 : i32
    %c0_i32_1 = arith.constant 0 : i32
    return %c0_i32, %c0_i32_0 : i32, i32
  }
  func.func @transform_6(%arg0: i32) -> (i32, i32) {
    %c0_i32 = arith.constant 0 : i32
    %c0_i32_0 = arith.constant 0 : i32
    %c0_i32_1 = arith.constant 0 : i32
    return %c0_i32, %c0_i32_0 : i32, i32
  }
  func.func @transform_7(%arg0: i32) -> (i32, i32) {
    %c0_i32 = arith.constant 0 : i32
    %c0_i32_0 = arith.constant 0 : i32
    return %arg0, %c0_i32 : i32, i32
  }
}

module attributes {stable_mosaic.version = 11 : i64} {
  func.func @_bigan_mlp_kernel(%arg0: i32, %arg1: memref<512x64xf32, #tpu.memory_space<vmem>>, %arg2: memref<64x256xbf16, #tpu.memory_space<vmem>>, %arg3: memref<1x256xf32, #tpu.memory_space<vmem>>, %arg4: memref<256x256xbf16, #tpu.memory_space<vmem>>, %arg5: memref<1x256xf32, #tpu.memory_space<vmem>>, %arg6: memref<256x128xbf16, #tpu.memory_space<vmem>>, %arg7: memref<1x128xf32, #tpu.memory_space<vmem>>, %arg8: memref<512x128xf32, #tpu.memory_space<vmem>>) attributes {dimension_semantics = [#tpu.dimension_semantics<parallel>], iteration_bounds = array<i64: 4>, scalar_prefetch = 0 : i64, scratch_operands = 0 : i64, tpu.core_type = #tpu.core_type<tc>, window_params = [{transform_indices = @transform_0, window_bounds = array<i64: 512, 64>}, {pipeline_mode = #tpu.pipeline_mode<synchronous>, transform_indices = @transform_1, window_bounds = array<i64: 64, 256>}, {pipeline_mode = #tpu.pipeline_mode<synchronous>, transform_indices = @transform_2, window_bounds = array<i64: 1, 256>}, {pipeline_mode = #tpu.pipeline_mode<synchronous>, transform_indices = @transform_3, window_bounds = array<i64: 256, 256>}, {pipeline_mode = #tpu.pipeline_mode<synchronous>, transform_indices = @transform_4, window_bounds = array<i64: 1, 256>}, {pipeline_mode = #tpu.pipeline_mode<synchronous>, transform_indices = @transform_5, window_bounds = array<i64: 256, 128>}, {pipeline_mode = #tpu.pipeline_mode<synchronous>, transform_indices = @transform_6, window_bounds = array<i64: 1, 128>}, {transform_indices = @transform_7, window_bounds = array<i64: 512, 128>}]} {
    %c0 = arith.constant 0 : index
    %c0_0 = arith.constant 0 : index
    %0 = vector.load %arg1[%c0, %c0_0] : memref<512x64xf32, #tpu.memory_space<vmem>>, vector<512x64xf32>
    %1 = arith.truncf %0 : vector<512x64xf32> to vector<512x64xbf16>
    %c0_1 = arith.constant 0 : index
    %c0_2 = arith.constant 0 : index
    %2 = vector.load %arg2[%c0_1, %c0_2] : memref<64x256xbf16, #tpu.memory_space<vmem>>, vector<64x256xbf16>
    %cst = arith.constant dense<0.000000e+00> : vector<512x256xf32>
    %3 = tpu.matmul %1, %2, %cst {dimension_numbers = #tpu.dot_dimension_numbers<[1], [0], [0], [1], [0, 0, 1, 1], [], []>} : vector<512x64xbf16>, vector<64x256xbf16>, vector<512x256xf32> -> vector<512x256xf32>
    %c0_3 = arith.constant 0 : index
    %c0_4 = arith.constant 0 : index
    %4 = vector.load %arg3[%c0_3, %c0_4] : memref<1x256xf32, #tpu.memory_space<vmem>>, vector<1x256xf32>
    %5 = vector.broadcast %4 : vector<1x256xf32> to vector<512x256xf32>
    %6 = arith.addf %3, %5 : vector<512x256xf32>
    %cst_5 = arith.constant 0.000000e+00 : f32
    %7 = vector.broadcast %cst_5 : f32 to vector<512x256xf32>
    %8 = arith.maximumf %6, %7 : vector<512x256xf32>
    %9 = arith.truncf %8 : vector<512x256xf32> to vector<512x256xbf16>
    %c0_6 = arith.constant 0 : index
    %c0_7 = arith.constant 0 : index
    %10 = vector.load %arg4[%c0_6, %c0_7] : memref<256x256xbf16, #tpu.memory_space<vmem>>, vector<256x256xbf16>
    %cst_8 = arith.constant dense<0.000000e+00> : vector<512x256xf32>
    %11 = tpu.matmul %9, %10, %cst_8 {dimension_numbers = #tpu.dot_dimension_numbers<[1], [0], [0], [1], [0, 0, 1, 1], [], []>} : vector<512x256xbf16>, vector<256x256xbf16>, vector<512x256xf32> -> vector<512x256xf32>
    %c0_9 = arith.constant 0 : index
    %c0_10 = arith.constant 0 : index
    %12 = vector.load %arg5[%c0_9, %c0_10] : memref<1x256xf32, #tpu.memory_space<vmem>>, vector<1x256xf32>
    %13 = vector.broadcast %12 : vector<1x256xf32> to vector<512x256xf32>
    %14 = arith.addf %11, %13 : vector<512x256xf32>
    %cst_11 = arith.constant 0.000000e+00 : f32
    %15 = vector.broadcast %cst_11 : f32 to vector<512x256xf32>
    %16 = arith.maximumf %14, %15 : vector<512x256xf32>
    %17 = arith.truncf %16 : vector<512x256xf32> to vector<512x256xbf16>
    %c0_12 = arith.constant 0 : index
    %c0_13 = arith.constant 0 : index
    %18 = vector.load %arg6[%c0_12, %c0_13] : memref<256x128xbf16, #tpu.memory_space<vmem>>, vector<256x128xbf16>
    %cst_14 = arith.constant dense<0.000000e+00> : vector<512x128xf32>
    %19 = tpu.matmul %17, %18, %cst_14 {dimension_numbers = #tpu.dot_dimension_numbers<[1], [0], [0], [1], [0, 0, 1, 1], [], []>} : vector<512x256xbf16>, vector<256x128xbf16>, vector<512x128xf32> -> vector<512x128xf32>
    %c0_15 = arith.constant 0 : index
    %c0_16 = arith.constant 0 : index
    %20 = vector.load %arg7[%c0_15, %c0_16] : memref<1x128xf32, #tpu.memory_space<vmem>>, vector<1x128xf32>
    %21 = vector.broadcast %20 : vector<1x128xf32> to vector<512x128xf32>
    %22 = arith.addf %19, %21 : vector<512x128xf32>
    %c0_17 = arith.constant 0 : index
    %c0_18 = arith.constant 0 : index
    %23 = vector.load %arg8[%c0_17, %c0_18] : memref<512x128xf32, #tpu.memory_space<vmem>>, vector<512x128xf32>
    tpu.vector_store %arg8[%c0_17, %c0_18], %22 {strides = array<i32>} : memref<512x128xf32, #tpu.memory_space<vmem>>, vector<512x128xf32>,
    return
  }
  func.func @transform_0(%arg0: i32) -> (i32, i32) {
    %c0_i32 = arith.constant 0 : i32
    %c0_i32_0 = arith.constant 0 : i32
    return %arg0, %c0_i32 : i32, i32
  }
  func.func @transform_1(%arg0: i32) -> (i32, i32) {
    %c0_i32 = arith.constant 0 : i32
    %c0_i32_0 = arith.constant 0 : i32
    %c0_i32_1 = arith.constant 0 : i32
    return %c0_i32, %c0_i32_0 : i32, i32
  }
  func.func @transform_2(%arg0: i32) -> (i32, i32) {
    %c0_i32 = arith.constant 0 : i32
    %c0_i32_0 = arith.constant 0 : i32
    %c0_i32_1 = arith.constant 0 : i32
    return %c0_i32, %c0_i32_0 : i32, i32
  }
  func.func @transform_3(%arg0: i32) -> (i32, i32) {
    %c0_i32 = arith.constant 0 : i32
    %c0_i32_0 = arith.constant 0 : i32
    %c0_i32_1 = arith.constant 0 : i32
    return %c0_i32, %c0_i32_0 : i32, i32
  }
  func.func @transform_4(%arg0: i32) -> (i32, i32) {
    %c0_i32 = arith.constant 0 : i32
    %c0_i32_0 = arith.constant 0 : i32
    %c0_i32_1 = arith.constant 0 : i32
    return %c0_i32, %c0_i32_0 : i32, i32
  }
  func.func @transform_5(%arg0: i32) -> (i32, i32) {
    %c0_i32 = arith.constant 0 : i32
    %c0_i32_0 = arith.constant 0 : i32
    %c0_i32_1 = arith.constant 0 : i32
    return %c0_i32, %c0_i32_0 : i32, i32
  }
  func.func @transform_6(%arg0: i32) -> (i32, i32) {
    %c0_i32 = arith.constant 0 : i32
    %c0_i32_0 = arith.constant 0 : i32
    %c0_i32_1 = arith.constant 0 : i32
    return %c0_i32, %c0_i32_0 : i32, i32
  }
  func.func @transform_7(%arg0: i32) -> (i32, i32) {
    %c0_i32 = arith.constant 0 : i32
    %c0_i32_0 = arith.constant 0 : i32
    return %arg0, %c0_i32 : i32, i32
  }
}

</mosaic_0001>

<bundles_post_ra>
// kernel: _bigan_mlp_jit.1
= control target key start
LH: loop header
LB: loop body
LE: loop exit
PB: predicated region body
PF: predicated region fallthrough
CT: control target
= control target key end

     0   :  { %s2616_s24 = smov 0   ;;  %s3467_s0 = inlined_call_operand.vmem [shape: f32[2048,64], index: 0, kind: input, shape index: {}]   ;;  %s3468_s1 = inlined_call_operand.vmem [shape: bf16[64,256], index: 1, kind: input, shape index: {}]   ;;  %s3469_s2 = inlined_call_operand.vmem [shape: f32[1,256], index: 2, kind: input, shape index: {}]   ;;  %s3470_s3 = inlined_call_operand.vmem [shape: bf16[256,256], index: 3, kind: input, shape index: {}]   ;;  %s3471_s4 = inlined_call_operand.vmem [shape: f32[1,256], index: 4, kind: input, shape index: {}]   ;;  %s3472_s5 = inlined_call_operand.vmem [shape: bf16[256,128], index: 5, kind: input, shape index: {}]   ;;  %s3473_s6 = inlined_call_operand.vmem [shape: f32[1,128], index: 6, kind: input, shape index: {}]   ;;  %s3474_s7 = inlined_call_operand.vmem [shape: f32[2048,128], index: 7, kind: output, shape index: {}]  }
   0x1 LB: > { %s2374_s25 = sadd.s32 4294967295, %s2573_s24   ;;  %p2378_p0 = scmp.ge.s32.totalorder %s2573_s24, 1  ;;  %s2573_s24 = sphi %s2616_s24, %s17_s24  }
   0x2   : > { %p238_p1 = scmp.lt.s32.totalorder %s2573_s24, 5 }
   0x4   : > { %p239_p2 = pnand %p2378_p0, %p238_p1 }
   0x5   : > { %v2491_v0 = vld [vmem:[%s3468_s1 + $0x4] ss:$8 sps:$4 sm:$0xff] (!%p239_p2)   ;;  %s2379_s28 = sshll.u32 (!%p239_p2), %s2374_s25, 6  ;;  %v2493_v1 = vld [vmem:[%s3468_s1] ss:$8 sps:$4 sm:$0xff] (!%p239_p2)   ;;  %v2575_v2 = vmov (!%p239_p2), 0  }
   0x6   : > { %242 = sbr.rel (%p239_p2) target bundleno = 932 (0x3a4), region = 48  ;;  %568 = vmatprep.mubr.bf16.mxu0 (!%p239_p2), %v2575_v2  ;;  %p271_p3 = scmp.lt.s32.totalorder (!%p239_p2), %s2379_s28, 255  ;;  %728 = vmatprep.mubr.bf16.mxu1 (!%p239_p2), %v2575_v2  ;;  %v2494_v3 = vld [vmem:[%s3468_s1 + $0x14] ss:$8 sps:$4 sm:$0xff] (!%p239_p2)   ;;  %v2496_v4 = vld [vmem:[%s3468_s1 + $0x10] ss:$8 sps:$4 sm:$0xff] (!%p239_p2)  }
   0x7   : > { %536 = vmatprep.subr.bf16.mxu0 (!%p239_p2), %v2491_v0  ;;  %2474 = vmatprep.subr.bf16.mxu1 (!%p239_p2), %v2491_v0  ;;  %v2497_v5 = vld [vmem:[%s3468_s1 + $0x24] ss:$8 sps:$4 sm:$0xff] (!%p239_p2)   ;;  %v2499_v6 = vld [vmem:[%s3468_s1 + $0x20] ss:$8 sps:$4 sm:$0xff] (!%p239_p2)   ;;  %v2500_v7 = vld [vmem:[%s3468_s1 + $0x34] ss:$8 sps:$4 sm:$0xff] (!%p239_p2)  }
   0x8   : > { %537 = vmatpush1.bf16.msra.mxu0 (!%p239_p2), %v2493_v1  ;;  %2478 = vmatpush1.bf16.msra.mxu1 (!%p239_p2), %v2493_v1  ;;  %v2502_v8 = vld [vmem:[%s3468_s1 + $0x30] ss:$8 sps:$4 sm:$0xff] (!%p239_p2)   ;;  %v2505_v11 = vld [vmem:[%s3470_s3 + $0x4] ss:$8 sps:$4 sm:$0xff] (!%p239_p2)   ;;  %vm439_vm0 = vcmask (!%p239_p2), 523264  }
   0x9   : > { %538 = vmatprep.subr.bf16.mxu0 (!%p239_p2), %v2494_v3  ;;  %2475 = vmatprep.subr.bf16.mxu1 (!%p239_p2), %v2494_v3  ;;  %v2503_v15 = vld [vmem:[%s3470_s3] ss:$8 sps:$4 sm:$0xff] (!%p239_p2)   ;;  %v2508_v18 = vld [vmem:[%s3470_s3 + $0x14] ss:$8 sps:$4 sm:$0xff] (!%p239_p2)   ;;  %v2506_v22 = vld [vmem:[%s3470_s3 + $0x10] ss:$8 sps:$4 sm:$0xff] (!%p239_p2)  }
   0xa   : > { %v2511_v23 = vld [vmem:[%s3470_s3 + $0x24] ss:$8 sps:$4 sm:$0xff] (!%p239_p2)   ;;  %v2509_v26 = vld [vmem:[%s3470_s3 + $0x20] ss:$8 sps:$4 sm:$0xff] (!%p239_p2)   ;;  %v2514_v27 = vld [vmem:[%s3470_s3 + $0x34] ss:$8 sps:$4 sm:$0xff] (!%p239_p2)  }
   0xb   : > { %v2512_v32 = vld [vmem:[%s3470_s3 + $0x30] ss:$8 sps:$4 sm:$0xff] (!%p239_p2)   ;;  %v2517_v33 = vld [vmem:[%s3470_s3 + $0x44] ss:$8 sps:$4 sm:$0xff] (!%p239_p2)   ;;  %v2515_v36 = vld [vmem:[%s3470_s3 + $0x40] ss:$8 sps:$4 sm:$0xff] (!%p239_p2)  }
   0xc   : > { %539 = vmatpush1.bf16.msra.mxu0 (!%p239_p2), %v2496_v4  ;;  %2479 = vmatpush1.bf16.msra.mxu1 (!%p239_p2), %v2496_v4  ;;  %v2520_v37 = vld [vmem:[%s3470_s3 + $0x54] ss:$8 sps:$4 sm:$0xff] (!%p239_p2)   ;;  %v2518_v42 = vld [vmem:[%s3470_s3 + $0x50] ss:$8 sps:$4 sm:$0xff] (!%p239_p2)   ;;  %v2523_v43 = vld [vmem:[%s3470_s3 + $0x64] ss:$8 sps:$4 sm:$0xff] (!%p239_p2)  }
   0xd   : > { %s3476_s28 = smov (!%p271_p3, %s2379_s28), 255  ;;  %540 = vmatprep.subr.bf16.mxu0 %v2497_v5  ;;  %2476 = vmatprep.subr.bf16.mxu1 %v2497_v5  ;;  %v2521_v46 = vld [vmem:[%s3470_s3 + $0x60] ss:$8 sps:$4 sm:$0xff]   ;;  %v2526_v47 = vld [vmem:[%s3470_s3 + $0x74] ss:$8 sps:$4 sm:$0xff]  }
   0xe   : > { %s2380_s14 = sshll.u32 %s3476_s28, 3  ;;  %v2524_v52 = vld [vmem:[%s3470_s3 + $0x70] ss:$8 sps:$4 sm:$0xff]   ;;  %v2529_v53 = vld [vmem:[%s3470_s3 + $0x84] ss:$8 sps:$4 sm:$0xff]  }
   0xf   : > { %s2655_s21 = scalar_lea.vmem %s3467_s0, %s2380_s14  ;;  %v2527_v56 = vld [vmem:[%s3470_s3 + $0x80] ss:$8 sps:$4 sm:$0xff]   ;;  %v2532_v57 = vld [vmem:[%s3470_s3 + $0x94] ss:$8 sps:$4 sm:$0xff]   ;;  %v2530_v62 = vld [vmem:[%s3470_s3 + $0x90] ss:$8 sps:$4 sm:$0xff]   ;;  %s3318_s10 = scalar_lea.vmem %s3474_s7, %s2380_s14 }
  0x10   : > { %541 = vmatpush1.bf16.msra.mxu0 %v2499_v6  ;;  %v283_v9 = vld [vmem:[%s2655_s21] sm:$0xff]  ;;  %v284_v10 = vld [vmem:[%s2655_s21 + $0x8] sm:$0xff]  ;;  %2480 = vmatpush1.bf16.msra.mxu1 %v2499_v6  ;;  %v285_v17 = vld [vmem:[%s2655_s21 + $0x10] sm:$0xff] }
  0x11   : > { %542 = vmatprep.subr.bf16.mxu0 %v2500_v7  ;;  %2477 = vmatprep.subr.bf16.mxu1 %v2500_v7  ;;  %v347_v12 = vpack.c.bf16 %v284_v10, %v283_v9  ;;  %v315_v13 = vld [vmem:[%s2655_s21 + $0x100] sm:$0xff]  ;;  %v316_v14 = vld [vmem:[%s2655_s21 + $0x108] sm:$0xff]  ;;  %v286_v19 = vld [vmem:[%s2655_s21 + $0x18] sm:$0xff] }
  0x12   : > { %v363_v16 = vpack.c.bf16 %v316_v14, %v315_v13  ;;  %v317_v20 = vld [vmem:[%s2655_s21 + $0x110] sm:$0xff]  ;;  %v318_v21 = vld [vmem:[%s2655_s21 + $0x118] sm:$0xff]  ;;  %v348_v24 = vpack.c.bf16 %v286_v19, %v285_v17  ;;  %v287_v28 = vld [vmem:[%s2655_s21 + $0x20] sm:$0xff] }
  0x13   : > { %v364_v25 = vpack.c.bf16 %v318_v21, %v317_v20  ;;  %v288_v29 = vld [vmem:[%s2655_s21 + $0x28] sm:$0xff]  ;;  %v319_v30 = vld [vmem:[%s2655_s21 + $0x120] sm:$0xff]  ;;  %v289_v38 = vld [vmem:[%s2655_s21 + $0x30] sm:$0xff] }
  0x14   : > { %543 = vmatpush1.bf16.msra.mxu0 %v2502_v8  ;;  %2481 = vmatpush1.bf16.msra.mxu1 %v2502_v8  ;;  %v320_v31 = vld [vmem:[%s2655_s21 + $0x128] sm:$0xff]  ;;  %v349_v34 = vpack.c.bf16 %v288_v29, %v287_v28  ;;  %v290_v39 = vld [vmem:[%s2655_s21 + $0x38] sm:$0xff]  ;;  %v321_v40 = vld [vmem:[%s2655_s21 + $0x130] sm:$0xff] }
  0x15   : > { %1285 = vmatprep.subr.bf16.mxu1 %v2505_v11  ;;  %1965 = vmatprep.subr.bf16.mxu0 %v2575_v2  ;;  %v365_v35 = vpack.c.bf16 %v320_v31, %v319_v30  ;;  %v322_v41 = vld [vmem:[%s2655_s21 + $0x138] sm:$0xff]  ;;  %v350_v44 = vpack.c.bf16 %v290_v39, %v289_v38  ;;  %v291_v48 = vld [vmem:[%s2655_s21 + $0x40] sm:$0xff]  ;;  %v292_v49 = vld [vmem:[%s2655_s21 + $0x48] sm:$0xff] }
  0x16   : > { %v366_v45 = vpack.c.bf16 %v322_v41, %v321_v40  ;;  %v323_v50 = vld [vmem:[%s2655_s21 + $0x140] sm:$0xff]  ;;  %v324_v51 = vld [vmem:[%s2655_s21 + $0x148] sm:$0xff]  ;;  %v351_v54 = vpack.c.bf16 %v292_v49, %v291_v48  ;;  %v293_v58 = vld [vmem:[%s2655_s21 + $0x50] sm:$0xff] }
  0x17   : > { %2391 = vmatmul.mubr.msk.bf16.vlgmr.msra.gmra.mrb[0].mxu0 %vm439_vm0, %v347_v12  ;;  %2407 = vmatmul.mubr.msk.bf16.vlgmr.msra.gmra.mrb[0].mxu1 %vm439_vm0, %v363_v16  ;;  %v367_v55 = vpack.c.bf16 %v324_v51, %v323_v50  ;;  %v294_v59 = vld [vmem:[%s2655_s21 + $0x58] sm:$0xff]  ;;  %v325_v60 = vld [vmem:[%s2655_s21 + $0x150] sm:$0xff]  ;;  %v2535_v63 = vld [vmem:[%s3470_s3 + $0xa4] ss:$8 sps:$4 sm:$0xff]  }
  0x18   : > { %578 = vmatprep.mubr.bf16.mxu0 %v2575_v2  ;;  %1286 = vmatpush1.bf16.msra.mxu1 %v2503_v15  ;;  %v326_v61 = vld [vmem:[%s2655_s21 + $0x158] sm:$0xff]  ;;  %v352_v0 = vpack.c.bf16 %v294_v59, %v293_v58  ;;  %v2533_v3 = vld [vmem:[%s3470_s3 + $0xa0] ss:$8 sps:$4 sm:$0xff]   ;;  %v2541_v10 = vld [vmem:[%s3470_s3 + $0xc4] ss:$8 sps:$4 sm:$0xff]  }
  0x19   : > { %738 = vmatprep.mubr.bf16.mxu1 %v2575_v2  ;;  %1287 = vmatprep.subr.bf16.mxu1 %v2508_v18  ;;  %v368_v1 = vpack.c.bf16 %v326_v61, %v325_v60  ;;  %v2538_v4 = vld [vmem:[%s3470_s3 + $0xb4] ss:$8 sps:$4 sm:$0xff]   ;;  %v295_v5 = vld [vmem:[%s2655_s21 + $0x60] sm:$0xff]  ;;  %v296_v6 = vld [vmem:[%s2655_s21 + $0x68] sm:$0xff] }
  0x1a   : > { %v327_v7 = vld [vmem:[%s2655_s21 + $0x160] sm:$0xff]  ;;  %v328_v8 = vld [vmem:[%s2655_s21 + $0x168] sm:$0xff]  ;;  %v2536_v9 = vld [vmem:[%s3470_s3 + $0xb0] ss:$8 sps:$4 sm:$0xff]   ;;  %v353_v11 = vpack.c.bf16 %v296_v6, %v295_v5 }
  0x1b   : > { %v369_v12 = vpack.c.bf16 %v328_v8, %v327_v7  ;;  %v2539_v13 = vld [vmem:[%s3470_s3 + $0xc0] ss:$8 sps:$4 sm:$0xff]   ;;  %v2544_v14 = vld [vmem:[%s3470_s3 + $0xd4] ss:$8 sps:$4 sm:$0xff]   ;;  %v2542_v19 = vld [vmem:[%s3470_s3 + $0xd0] ss:$8 sps:$4 sm:$0xff]  }
  0x1c   : > { %1288 = vmatpush1.bf16.msra.mxu1 %v2506_v22  ;;  %v297_v15 = vld [vmem:[%s2655_s21 + $0x70] sm:$0xff]  ;;  %v298_v16 = vld [vmem:[%s2655_s21 + $0x78] sm:$0xff]  ;;  %v2547_v20 = vld [vmem:[%s3470_s3 + $0xe4] ss:$8 sps:$4 sm:$0xff]  }
  0x1d   : > { %1289 = vmatprep.subr.bf16.mxu1 %v2511_v23  ;;  %v329_v17 = vld [vmem:[%s2655_s21 + $0x170] sm:$0xff]  ;;  %v330_v18 = vld [vmem:[%s2655_s21 + $0x178] sm:$0xff]  ;;  %v354_v21 = vpack.c.bf16 %v298_v16, %v297_v15  ;;  %v2545_v23 = vld [vmem:[%s3470_s3 + $0xe0] ss:$8 sps:$4 sm:$0xff]  }
  0x1e   : > { %v370_v22 = vpack.c.bf16 %v330_v18, %v329_v17  ;;  %v301_v30 = vld [vmem:[%s2655_s21 + $0x90] sm:$0xff]  ;;  %v302_v31 = vld [vmem:[%s2655_s21 + $0x98] sm:$0xff]  ;;  %v335_v38 = vld [vmem:[%s2655_s21 + $0x1a0] sm:$0xff] }
  0x1f   : > { %2392 = vmatmul.mubr.msk.bf16.gmra.mrb[4].mxu0 %vm439_vm0, %v348_v24  ;;  %2408 = vmatmul.mubr.msk.bf16.gmra.mrb[4].mxu1 %vm439_vm0, %v364_v25  ;;  %v299_v24 = vld [vmem:[%s2655_s21 + $0x80] sm:$0xff]  ;;  %v300_v25 = vld [vmem:[%s2655_s21 + $0x88] sm:$0xff]  ;;  %v2550_v50 = vld [vmem:[%s3470_s3 + $0xf4] ss:$8 sps:$4 sm:$0xff]  }
  0x20   : > { %588 = vmatprep.mubr.bf16.mxu0 %v2575_v2  ;;  %748 = vmatprep.mubr.bf16.mxu1 %v2575_v2  ;;  %v355_v28 = vpack.c.bf16 %v300_v25, %v299_v24  ;;  %v336_v39 = vld [vmem:[%s2655_s21 + $0x1a8] sm:$0xff]  ;;  %v307_v48 = vld [vmem:[%s2655_s21 + $0xc0] sm:$0xff]  ;;  %v341_v58 = vld [vmem:[%s2655_s21 + $0x1d0] sm:$0xff] }
  0x21   : > { %1290 = vmatpush1.bf16.msra.mxu1 %v2509_v26  ;;  %v331_v26 = vld [vmem:[%s2655_s21 + $0x180] sm:$0xff]  ;;  %v373_v41 = vpack.c.bf16 %v336_v39, %v335_v38  ;;  %v308_v49 = vld [vmem:[%s2655_s21 + $0xc8] sm:$0xff]  ;;  %v342_v59 = vld [vmem:[%s2655_s21 + $0x1d8] sm:$0xff] }
  0x22   : > { %1291 = vmatprep.subr.bf16.mxu1 %v2514_v27  ;;  %v332_v27 = vld [vmem:[%s2655_s21 + $0x188] sm:$0xff]  ;;  %v339_v51 = vld [vmem:[%s2655_s21 + $0x1c0] sm:$0xff]  ;;  %v376_v61 = vpack.c.bf16 %v342_v59, %v341_v58  ;;  %v313_v5 = vld [vmem:[%s2655_s21 + $0xf0] sm:$0xff] }
  0x23   : > { %v371_v29 = vpack.c.bf16 %v332_v27, %v331_v26  ;;  %v314_v6 = vld [vmem:[%s2655_s21 + $0xf8] sm:$0xff]  ;;  %v345_v7 = vld [vmem:[%s2655_s21 + $0x1f0] sm:$0xff]  ;;  %v387_v16 = vld [vmem:[%s3469_s2] sm:$0x3] }
  0x24   : > { %v346_v8 = vld [vmem:[%s2655_s21 + $0x1f8] sm:$0xff]  ;;  %v2553_v18 = vld [vmem:[%s3472_s5 + $0x10] sm:$0xff]  }
  0x25   : > { %1292 = vmatpush1.bf16.msra.mxu1 %v2512_v32  ;;  %v333_v32 = vld [vmem:[%s2655_s21 + $0x190] sm:$0xff] }
  0x26   : > { %1293 = vmatprep.subr.bf16.mxu1 %v2517_v33  ;;  %v334_v33 = vld [vmem:[%s2655_s21 + $0x198] sm:$0xff] }
  0x27   : > { %2393 = vmatmul.mubr.msk.bf16.gmra.mrb[8].mxu0 %vm439_vm0, %v349_v34  ;;  %2409 = vmatmul.mubr.msk.bf16.gmra.mrb[8].mxu1 %vm439_vm0, %v365_v35  ;;  %v356_v34 = vpack.c.bf16 %v302_v31, %v301_v30  ;;  %v372_v35 = vpack.c.bf16 %v334_v33, %v333_v32 }
  0x28   : > { %598 = vmatprep.mubr.bf16.mxu0 %v2575_v2  ;;  %758 = vmatprep.mubr.bf16.mxu1 %v2575_v2 }
  0x29   : > { %1294 = vmatpush1.bf16.msra.mxu1 %v2515_v36  ;;  %v303_v36 = vld [vmem:[%s2655_s21 + $0xa0] sm:$0xff] }
  0x2a   : > { %1295 = vmatprep.subr.bf16.mxu1 %v2520_v37  ;;  %v304_v37 = vld [vmem:[%s2655_s21 + $0xa8] sm:$0xff] }
  0x2b   : > { %v357_v40 = vpack.c.bf16 %v304_v37, %v303_v36 }
  0x2d   : > { %1296 = vmatpush1.bf16.msra.mxu1 %v2518_v42  ;;  %v305_v42 = vld [vmem:[%s2655_s21 + $0xb0] sm:$0xff] }
  0x2e   : > { %1297 = vmatprep.subr.bf16.mxu1 %v2523_v43  ;;  %v306_v43 = vld [vmem:[%s2655_s21 + $0xb8] sm:$0xff] }
  0x2f   : > { %2394 = vmatmul.mubr.msk.bf16.gmra.mrb[12].mxu0 %vm439_vm0, %v350_v44  ;;  %2410 = vmatmul.mubr.msk.bf16.gmra.mrb[12].mxu1 %vm439_vm0, %v366_v45  ;;  %v337_v44 = vld [vmem:[%s2655_s21 + $0x1b0] sm:$0xff]  ;;  %v338_v45 = vld [vmem:[%s2655_s21 + $0x1b8] sm:$0xff] }
  0x30   : > { %608 = vmatprep.mubr.bf16.mxu0 %v2575_v2  ;;  %768 = vmatprep.mubr.bf16.mxu1 %v2575_v2 }
  0x31   : > { %1298 = vmatpush1.bf16.msra.mxu1 %v2521_v46  ;;  %v358_v46 = vpack.c.bf16 %v306_v43, %v305_v42 }
  0x32   : > { %1299 = vmatprep.subr.bf16.mxu1 %v2526_v47  ;;  %v374_v47 = vpack.c.bf16 %v338_v45, %v337_v44 }
  0x35   : > { %1300 = vmatpush1.bf16.msra.mxu1 %v2524_v52  ;;  %v340_v52 = vld [vmem:[%s2655_s21 + $0x1c8] sm:$0xff] }
  0x36   : > { %1301 = vmatprep.subr.bf16.mxu1 %v2529_v53  ;;  %v2548_v53 = vld [vmem:[%s3470_s3 + $0xf0] ss:$8 sps:$4 sm:$0xff]  }
  0x37   : > { %2395 = vmatmul.mubr.msk.bf16.gmra.mrb[16].mxu0 %vm439_vm0, %v351_v54  ;;  %2411 = vmatmul.mubr.msk.bf16.gmra.mrb[16].mxu1 %vm439_vm0, %v367_v55  ;;  %v359_v54 = vpack.c.bf16 %v308_v49, %v307_v48  ;;  %v375_v55 = vpack.c.bf16 %v340_v52, %v339_v51 }
  0x38   : > { %618 = vmatprep.mubr.bf16.mxu0 %v2575_v2  ;;  %778 = vmatprep.mubr.bf16.mxu1 %v2575_v2 }
  0x39   : > { %1302 = vmatpush1.bf16.msra.mxu1 %v2527_v56  ;;  %v309_v56 = vld [vmem:[%s2655_s21 + $0xd0] sm:$0xff] }
  0x3a   : > { %1303 = vmatprep.subr.bf16.mxu1 %v2532_v57  ;;  %v310_v57 = vld [vmem:[%s2655_s21 + $0xd8] sm:$0xff] }
  0x3b   : > { %v360_v60 = vpack.c.bf16 %v310_v57, %v309_v56 }
  0x3d   : > { %1304 = vmatpush1.bf16.msra.mxu1 %v2530_v62  ;;  %v311_v62 = vld [vmem:[%s2655_s21 + $0xe0] sm:$0xff] }
  0x3e   : > { %1305 = vmatprep.subr.bf16.mxu1 %v2535_v63  ;;  %v312_v63 = vld [vmem:[%s2655_s21 + $0xe8] sm:$0xff] }
  0x3f   : > { %2396 = vmatmul.mubr.msk.bf16.gmra.mrb[20].mxu0 %vm439_vm0, %v352_v0  ;;  %2412 = vmatmul.mubr.msk.bf16.gmra.mrb[20].mxu1 %vm439_vm0, %v368_v1  ;;  %v343_v0 = vld [vmem:[%s2655_s21 + $0x1e0] sm:$0xff]  ;;  %v344_v1 = vld [vmem:[%s2655_s21 + $0x1e8] sm:$0xff] }
  0x40   : > { %628 = vmatprep.mubr.bf16.mxu0 %v2575_v2  ;;  %788 = vmatprep.mubr.bf16.mxu1 %v2575_v2 }
  0x41   : > { %1306 = vmatpush1.bf16.msra.mxu1 %v2533_v3  ;;  %v361_v3 = vpack.c.bf16 %v312_v63, %v311_v62 }
  0x42   : > { %1307 = vmatprep.subr.bf16.mxu1 %v2538_v4  ;;  %v377_v4 = vpack.c.bf16 %v344_v1, %v343_v0 }
  0x45   : > { %1308 = vmatpush1.bf16.msra.mxu1 %v2536_v9  ;;  %v362_v9 = vpack.c.bf16 %v314_v6, %v313_v5  ;;  %v2556_v6 = vld [vmem:[%s3472_s5 + $0x28] sm:$0xff]  }
  0x46   : > { %1309 = vmatprep.subr.bf16.mxu1 %v2541_v10  ;;  %v378_v10 = vpack.c.bf16 %v346_v8, %v345_v7 }
  0x47   : > { %2397 = vmatmul.mubr.msk.bf16.gmra.mrb[24].mxu0 %vm439_vm0, %v353_v11  ;;  %2413 = vmatmul.mubr.msk.bf16.gmra.mrb[24].mxu1 %vm439_vm0, %v369_v12  ;;  %v2551_v11 = vld [vmem:[%s3472_s5] sm:$0xff]   ;;  %v389_v12 = vlaneseq }
  0x48   : > { %638 = vmatprep.mubr.bf16.mxu0 %v2575_v2  ;;  %798 = vmatprep.mubr.bf16.mxu1 %v2575_v2 }
  0x49   : > { %1310 = vmatpush1.bf16.msra.mxu1 %v2539_v13  ;;  %1966 = vmatpush1.bf16.msra.mxu0 %v2551_v11  ;;  %v2552_v13 = vld [vmem:[%s3472_s5 + $0x8] sm:$0xff]  }
  0x4a   : > { %1311 = vmatprep.subr.bf16.mxu1 %v2544_v14  ;;  %1967 = vmatprep.subr.bf16.mxu0 %v2575_v2  ;;  %v2890_v14 = vshrl.u32 %v389_v12, 7 }
  0x4c   : > { %v391_v15 = vsub.s32 0, %v2890_v14  ;;  %v395_v17 = vsub.s32 1, %v2890_v14 }
  0x4d   : > { %1312 = vmatpush1.bf16.msra.mxu1 %v2542_v19  ;;  %1968 = vmatpush1.bf16.msra.mxu0 %v2552_v13 }
  0x4e   : > { %1313 = vmatprep.subr.bf16.mxu1 %v2547_v20  ;;  %1969 = vmatprep.subr.bf16.mxu0 %v2575_v2  ;;  %v2903_v19 = vrot.slane %v387_v16, %v391_v15  ;;  %v2907_v20 = vrot.slane %v387_v16, %v395_v17 }
  0x4f   : > { %2398 = vmatmul.mubr.msk.bf16.gmra.mrb[28].mxu0 %vm439_vm0, %v354_v21  ;;  %2414 = vmatmul.mubr.msk.bf16.gmra.mrb[28].mxu1 %vm439_vm0, %v370_v22 }
  0x50   : > { %648 = vmatprep.mubr.bf16.mxu0 %v2575_v2  ;;  %808 = vmatprep.mubr.bf16.mxu1 %v2575_v2 }
  0x51   : > { %1314 = vmatpush1.bf16.msra.mxu1 %v2545_v23  ;;  %1970 = vmatpush1.bf16.msra.mxu0 %v2553_v18  ;;  %v2554_v23 = vld [vmem:[%s3472_s5 + $0x18] sm:$0xff]  }
  0x52   : > { %1315 = vmatprep.subr.bf16.mxu1 %v2550_v50  ;;  %1971 = vmatprep.subr.bf16.mxu0 %v2575_v2 }
  0x55   : > { %1316 = vmatpush1.bf16.msra.mxu1 %v2548_v53  ;;  %1972 = vmatpush1.bf16.msra.mxu0 %v2554_v23 }
  0x56   : > { %1973 = vmatprep.subr.bf16.mxu0 %v2575_v2 }
  0x57   : > { %2399 = vmatmul.mubr.msk.bf16.gmra.mrb[32].mxu0 %vm439_vm0, %v355_v28  ;;  %2415 = vmatmul.mubr.msk.bf16.gmra.mrb[32].mxu1 %vm439_vm0, %v371_v29 }
  0x58   : > { %658 = vmatprep.mubr.bf16.mxu0 %v2575_v2  ;;  %818 = vmatprep.mubr.bf16.mxu1 %v2575_v2 }
  0x5f   : > { %2400 = vmatmul.mubr.msk.bf16.gmra.mrb[36].mxu0 %vm439_vm0, %v356_v34  ;;  %2416 = vmatmul.mubr.msk.bf16.gmra.mrb[36].mxu1 %vm439_vm0, %v372_v35 }
  0x60   : > { %668 = vmatprep.mubr.bf16.mxu0 %v2575_v2  ;;  %828 = vmatprep.mubr.bf16.mxu1 %v2575_v2 }
  0x67   : > { %2401 = vmatmul.mubr.msk.bf16.gmra.mrb[40].mxu0 %vm439_vm0, %v357_v40  ;;  %2417 = vmatmul.mubr.msk.bf16.gmra.mrb[40].mxu1 %vm439_vm0, %v373_v41  ;;  %v2555_v40 = vld [vmem:[%s3472_s5 + $0x20] sm:$0xff]  }
  0x68   : > { %678 = vmatprep.mubr.bf16.mxu0 %v2575_v2  ;;  %838 = vmatprep.mubr.bf16.mxu1 %v2575_v2 }
  0x69   : > { %1974 = vmatpush1.bf16.msra.mxu0 %v2555_v40  ;;  %v2557_v40 = vld [vmem:[%s3472_s5 + $0x30] sm:$0xff]  }
  0x6a   : > { %1975 = vmatprep.subr.bf16.mxu0 %v2575_v2 }
  0x6d   : > { %1976 = vmatpush1.bf16.msra.mxu0 %v2556_v6 }
  0x6e   : > { %1977 = vmatprep.subr.bf16.mxu0 %v2575_v2 }
  0x6f   : > { %2402 = vmatmul.mubr.msk.bf16.gmra.mrb[44].mxu0 %vm439_vm0, %v358_v46  ;;  %2418 = vmatmul.mubr.msk.bf16.gmra.mrb[44].mxu1 %vm439_vm0, %v374_v47 }
  0x70   : > { %688 = vmatprep.mubr.bf16.mxu0 %v2575_v2  ;;  %848 = vmatprep.mubr.bf16.mxu1 %v2575_v2 }
  0x71   : > { %1978 = vmatpush1.bf16.msra.mxu0 %v2557_v40 }
  0x72   : > { %1979 = vmatprep.subr.bf16.mxu0 %v2575_v2 }
  0x77   : > { %2403 = vmatmul.mubr.msk.bf16.gmra.mrb[48].mxu0 %vm439_vm0, %v359_v54  ;;  %2419 = vmatmul.mubr.msk.bf16.gmra.mrb[48].mxu1 %vm439_vm0, %v375_v55 }
  0x78   : > { %698 = vmatprep.mubr.bf16.mxu0 %v2575_v2  ;;  %858 = vmatprep.mubr.bf16.mxu1 %v2575_v2 }
  0x7f   : > { %2404 = vmatmul.mubr.msk.bf16.gmra.mrb[52].mxu0 %vm439_vm0, %v360_v60  ;;  %2420 = vmatmul.mubr.msk.bf16.gmra.mrb[52].mxu1 %vm439_vm0, %v376_v61 }
  0x80   : > { %708 = vmatprep.mubr.bf16.mxu0 %v2575_v2  ;;  %868 = vmatprep.mubr.bf16.mxu1 %v2575_v2 }
  0x87   : > { %2405 = vmatmul.mubr.msk.bf16.gmra.mrb[56].mxu0 %vm439_vm0, %v361_v3  ;;  %2421 = vmatmul.mubr.msk.bf16.gmra.mrb[56].mxu1 %vm439_vm0, %v377_v4 }
  0x88   : > { %718 = vmatprep.mubr.bf16.mxu0 %v2575_v2  ;;  %878 = vmatprep.mubr.bf16.mxu1 %v2575_v2 }
  0x8f   : > { %2406 = vmatmul.mubr.msk.bf16.gmra.mrb[60].mxu0 %vm439_vm0, %v362_v9  ;;  %2422 = vmatmul.mubr.msk.bf16.gmra.mrb[60].mxu1 %vm439_vm0, %v378_v10 }
  0xea   : > { %v570_v21 = vpop.f32.mrb[0].mxu0  ;;  %v730_v22 = vpop.f32.mrb[0].mxu1 }
  0xeb   : > { %v571_v24 = vadd.f32 %v570_v21, %v2903_v19  ;;  %v572_v25 = vpop.f32.mrb[1].mxu0  ;;  %v731_v26 = vadd.f32 %v730_v22, %v2903_v19  ;;  %v732_v27 = vpop.f32.mrb[1].mxu1 }
  0xec   : > { %v573_v28 = vadd.f32 %v572_v25, %v2907_v20  ;;  %v574_v29 = vpop.f32.mrb[2].mxu0  ;;  %v733_v30 = vadd.f32 %v732_v27, %v2907_v20  ;;  %v734_v31 = vpop.f32.mrb[2].mxu1 }
  0xed   : > { %v575_v32 = vadd.f32 %v574_v29, %v2903_v19  ;;  %v576_v33 = vpop.f32.mrb[3].mxu0  ;;  %v953_v34 = vmax.f32 %v731_v26, 0.0  ;;  %v735_v35 = vadd.f32 %v734_v31, %v2903_v19  ;;  %v736_v36 = vpop.f32.mrb[3].mxu1  ;;  %v889_v41 = vmax.f32 %v571_v24, 0.0 }
  0xee   : > { %v577_v37 = vadd.f32 %v576_v33, %v2907_v20  ;;  %v954_v38 = vmax.f32 %v733_v30, 0.0  ;;  %v737_v39 = vadd.f32 %v736_v36, %v2907_v20  ;;  %v890_v44 = vmax.f32 %v573_v28, 0.0 }
  0xef   : > { %v891_v42 = vmax.f32 %v575_v32, 0.0  ;;  %v955_v43 = vmax.f32 %v735_v35, 0.0 }
  0xf0   : > { %v892_v45 = vmax.f32 %v577_v37, 0.0  ;;  %v956_v46 = vmax.f32 %v737_v39, 0.0 }
  0xf1   : > { %v1017_v47 = vpack.c.bf16 %v891_v42, %v889_v41  ;;  %v2925_v48 = vpack.c.bf16 %v955_v43, %v953_v34 }
  0xf2   : > { %v1018_v49 = vpack.c.bf16 %v892_v45, %v890_v44  ;;  %v580_v50 = vpop.f32.mrb[4].mxu0  ;;  %v2928_v51 = vpack.c.bf16 %v956_v46, %v954_v38  ;;  %v740_v52 = vpop.f32.mrb[4].mxu1 }
  0xf3   : > { %v581_v53 = vadd.f32 %v580_v50, %v2903_v19  ;;  %v582_v54 = vpop.f32.mrb[5].mxu0  ;;  %v741_v55 = vadd.f32 %v740_v52, %v2903_v19  ;;  %v742_v56 = vpop.f32.mrb[5].mxu1 }
  0xf4   : > { %v583_v57 = vadd.f32 %v582_v54, %v2907_v20  ;;  %v584_v58 = vpop.f32.mrb[6].mxu0  ;;  %1317 = vmatprep.mubr.bf16.mxu1 %v1018_v49  ;;  %v743_v59 = vadd.f32 %v742_v56, %v2907_v20  ;;  %v744_v60 = vpop.f32.mrb[6].mxu1 }
  0xf5   : > { %v585_v61 = vadd.f32 %v584_v58, %v2903_v19  ;;  %v586_v62 = vpop.f32.mrb[7].mxu0  ;;  %1318 = vmatmul.mubr.bf16.vlgmr.msra.gmra.mrb[64].mxu1 %v1017_v47  ;;  %v957_v63 = vmax.f32 %v741_v55, 0.0  ;;  %v745_v0 = vadd.f32 %v744_v60, %v2903_v19  ;;  %v746_v1 = vpop.f32.mrb[7].mxu1  ;;  %v893_v7 = vmax.f32 %v581_v53, 0.0 }
  0xf6   : > { %v587_v3 = vadd.f32 %v586_v62, %v2907_v20  ;;  %v958_v4 = vmax.f32 %v743_v59, 0.0  ;;  %v747_v5 = vadd.f32 %v746_v1, %v2907_v20  ;;  %v894_v10 = vmax.f32 %v583_v57, 0.0 }
  0xf7   : > { %v895_v8 = vmax.f32 %v585_v61, 0.0  ;;  %v959_v9 = vmax.f32 %v745_v0, 0.0 }
  0xf8   : > { %v896_v11 = vmax.f32 %v587_v3, 0.0  ;;  %v960_v12 = vmax.f32 %v747_v5, 0.0 }
  0xf9   : > { %v1019_v13 = vpack.c.bf16 %v895_v8, %v893_v7  ;;  %v2941_v16 = vpack.c.bf16 %v959_v9, %v957_v63  ;;  %v2558_v8 = vld [vmem:[%s3472_s5 + $0x38] sm:$0xff]  }
  0xfa   : > { %v1020_v18 = vpack.c.bf16 %v896_v11, %v894_v10  ;;  %v590_v21 = vpop.f32.mrb[8].mxu0  ;;  %v2944_v22 = vpack.c.bf16 %v960_v12, %v958_v4  ;;  %v750_v23 = vpop.f32.mrb[8].mxu1  ;;  %1980 = vmatpush1.bf16.msra.mxu0 %v2558_v8 }
  0xfb   : > { %v591_v24 = vadd.f32 %v590_v21, %v2903_v19  ;;  %v592_v25 = vpop.f32.mrb[9].mxu0  ;;  %v751_v26 = vadd.f32 %v750_v23, %v2903_v19  ;;  %v752_v27 = vpop.f32.mrb[9].mxu1  ;;  %1981 = vmatprep.subr.bf16.mxu0 %v2575_v2 }
  0xfc   : > { %v593_v28 = vadd.f32 %v592_v25, %v2907_v20  ;;  %v594_v29 = vpop.f32.mrb[10].mxu0  ;;  %1327 = vmatprep.mubr.bf16.mxu1 %v1020_v18  ;;  %v753_v30 = vadd.f32 %v752_v27, %v2907_v20  ;;  %v754_v31 = vpop.f32.mrb[10].mxu1 }
  0xfd   : > { %v595_v32 = vadd.f32 %v594_v29, %v2903_v19  ;;  %v596_v33 = vpop.f32.mrb[11].mxu0  ;;  %1328 = vmatmul.mubr.bf16.gmra.mrb[68].mxu1 %v1019_v13  ;;  %v961_v34 = vmax.f32 %v751_v26, 0.0  ;;  %v755_v35 = vadd.f32 %v754_v31, %v2903_v19  ;;  %v756_v36 = vpop.f32.mrb[11].mxu1  ;;  %v897_v41 = vmax.f32 %v591_v24, 0.0 }
  0xfe   : > { %v597_v37 = vadd.f32 %v596_v33, %v2907_v20  ;;  %v962_v38 = vmax.f32 %v753_v30, 0.0  ;;  %v757_v39 = vadd.f32 %v756_v36, %v2907_v20  ;;  %v898_v44 = vmax.f32 %v593_v28, 0.0 }
  0xff   : > { %v899_v42 = vmax.f32 %v595_v32, 0.0  ;;  %v963_v43 = vmax.f32 %v755_v35, 0.0 }
 0x100   : > { %v900_v45 = vmax.f32 %v597_v37, 0.0  ;;  %v964_v46 = vmax.f32 %v757_v39, 0.0 }
 0x101   : > { %v1021_v47 = vpack.c.bf16 %v899_v42, %v897_v41  ;;  %v2957_v49 = vpack.c.bf16 %v963_v43, %v961_v34 }
 0x102   : > { %v1022_v50 = vpack.c.bf16 %v900_v45, %v898_v44  ;;  %v600_v52 = vpop.f32.mrb[12].mxu0  ;;  %v2960_v53 = vpack.c.bf16 %v964_v46, %v962_v38  ;;  %v760_v54 = vpop.f32.mrb[12].mxu1  ;;  %v2559_v44 = vld [vmem:[%s3472_s5 + $0x40] sm:$0xff]  }
 0x103   : > { %v601_v55 = vadd.f32 %v600_v52, %v2903_v19  ;;  %v602_v56 = vpop.f32.mrb[13].mxu0  ;;  %v761_v57 = vadd.f32 %v760_v54, %v2903_v19  ;;  %v762_v58 = vpop.f32.mrb[13].mxu1  ;;  %1982 = vmatpush1.bf16.msra.mxu0 %v2559_v44 }
 0x104   : > { %v603_v59 = vadd.f32 %v602_v56, %v2907_v20  ;;  %v604_v60 = vpop.f32.mrb[14].mxu0  ;;  %1337 = vmatprep.mubr.bf16.mxu1 %v1022_v50  ;;  %v763_v61 = vadd.f32 %v762_v58, %v2907_v20  ;;  %v764_v62 = vpop.f32.mrb[14].mxu1  ;;  %1983 = vmatprep.subr.bf16.mxu0 %v2575_v2 }
 0x105   : > { %v605_v63 = vadd.f32 %v604_v60, %v2903_v19  ;;  %v606_v0 = vpop.f32.mrb[15].mxu0  ;;  %1338 = vmatmul.mubr.bf16.gmra.mrb[72].mxu1 %v1021_v47  ;;  %v965_v1 = vmax.f32 %v761_v57, 0.0  ;;  %v765_v3 = vadd.f32 %v764_v62, %v2903_v19  ;;  %v766_v4 = vpop.f32.mrb[15].mxu1  ;;  %v901_v9 = vmax.f32 %v601_v55, 0.0 }
 0x106   : > { %v607_v5 = vadd.f32 %v606_v0, %v2907_v20  ;;  %v966_v6 = vmax.f32 %v763_v61, 0.0  ;;  %v767_v7 = vadd.f32 %v766_v4, %v2907_v20  ;;  %v902_v12 = vmax.f32 %v603_v59, 0.0 }
 0x107   : > { %v903_v10 = vmax.f32 %v605_v63, 0.0  ;;  %v967_v11 = vmax.f32 %v765_v3, 0.0 }
 0x108   : > { %v904_v13 = vmax.f32 %v607_v5, 0.0  ;;  %v968_v18 = vmax.f32 %v767_v7, 0.0 }
 0x109   : > { %v1023_v21 = vpack.c.bf16 %v903_v10, %v901_v9  ;;  %v2973_v23 = vpack.c.bf16 %v967_v11, %v965_v1 }
 0x10a   : > { %v1024_v24 = vpack.c.bf16 %v904_v13, %v902_v12  ;;  %v610_v25 = vpop.f32.mrb[16].mxu0  ;;  %v2976_v26 = vpack.c.bf16 %v968_v18, %v966_v6  ;;  %v770_v27 = vpop.f32.mrb[16].mxu1  ;;  %v2560_v18 = vld [vmem:[%s3472_s5 + $0x48] sm:$0xff]  }
 0x10b   : > { %v611_v28 = vadd.f32 %v610_v25, %v2903_v19  ;;  %v612_v29 = vpop.f32.mrb[17].mxu0  ;;  %v771_v30 = vadd.f32 %v770_v27, %v2903_v19  ;;  %v772_v31 = vpop.f32.mrb[17].mxu1  ;;  %1984 = vmatpush1.bf16.msra.mxu0 %v2560_v18 }
 0x10c   : > { %v613_v32 = vadd.f32 %v612_v29, %v2907_v20  ;;  %v614_v33 = vpop.f32.mrb[18].mxu0  ;;  %1347 = vmatprep.mubr.bf16.mxu1 %v1024_v24  ;;  %v773_v34 = vadd.f32 %v772_v31, %v2907_v20  ;;  %v774_v35 = vpop.f32.mrb[18].mxu1  ;;  %1985 = vmatprep.subr.bf16.mxu0 %v2575_v2 }
 0x10d   : > { %v615_v36 = vadd.f32 %v614_v33, %v2903_v19  ;;  %v616_v37 = vpop.f32.mrb[19].mxu0  ;;  %1348 = vmatmul.mubr.bf16.gmra.mrb[76].mxu1 %v1023_v21  ;;  %v969_v38 = vmax.f32 %v771_v30, 0.0  ;;  %v775_v39 = vadd.f32 %v774_v35, %v2903_v19  ;;  %v776_v40 = vpop.f32.mrb[19].mxu1  ;;  %v905_v45 = vmax.f32 %v611_v28, 0.0 }
 0x10e   : > { %v617_v41 = vadd.f32 %v616_v37, %v2907_v20  ;;  %v970_v42 = vmax.f32 %v773_v34, 0.0  ;;  %v777_v43 = vadd.f32 %v776_v40, %v2907_v20  ;;  %v906_v50 = vmax.f32 %v613_v32, 0.0 }
 0x10f   : > { %v907_v46 = vmax.f32 %v615_v36, 0.0  ;;  %v971_v47 = vmax.f32 %v775_v39, 0.0 }
 0x110   : > { %v908_v52 = vmax.f32 %v617_v41, 0.0  ;;  %v972_v54 = vmax.f32 %v777_v43, 0.0 }
 0x111   : > { %v1025_v55 = vpack.c.bf16 %v907_v46, %v905_v45  ;;  %v2989_v56 = vpack.c.bf16 %v971_v47, %v969_v38 }
 0x112   : > { %v1026_v57 = vpack.c.bf16 %v908_v52, %v906_v50  ;;  %v620_v58 = vpop.f32.mrb[20].mxu0  ;;  %v2992_v59 = vpack.c.bf16 %v972_v54, %v970_v42  ;;  %v780_v60 = vpop.f32.mrb[20].mxu1 }
 0x113   : > { %v621_v61 = vadd.f32 %v620_v58, %v2903_v19  ;;  %v622_v62 = vpop.f32.mrb[21].mxu0  ;;  %v781_v63 = vadd.f32 %v780_v60, %v2903_v19  ;;  %v782_v0 = vpop.f32.mrb[21].mxu1 }
 0x114   : > { %v623_v1 = vadd.f32 %v622_v62, %v2907_v20  ;;  %v624_v3 = vpop.f32.mrb[22].mxu0  ;;  %1357 = vmatprep.mubr.bf16.mxu1 %v1026_v57  ;;  %v783_v4 = vadd.f32 %v782_v0, %v2907_v20  ;;  %v784_v5 = vpop.f32.mrb[22].mxu1  ;;  %v2561_v57 = vld [vmem:[%s3472_s5 + $0x50] sm:$0xff]  }
 0x115   : > { %v625_v6 = vadd.f32 %v624_v3, %v2903_v19  ;;  %v626_v7 = vpop.f32.mrb[23].mxu0  ;;  %1358 = vmatmul.mubr.bf16.gmra.mrb[80].mxu1 %v1025_v55  ;;  %v973_v8 = vmax.f32 %v781_v63, 0.0  ;;  %v785_v9 = vadd.f32 %v784_v5, %v2903_v19  ;;  %v786_v10 = vpop.f32.mrb[23].mxu1  ;;  %v909_v21 = vmax.f32 %v621_v61, 0.0  ;;  %1986 = vmatpush1.bf16.msra.mxu0 %v2561_v57 }
 0x116   : > { %v627_v11 = vadd.f32 %v626_v7, %v2907_v20  ;;  %v974_v12 = vmax.f32 %v783_v4, 0.0  ;;  %v787_v13 = vadd.f32 %v786_v10, %v2907_v20  ;;  %v910_v27 = vmax.f32 %v623_v1, 0.0  ;;  %1987 = vmatprep.subr.bf16.mxu0 %v2575_v2 }
 0x117   : > { %v911_v24 = vmax.f32 %v625_v6, 0.0  ;;  %v975_v25 = vmax.f32 %v785_v9, 0.0 }
 0x118   : > { %v912_v28 = vmax.f32 %v627_v11, 0.0  ;;  %v976_v29 = vmax.f32 %v787_v13, 0.0 }
 0x119   : > { %v1027_v30 = vpack.c.bf16 %v911_v24, %v909_v21  ;;  %v3005_v31 = vpack.c.bf16 %v975_v25, %v973_v8 }
 0x11a   : > { %v1028_v32 = vpack.c.bf16 %v912_v28, %v910_v27  ;;  %v630_v33 = vpop.f32.mrb[24].mxu0  ;;  %v3008_v34 = vpack.c.bf16 %v976_v29, %v974_v12  ;;  %v790_v35 = vpop.f32.mrb[24].mxu1 }
 0x11b   : > { %v631_v36 = vadd.f32 %v630_v33, %v2903_v19  ;;  %v632_v37 = vpop.f32.mrb[25].mxu0  ;;  %v791_v38 = vadd.f32 %v790_v35, %v2903_v19  ;;  %v792_v39 = vpop.f32.mrb[25].mxu1  ;;  %v2562_v35 = vld [vmem:[%s3472_s5 + $0x58] sm:$0xff]  }
 0x11c   : > { %v633_v40 = vadd.f32 %v632_v37, %v2907_v20  ;;  %v634_v41 = vpop.f32.mrb[26].mxu0  ;;  %1367 = vmatprep.mubr.bf16.mxu1 %v1028_v32  ;;  %v793_v42 = vadd.f32 %v792_v39, %v2907_v20  ;;  %v794_v43 = vpop.f32.mrb[26].mxu1  ;;  %1988 = vmatpush1.bf16.msra.mxu0 %v2562_v35 }
 0x11d   : > { %v635_v44 = vadd.f32 %v634_v41, %v2903_v19  ;;  %v636_v45 = vpop.f32.mrb[27].mxu0  ;;  %1368 = vmatmul.mubr.bf16.gmra.mrb[84].mxu1 %v1027_v30  ;;  %v977_v46 = vmax.f32 %v791_v38, 0.0  ;;  %v795_v47 = vadd.f32 %v794_v43, %v2903_v19  ;;  %v796_v50 = vpop.f32.mrb[27].mxu1  ;;  %v913_v58 = vmax.f32 %v631_v36, 0.0  ;;  %1989 = vmatprep.subr.bf16.mxu0 %v2575_v2 }
 0x11e   : > { %v637_v52 = vadd.f32 %v636_v45, %v2907_v20  ;;  %v978_v54 = vmax.f32 %v793_v42, 0.0  ;;  %v797_v55 = vadd.f32 %v796_v50, %v2907_v20  ;;  %v914_v62 = vmax.f32 %v633_v40, 0.0 }
 0x11f   : > { %v915_v60 = vmax.f32 %v635_v44, 0.0  ;;  %v979_v61 = vmax.f32 %v795_v47, 0.0 }
 0x120   : > { %v916_v63 = vmax.f32 %v637_v52, 0.0  ;;  %v980_v0 = vmax.f32 %v797_v55, 0.0 }
 0x121   : > { %v1029_v1 = vpack.c.bf16 %v915_v60, %v913_v58  ;;  %v3021_v3 = vpack.c.bf16 %v979_v61, %v977_v46 }
 0x122   : > { %v1030_v4 = vpack.c.bf16 %v916_v63, %v914_v62  ;;  %v640_v5 = vpop.f32.mrb[28].mxu0  ;;  %v3024_v6 = vpack.c.bf16 %v980_v0, %v978_v54  ;;  %v800_v7 = vpop.f32.mrb[28].mxu1 }
 0x123   : > { %v641_v8 = vadd.f32 %v640_v5, %v2903_v19  ;;  %v642_v9 = vpop.f32.mrb[29].mxu0  ;;  %v801_v10 = vadd.f32 %v800_v7, %v2903_v19  ;;  %v802_v11 = vpop.f32.mrb[29].mxu1 }
 0x124   : > { %v643_v12 = vadd.f32 %v642_v9, %v2907_v20  ;;  %v644_v13 = vpop.f32.mrb[30].mxu0  ;;  %1377 = vmatprep.mubr.bf16.mxu1 %v1030_v4  ;;  %v803_v18 = vadd.f32 %v802_v11, %v2907_v20  ;;  %v804_v21 = vpop.f32.mrb[30].mxu1  ;;  %v2563_v9 = vld [vmem:[%s3472_s5 + $0x60] sm:$0xff]  }
 0x125   : > { %v645_v24 = vadd.f32 %v644_v13, %v2903_v19  ;;  %v646_v25 = vpop.f32.mrb[31].mxu0  ;;  %1378 = vmatmul.mubr.bf16.gmra.mrb[88].mxu1 %v1029_v1  ;;  %v981_v27 = vmax.f32 %v801_v10, 0.0  ;;  %v805_v28 = vadd.f32 %v804_v21, %v2903_v19  ;;  %v806_v29 = vpop.f32.mrb[31].mxu1  ;;  %v917_v36 = vmax.f32 %v641_v8, 0.0  ;;  %1990 = vmatpush1.bf16.msra.mxu0 %v2563_v9 }
 0x126   : > { %v647_v30 = vadd.f32 %v646_v25, %v2907_v20  ;;  %v982_v32 = vmax.f32 %v803_v18, 0.0  ;;  %v807_v33 = vadd.f32 %v806_v29, %v2907_v20  ;;  %v918_v39 = vmax.f32 %v643_v12, 0.0  ;;  %1991 = vmatprep.subr.bf16.mxu0 %v2575_v2 }
 0x127   : > { %v919_v37 = vmax.f32 %v645_v24, 0.0  ;;  %v983_v38 = vmax.f32 %v805_v28, 0.0 }
 0x128   : > { %v920_v40 = vmax.f32 %v647_v30, 0.0  ;;  %v984_v41 = vmax.f32 %v807_v33, 0.0 }
 0x129   : > { %v1031_v42 = vpack.c.bf16 %v919_v37, %v917_v36  ;;  %v3037_v43 = vpack.c.bf16 %v983_v38, %v981_v27 }
 0x12a   : > { %v1032_v44 = vpack.c.bf16 %v920_v40, %v918_v39  ;;  %v650_v45 = vpop.f32.mrb[32].mxu0  ;;  %v3040_v46 = vpack.c.bf16 %v984_v41, %v982_v32  ;;  %v810_v47 = vpop.f32.mrb[32].mxu1 }
 0x12b   : > { %v651_v50 = vadd.f32 %v650_v45, %v2903_v19  ;;  %v652_v52 = vpop.f32.mrb[33].mxu0  ;;  %v811_v54 = vadd.f32 %v810_v47, %v2903_v19  ;;  %v812_v55 = vpop.f32.mrb[33].mxu1 }
 0x12c   : > { %v653_v57 = vadd.f32 %v652_v52, %v2907_v20  ;;  %v654_v58 = vpop.f32.mrb[34].mxu0  ;;  %1387 = vmatprep.mubr.bf16.mxu1 %v1032_v44  ;;  %v813_v60 = vadd.f32 %v812_v55, %v2907_v20  ;;  %v814_v61 = vpop.f32.mrb[34].mxu1  ;;  %v2564_v55 = vld [vmem:[%s3472_s5 + $0x68] sm:$0xff]  }
 0x12d   : > { %v655_v62 = vadd.f32 %v654_v58, %v2903_v19  ;;  %v656_v63 = vpop.f32.mrb[35].mxu0  ;;  %1388 = vmatmul.mubr.bf16.gmra.mrb[92].mxu1 %v1031_v42  ;;  %v985_v0 = vmax.f32 %v811_v54, 0.0  ;;  %v815_v1 = vadd.f32 %v814_v61, %v2903_v19  ;;  %v816_v4 = vpop.f32.mrb[35].mxu1  ;;  %v921_v10 = vmax.f32 %v651_v50, 0.0  ;;  %1992 = vmatpush1.bf16.msra.mxu0 %v2564_v55 }
 0x12e   : > { %v657_v5 = vadd.f32 %v656_v63, %v2907_v20  ;;  %v986_v7 = vmax.f32 %v813_v60, 0.0  ;;  %v817_v8 = vadd.f32 %v816_v4, %v2907_v20  ;;  %v922_v13 = vmax.f32 %v653_v57, 0.0  ;;  %1993 = vmatprep.subr.bf16.mxu0 %v2575_v2 }
 0x12f   : > { %v923_v11 = vmax.f32 %v655_v62, 0.0  ;;  %v987_v12 = vmax.f32 %v815_v1, 0.0 }
 0x130   : > { %v924_v18 = vmax.f32 %v657_v5, 0.0  ;;  %v988_v21 = vmax.f32 %v817_v8, 0.0 }
 0x131   : > { %v1033_v24 = vpack.c.bf16 %v923_v11, %v921_v10  ;;  %v3053_v25 = vpack.c.bf16 %v987_v12, %v985_v0 }
 0x132   : > { %v1034_v27 = vpack.c.bf16 %v924_v18, %v922_v13  ;;  %v660_v28 = vpop.f32.mrb[36].mxu0  ;;  %v3056_v29 = vpack.c.bf16 %v988_v21, %v986_v7  ;;  %v820_v30 = vpop.f32.mrb[36].mxu1 }
 0x133   : > { %v661_v32 = vadd.f32 %v660_v28, %v2903_v19  ;;  %v662_v33 = vpop.f32.mrb[37].mxu0  ;;  %v821_v35 = vadd.f32 %v820_v30, %v2903_v19  ;;  %v822_v36 = vpop.f32.mrb[37].mxu1 }
 0x134   : > { %v663_v37 = vadd.f32 %v662_v33, %v2907_v20  ;;  %v664_v38 = vpop.f32.mrb[38].mxu0  ;;  %1397 = vmatprep.mubr.bf16.mxu1 %v1034_v27  ;;  %v823_v39 = vadd.f32 %v822_v36, %v2907_v20  ;;  %v824_v40 = vpop.f32.mrb[38].mxu1 }
 0x135   : > { %v665_v41 = vadd.f32 %v664_v38, %v2903_v19  ;;  %v666_v42 = vpop.f32.mrb[39].mxu0  ;;  %1398 = vmatmul.mubr.bf16.gmra.mrb[96].mxu1 %v1033_v24  ;;  %v989_v44 = vmax.f32 %v821_v35, 0.0  ;;  %v825_v45 = vadd.f32 %v824_v40, %v2903_v19  ;;  %v826_v47 = vpop.f32.mrb[39].mxu1  ;;  %v925_v57 = vmax.f32 %v661_v32, 0.0  ;;  %v2565_v38 = vld [vmem:[%s3472_s5 + $0x70] sm:$0xff]  }
 0x136   : > { %v667_v50 = vadd.f32 %v666_v42, %v2907_v20  ;;  %v990_v52 = vmax.f32 %v823_v39, 0.0  ;;  %v827_v54 = vadd.f32 %v826_v47, %v2907_v20  ;;  %v926_v61 = vmax.f32 %v663_v37, 0.0  ;;  %1994 = vmatpush1.bf16.msra.mxu0 %v2565_v38 }
 0x137   : > { %v927_v58 = vmax.f32 %v665_v41, 0.0  ;;  %v991_v60 = vmax.f32 %v825_v45, 0.0  ;;  %1995 = vmatprep.subr.bf16.mxu0 %v2575_v2 }
 0x138   : > { %v928_v62 = vmax.f32 %v667_v50, 0.0  ;;  %v992_v63 = vmax.f32 %v827_v54, 0.0 }
 0x139   : > { %v1035_v0 = vpack.c.bf16 %v927_v58, %v925_v57  ;;  %v3069_v1 = vpack.c.bf16 %v991_v60, %v989_v44 }
 0x13a   : > { %v1036_v4 = vpack.c.bf16 %v928_v62, %v926_v61  ;;  %v670_v5 = vpop.f32.mrb[40].mxu0  ;;  %v3072_v7 = vpack.c.bf16 %v992_v63, %v990_v52  ;;  %v830_v8 = vpop.f32.mrb[40].mxu1 }
 0x13b   : > { %v671_v9 = vadd.f32 %v670_v5, %v2903_v19  ;;  %v672_v10 = vpop.f32.mrb[41].mxu0  ;;  %v831_v11 = vadd.f32 %v830_v8, %v2903_v19  ;;  %v832_v12 = vpop.f32.mrb[41].mxu1 }
 0x13c   : > { %v673_v13 = vadd.f32 %v672_v10, %v2907_v20  ;;  %v674_v18 = vpop.f32.mrb[42].mxu0  ;;  %1407 = vmatprep.mubr.bf16.mxu1 %v1036_v4  ;;  %v833_v21 = vadd.f32 %v832_v12, %v2907_v20  ;;  %v834_v24 = vpop.f32.mrb[42].mxu1 }
 0x13d   : > { %v675_v27 = vadd.f32 %v674_v18, %v2903_v19  ;;  %v676_v28 = vpop.f32.mrb[43].mxu0  ;;  %1408 = vmatmul.mubr.bf16.gmra.mrb[100].mxu1 %v1035_v0  ;;  %v993_v30 = vmax.f32 %v831_v11, 0.0  ;;  %v835_v32 = vadd.f32 %v834_v24, %v2903_v19  ;;  %v836_v33 = vpop.f32.mrb[43].mxu1  ;;  %v929_v39 = vmax.f32 %v671_v9, 0.0 }
 0x13e   : > { %v677_v35 = vadd.f32 %v676_v28, %v2907_v20  ;;  %v994_v36 = vmax.f32 %v833_v21, 0.0  ;;  %v837_v37 = vadd.f32 %v836_v33, %v2907_v20  ;;  %v930_v42 = vmax.f32 %v673_v13, 0.0 }
 0x13f   : > { %v931_v40 = vmax.f32 %v675_v27, 0.0  ;;  %v995_v41 = vmax.f32 %v835_v32, 0.0 }
 0x140   : > { %v932_v44 = vmax.f32 %v677_v35, 0.0  ;;  %v996_v45 = vmax.f32 %v837_v37, 0.0 }
 0x141   : > { %v1037_v47 = vpack.c.bf16 %v931_v40, %v929_v39  ;;  %v3085_v50 = vpack.c.bf16 %v995_v41, %v993_v30 }
 0x142   : > { %v1038_v52 = vpack.c.bf16 %v932_v44, %v930_v42  ;;  %v680_v54 = vpop.f32.mrb[44].mxu0  ;;  %v3088_v55 = vpack.c.bf16 %v996_v45, %v994_v36  ;;  %v840_v57 = vpop.f32.mrb[44].mxu1 }
 0x143   : > { %v681_v58 = vadd.f32 %v680_v54, %v2903_v19  ;;  %v682_v60 = vpop.f32.mrb[45].mxu0  ;;  %v841_v61 = vadd.f32 %v840_v57, %v2903_v19  ;;  %v842_v62 = vpop.f32.mrb[45].mxu1 }
 0x144   : > { %v683_v63 = vadd.f32 %v682_v60, %v2907_v20  ;;  %v684_v0 = vpop.f32.mrb[46].mxu0  ;;  %1417 = vmatprep.mubr.bf16.mxu1 %v1038_v52  ;;  %v843_v4 = vadd.f32 %v842_v62, %v2907_v20  ;;  %v844_v5 = vpop.f32.mrb[46].mxu1 }
 0x145   : > { %v685_v2 = vadd.f32 %v684_v0, %v2903_v19  ;;  %v686_v8 = vpop.f32.mrb[47].mxu0  ;;  %1418 = vmatmul.mubr.bf16.gmra.mrb[104].mxu1 %v1037_v47  ;;  %v997_v9 = vmax.f32 %v841_v61, 0.0  ;;  %v845_v10 = vadd.f32 %v844_v5, %v2903_v19  ;;  %v846_v11 = vpop.f32.mrb[47].mxu1  ;;  %v933_v21 = vmax.f32 %v681_v58, 0.0  ;;  %v2566_v5 = vld [vmem:[%s3472_s5 + $0x78] sm:$0xff]  }
 0x146   : > { %v687_v12 = vadd.f32 %v686_v8, %v2907_v20  ;;  %v998_v13 = vmax.f32 %v843_v4, 0.0  ;;  %v847_v18 = vadd.f32 %v846_v11, %v2907_v20  ;;  %v934_v28 = vmax.f32 %v683_v63, 0.0  ;;  %1996 = vmatpush1.bf16.msra.mxu0 %v2566_v5 }
 0x147   : > { %v935_v24 = vmax.f32 %v685_v2, 0.0  ;;  %v999_v27 = vmax.f32 %v845_v10, 0.0 }
 0x148   : > { %v936_v30 = vmax.f32 %v687_v12, 0.0  ;;  %v1000_v32 = vmax.f32 %v847_v18, 0.0 }
 0x149   : > { %v1039_v33 = vpack.c.bf16 %v935_v24, %v933_v21  ;;  %v3098_v35 = vpack.c.bf16 %v999_v27, %v997_v9 }
 0x14a   : > { %v1040_v36 = vpack.c.bf16 %v936_v30, %v934_v28  ;;  %v690_v37 = vpop.f32.mrb[48].mxu0  ;;  %v3100_v38 = vpack.c.bf16 %v1000_v32, %v998_v13  ;;  %v850_v39 = vpop.f32.mrb[48].mxu1 }
 0x14b   : > { %v691_v40 = vadd.f32 %v690_v37, %v2903_v19  ;;  %v692_v41 = vpop.f32.mrb[49].mxu0  ;;  %v851_v42 = vadd.f32 %v850_v39, %v2903_v19  ;;  %v852_v44 = vpop.f32.mrb[49].mxu1 }
 0x14c   : > { %v693_v45 = vadd.f32 %v692_v41, %v2907_v20  ;;  %v694_v47 = vpop.f32.mrb[50].mxu0  ;;  %1427 = vmatprep.mubr.bf16.mxu1 %v1040_v36  ;;  %v853_v52 = vadd.f32 %v852_v44, %v2907_v20  ;;  %v854_v54 = vpop.f32.mrb[50].mxu1 }
 0x14d   : > { %v695_v57 = vadd.f32 %v694_v47, %v2903_v19  ;;  %v696_v58 = vpop.f32.mrb[51].mxu0  ;;  %1428 = vmatmul.mubr.bf16.gmra.mrb[108].mxu1 %v1039_v33  ;;  %v1001_v60 = vmax.f32 %v851_v42, 0.0  ;;  %v855_v61 = vadd.f32 %v854_v54, %v2903_v19  ;;  %v856_v62 = vpop.f32.mrb[51].mxu1  ;;  %v937_v2 = vmax.f32 %v691_v40, 0.0 }
 0x14e   : > { %v697_v63 = vadd.f32 %v696_v58, %v2907_v20  ;;  %v1002_v0 = vmax.f32 %v853_v52, 0.0  ;;  %v857_v4 = vadd.f32 %v856_v62, %v2907_v20  ;;  %v938_v10 = vmax.f32 %v693_v45, 0.0 }
 0x14f   : > { %v939_v8 = vmax.f32 %v695_v57, 0.0  ;;  %v1003_v9 = vmax.f32 %v855_v61, 0.0 }
 0x150   : > { %v940_v11 = vmax.f32 %v697_v63, 0.0  ;;  %v1004_v12 = vmax.f32 %v857_v4, 0.0 }
 0x151   : > { %v1041_v13 = vpack.c.bf16 %v939_v8, %v937_v2  ;;  %v3113_v18 = vpack.c.bf16 %v1003_v9, %v1001_v60 }
 0x152   : > { %v1042_v21 = vpack.c.bf16 %v940_v11, %v938_v10  ;;  %v700_v24 = vpop.f32.mrb[52].mxu0  ;;  %v3115_v27 = vpack.c.bf16 %v1004_v12, %v1002_v0  ;;  %v860_v28 = vpop.f32.mrb[52].mxu1 }
 0x153   : > { %v701_v30 = vadd.f32 %v700_v24, %v2903_v19  ;;  %v702_v32 = vpop.f32.mrb[53].mxu0  ;;  %v861_v33 = vadd.f32 %v860_v28, %v2903_v19  ;;  %v862_v36 = vpop.f32.mrb[53].mxu1 }
 0x154   : > { %v703_v37 = vadd.f32 %v702_v32, %v2907_v20  ;;  %v704_v39 = vpop.f32.mrb[54].mxu0  ;;  %1437 = vmatprep.mubr.bf16.mxu1 %v1042_v21  ;;  %v863_v40 = vadd.f32 %v862_v36, %v2907_v20  ;;  %v864_v41 = vpop.f32.mrb[54].mxu1 }
 0x155   : > { %v705_v42 = vadd.f32 %v704_v39, %v2903_v19  ;;  %v706_v44 = vpop.f32.mrb[55].mxu0  ;;  %1438 = vmatmul.mubr.bf16.gmra.mrb[112].mxu1 %v1041_v13  ;;  %v1005_v45 = vmax.f32 %v861_v33, 0.0  ;;  %v865_v47 = vadd.f32 %v864_v41, %v2903_v19  ;;  %v866_v52 = vpop.f32.mrb[55].mxu1  ;;  %v941_v60 = vmax.f32 %v701_v30, 0.0 }
 0x156   : > { %v707_v54 = vadd.f32 %v706_v44, %v2907_v20  ;;  %v1006_v57 = vmax.f32 %v863_v40, 0.0  ;;  %v867_v58 = vadd.f32 %v866_v52, %v2907_v20  ;;  %v942_v63 = vmax.f32 %v703_v37, 0.0 }
 0x157   : > { %v943_v61 = vmax.f32 %v705_v42, 0.0  ;;  %v1007_v62 = vmax.f32 %v865_v47, 0.0 }
 0x158   : > { %v944_v0 = vmax.f32 %v707_v54, 0.0  ;;  %v1008_v4 = vmax.f32 %v867_v58, 0.0 }
 0x159   : > { %v1043_v5 = vpack.c.bf16 %v943_v61, %v941_v60  ;;  %v3125_v2 = vpack.c.bf16 %v1007_v62, %v1005_v45 }
 0x15a   : > { %v1044_v8 = vpack.c.bf16 %v944_v0, %v942_v63  ;;  %v710_v9 = vpop.f32.mrb[56].mxu0  ;;  %v3127_v10 = vpack.c.bf16 %v1008_v4, %v1006_v57  ;;  %v870_v11 = vpop.f32.mrb[56].mxu1 }
 0x15b   : > { %v711_v12 = vadd.f32 %v710_v9, %v2903_v19  ;;  %v712_v13 = vpop.f32.mrb[57].mxu0  ;;  %v871_v21 = vadd.f32 %v870_v11, %v2903_v19  ;;  %v872_v24 = vpop.f32.mrb[57].mxu1 }
 0x15c   : > { %v713_v28 = vadd.f32 %v712_v13, %v2907_v20  ;;  %v714_v30 = vpop.f32.mrb[58].mxu0  ;;  %1447 = vmatprep.mubr.bf16.mxu1 %v1044_v8  ;;  %v873_v32 = vadd.f32 %v872_v24, %v2907_v20  ;;  %v874_v33 = vpop.f32.mrb[58].mxu1 }
 0x15d   : > { %v715_v36 = vadd.f32 %v714_v30, %v2903_v19  ;;  %v716_v37 = vpop.f32.mrb[59].mxu0  ;;  %1448 = vmatmul.mubr.bf16.gmra.mrb[116].mxu1 %v1043_v5  ;;  %v1009_v39 = vmax.f32 %v871_v21, 0.0  ;;  %v875_v40 = vadd.f32 %v874_v33, %v2903_v19  ;;  %v876_v41 = vpop.f32.mrb[59].mxu1  ;;  %v945_v47 = vmax.f32 %v711_v12, 0.0 }
 0x15e   : > { %v717_v42 = vadd.f32 %v716_v37, %v2907_v20  ;;  %v1010_v44 = vmax.f32 %v873_v32, 0.0  ;;  %v877_v45 = vadd.f32 %v876_v41, %v2907_v20  ;;  %v946_v57 = vmax.f32 %v713_v28, 0.0 }
 0x15f   : > { %v947_v52 = vmax.f32 %v715_v36, 0.0  ;;  %v1011_v54 = vmax.f32 %v875_v40, 0.0 }
 0x160   : > { %v948_v58 = vmax.f32 %v717_v42, 0.0  ;;  %v1012_v60 = vmax.f32 %v877_v45, 0.0 }
 0x161   : > { %v1045_v61 = vpack.c.bf16 %v947_v52, %v945_v47  ;;  %v3137_v62 = vpack.c.bf16 %v1011_v54, %v1009_v39 }
 0x162   : > { %v1046_v63 = vpack.c.bf16 %v948_v58, %v946_v57  ;;  %v720_v0 = vpop.f32.mrb[60].mxu0  ;;  %v3139_v4 = vpack.c.bf16 %v1012_v60, %v1010_v44  ;;  %v880_v5 = vpop.f32.mrb[60].mxu1 }
 0x163   : > { %v721_v8 = vadd.f32 %v720_v0, %v2903_v19  ;;  %v722_v9 = vpop.f32.mrb[61].mxu0  ;;  %v881_v11 = vadd.f32 %v880_v5, %v2903_v19  ;;  %v882_v13 = vpop.f32.mrb[61].mxu1 }
 0x164   : > { %v723_v12 = vadd.f32 %v722_v9, %v2907_v20  ;;  %v724_v21 = vpop.f32.mrb[62].mxu0  ;;  %1457 = vmatprep.mubr.bf16.mxu1 %v1046_v63  ;;  %v883_v24 = vadd.f32 %v882_v13, %v2907_v20  ;;  %v884_v28 = vpop.f32.mrb[62].mxu1 }
 0x165   : > { %v725_v30 = vadd.f32 %v724_v21, %v2903_v19  ;;  %v726_v32 = vpop.f32.mrb[63].mxu0  ;;  %1458 = vmatmul.mubr.bf16.gmra.mrb[120].mxu1 %v1045_v61  ;;  %v1013_v33 = vmax.f32 %v881_v11, 0.0  ;;  %v885_v36 = vadd.f32 %v884_v28, %v2903_v19  ;;  %v886_v37 = vpop.f32.mrb[63].mxu1  ;;  %v949_v42 = vmax.f32 %v721_v8, 0.0  ;;  %v1113_v19 = vld [vmem:[%s3471_s4] sm:$0x3] }
 0x166   : > { %v727_v39 = vadd.f32 %v726_v32, %v2907_v20  ;;  %v1014_v40 = vmax.f32 %v883_v24, 0.0  ;;  %v887_v41 = vadd.f32 %v886_v37, %v2907_v20  ;;  %v950_v47 = vmax.f32 %v723_v12, 0.0 }
 0x167   : > { %v951_v44 = vmax.f32 %v725_v30, 0.0  ;;  %v1015_v45 = vmax.f32 %v885_v36, 0.0  ;;  %v3180_v20 = vrot.slane %v1113_v19, %v391_v15 }
 0x168   : > { %v952_v52 = vmax.f32 %v727_v39, 0.0  ;;  %v1016_v54 = vmax.f32 %v887_v41, 0.0 }
 0x169   : > { %v1047_v57 = vpack.c.bf16 %v951_v44, %v949_v42  ;;  %v3149_v58 = vpack.c.bf16 %v1015_v45, %v1013_v33 }
 0x16a   : > { %v1048_v60 = vpack.c.bf16 %v952_v52, %v950_v47  ;;  %v3151_v61 = vpack.c.bf16 %v1016_v54, %v1014_v40 }
 0x16c   : > { %1467 = vmatprep.mubr.bf16.mxu1 %v1048_v60 }
 0x16d   : > { %1468 = vmatmul.mubr.bf16.gmra.mrb[124].mxu1 %v1047_v57 }
 0x16e   : > { %1477 = vmatprep.mubr.bf16.mxu1 %v2928_v51 }
 0x175   : > { %1478 = vmatmul.mubr.bf16.gmra.mrb[128].mxu1 %v2925_v48  ;;  %v3185_v48 = vrot.slane %v1113_v19, %v395_v17 }
 0x176   : > { %1487 = vmatprep.mubr.bf16.mxu1 %v2944_v22 }
 0x17d   : > { %1488 = vmatmul.mubr.bf16.gmra.mrb[132].mxu1 %v2941_v16 }
 0x17e   : > { %1497 = vmatprep.mubr.bf16.mxu1 %v2960_v53 }
 0x185   : > { %1498 = vmatmul.mubr.bf16.gmra.mrb[136].mxu1 %v2957_v49 }
 0x186   : > { %1507 = vmatprep.mubr.bf16.mxu1 %v2976_v26 }
 0x18d   : > { %1508 = vmatmul.mubr.bf16.gmra.mrb[140].mxu1 %v2973_v23 }
 0x18e   : > { %1517 = vmatprep.mubr.bf16.mxu1 %v2992_v59 }
 0x195   : > { %1518 = vmatmul.mubr.bf16.gmra.mrb[144].mxu1 %v2989_v56 }
 0x196   : > { %1527 = vmatprep.mubr.bf16.mxu1 %v3008_v34 }
 0x19d   : > { %1528 = vmatmul.mubr.bf16.gmra.mrb[148].mxu1 %v3005_v31 }
 0x19e   : > { %1537 = vmatprep.mubr.bf16.mxu1 %v3024_v6 }
 0x1a5   : > { %1538 = vmatmul.mubr.bf16.gmra.mrb[152].mxu1 %v3021_v3 }
 0x1a6   : > { %1547 = vmatprep.mubr.bf16.mxu1 %v3040_v46 }
 0x1ad   : > { %1548 = vmatmul.mubr.bf16.gmra.mrb[156].mxu1 %v3037_v43 }
 0x1ae   : > { %1557 = vmatprep.mubr.bf16.mxu1 %v3056_v29 }
 0x1b5   : > { %1558 = vmatmul.mubr.bf16.gmra.mrb[160].mxu1 %v3053_v25 }
 0x1b6   : > { %1567 = vmatprep.mubr.bf16.mxu1 %v3072_v7 }
 0x1bd   : > { %1568 = vmatmul.mubr.bf16.gmra.mrb[164].mxu1 %v3069_v1 }
 0x1be   : > { %1577 = vmatprep.mubr.bf16.mxu1 %v3088_v55 }
 0x1c5   : > { %1578 = vmatmul.mubr.bf16.gmra.mrb[168].mxu1 %v3085_v50 }
 0x1c6   : > { %1587 = vmatprep.mubr.bf16.mxu1 %v3100_v38 }
 0x1c8   : > { %v1319_v51 = vpop.f32.mrb[64].mxu1 }
 0x1c9   : > { %v1320_v16 = vadd.f32 %v1319_v51, %v3180_v20  ;;  %v1321_v22 = vpop.f32.mrb[65].mxu1 }
 0x1ca   : > { %v1322_v49 = vadd.f32 %v1321_v22, %v3185_v48  ;;  %v1323_v53 = vpop.f32.mrb[66].mxu1 }
 0x1cb   : > { %v1324_v23 = vadd.f32 %v1323_v53, %v3180_v20  ;;  %v1325_v26 = vpop.f32.mrb[67].mxu1  ;;  %v1638_v15 = vmax.f32 %v1320_v16, 0.0 }
 0x1cc   : > { %v1326_v56 = vadd.f32 %v1325_v26, %v3185_v48  ;;  %v1639_v31 = vmax.f32 %v1322_v49, 0.0 }
 0x1cd   : > { %v1640_v59 = vmax.f32 %v1324_v23, 0.0  ;;  %1588 = vmatmul.mubr.bf16.gmra.mrb[172].mxu1 %v3098_v35 }
 0x1ce   : > { %v1641_v14 = vmax.f32 %v1326_v56, 0.0  ;;  %1597 = vmatprep.mubr.bf16.mxu1 %v3115_v27 }
 0x1cf   : > { %v1766_v17 = vpack.c.bf16 %v1640_v59, %v1638_v15 }
 0x1d0   : > { %v1767_v34 = vpack.c.bf16 %v1641_v14, %v1639_v31  ;;  %v1329_v3 = vpop.f32.mrb[68].mxu1 }
 0x1d1   : > { %v1330_v6 = vadd.f32 %v1329_v3, %v3180_v20  ;;  %v1331_v43 = vpop.f32.mrb[69].mxu1 }
 0x1d2   : > { %v1332_v46 = vadd.f32 %v1331_v43, %v3185_v48  ;;  %v1333_v25 = vpop.f32.mrb[70].mxu1  ;;  %1997 = vmatprep.mubr.bf16.mxu0 %v1767_v34 }
 0x1d3   : > { %v1334_v29 = vadd.f32 %v1333_v25, %v3180_v20  ;;  %v1335_v1 = vpop.f32.mrb[71].mxu1  ;;  %1998 = vmatmul.mubr.bf16.vlgmr.msra.gmra.mrb[64].mxu0 %v1766_v17  ;;  %v1642_v50 = vmax.f32 %v1330_v6, 0.0 }
 0x1d4   : > { %v1336_v7 = vadd.f32 %v1335_v1, %v3185_v48  ;;  %v1643_v35 = vmax.f32 %v1332_v46, 0.0 }
 0x1d5   : > { %v1644_v55 = vmax.f32 %v1334_v29, 0.0  ;;  %1598 = vmatmul.mubr.bf16.gmra.mrb[176].mxu1 %v3113_v18 }
 0x1d6   : > { %v1645_v38 = vmax.f32 %v1336_v7, 0.0  ;;  %1607 = vmatprep.mubr.bf16.mxu1 %v3127_v10 }
 0x1d7   : > { %v1768_v27 = vpack.c.bf16 %v1644_v55, %v1642_v50 }
 0x1d8   : > { %v1769_v63 = vpack.c.bf16 %v1645_v38, %v1643_v35  ;;  %v1339_v0 = vpop.f32.mrb[72].mxu1 }
 0x1d9   : > { %v1340_v5 = vadd.f32 %v1339_v0, %v3180_v20  ;;  %v1341_v8 = vpop.f32.mrb[73].mxu1 }
 0x1da   : > { %v1342_v9 = vadd.f32 %v1341_v8, %v3185_v48  ;;  %v1343_v11 = vpop.f32.mrb[74].mxu1  ;;  %2005 = vmatprep.mubr.bf16.mxu0 %v1769_v63 }
 0x1db   : > { %v1344_v13 = vadd.f32 %v1343_v11, %v3180_v20  ;;  %v1345_v12 = vpop.f32.mrb[75].mxu1  ;;  %2006 = vmatmul.mubr.bf16.gmra.mrb[68].mxu0 %v1768_v27  ;;  %v1646_v21 = vmax.f32 %v1340_v5, 0.0 }
 0x1dc   : > { %v1346_v18 = vadd.f32 %v1345_v12, %v3185_v48  ;;  %v1647_v10 = vmax.f32 %v1342_v9, 0.0 }
 0x1dd   : > { %v1648_v24 = vmax.f32 %v1344_v13, 0.0  ;;  %1608 = vmatmul.mubr.bf16.gmra.mrb[180].mxu1 %v3125_v2 }
 0x1de   : > { %v1649_v28 = vmax.f32 %v1346_v18, 0.0  ;;  %1617 = vmatprep.mubr.bf16.mxu1 %v3139_v4 }
 0x1df   : > { %v1770_v30 = vpack.c.bf16 %v1648_v24, %v1646_v21 }
 0x1e0   : > { %v1771_v32 = vpack.c.bf16 %v1649_v28, %v1647_v10  ;;  %v1349_v33 = vpop.f32.mrb[76].mxu1 }
 0x1e1   : > { %v1350_v36 = vadd.f32 %v1349_v33, %v3180_v20  ;;  %v1351_v37 = vpop.f32.mrb[77].mxu1 }
 0x1e2   : > { %v1352_v39 = vadd.f32 %v1351_v37, %v3185_v48  ;;  %v1353_v40 = vpop.f32.mrb[78].mxu1  ;;  %2013 = vmatprep.mubr.bf16.mxu0 %v1771_v32 }
 0x1e3   : > { %v1354_v41 = vadd.f32 %v1353_v40, %v3180_v20  ;;  %v1355_v42 = vpop.f32.mrb[79].mxu1  ;;  %2014 = vmatmul.mubr.bf16.gmra.mrb[72].mxu0 %v1770_v30  ;;  %v1650_v44 = vmax.f32 %v1350_v36, 0.0 }
 0x1e4   : > { %v1356_v2 = vadd.f32 %v1355_v42, %v3185_v48  ;;  %v1651_v4 = vmax.f32 %v1352_v39, 0.0 }
 0x1e5   : > { %v1652_v45 = vmax.f32 %v1354_v41, 0.0  ;;  %1618 = vmatmul.mubr.bf16.gmra.mrb[184].mxu1 %v3137_v62 }
 0x1e6   : > { %v1653_v47 = vmax.f32 %v1356_v2, 0.0  ;;  %1627 = vmatprep.mubr.bf16.mxu1 %v3151_v61 }
 0x1e7   : > { %v1772_v52 = vpack.c.bf16 %v1652_v45, %v1650_v44 }
 0x1e8   : > { %v1773_v54 = vpack.c.bf16 %v1653_v47, %v1651_v4  ;;  %v1359_v57 = vpop.f32.mrb[80].mxu1 }
 0x1e9   : > { %v1360_v60 = vadd.f32 %v1359_v57, %v3180_v20  ;;  %v1361_v19 = vpop.f32.mrb[81].mxu1 }
 0x1ea   : > { %v1362_v51 = vadd.f32 %v1361_v19, %v3185_v48  ;;  %v1363_v16 = vpop.f32.mrb[82].mxu1  ;;  %2021 = vmatprep.mubr.bf16.mxu0 %v1773_v54 }
 0x1eb   : > { %v1364_v22 = vadd.f32 %v1363_v16, %v3180_v20  ;;  %v1365_v49 = vpop.f32.mrb[83].mxu1  ;;  %2022 = vmatmul.mubr.bf16.gmra.mrb[76].mxu0 %v1772_v52  ;;  %v1654_v53 = vmax.f32 %v1360_v60, 0.0 }
 0x1ec   : > { %v1366_v62 = vadd.f32 %v1365_v49, %v3185_v48  ;;  %v1655_v61 = vmax.f32 %v1362_v51, 0.0 }
 0x1ed   : > { %v1656_v23 = vmax.f32 %v1364_v22, 0.0  ;;  %1628 = vmatmul.mubr.bf16.gmra.mrb[188].mxu1 %v3149_v58 }
 0x1ee   : > { %v1657_v26 = vmax.f32 %v1366_v62, 0.0 }
 0x1ef   : > { %v1774_v56 = vpack.c.bf16 %v1656_v23, %v1654_v53 }
 0x1f0   : > { %v1775_v15 = vpack.c.bf16 %v1657_v26, %v1655_v61  ;;  %v1369_v59 = vpop.f32.mrb[84].mxu1 }
 0x1f1   : > { %v1370_v31 = vadd.f32 %v1369_v59, %v3180_v20  ;;  %v1371_v14 = vpop.f32.mrb[85].mxu1 }
 0x1f2   : > { %v1372_v17 = vadd.f32 %v1371_v14, %v3185_v48  ;;  %v1373_v34 = vpop.f32.mrb[86].mxu1  ;;  %2029 = vmatprep.mubr.bf16.mxu0 %v1775_v15 }
 0x1f3   : > { %v1374_v3 = vadd.f32 %v1373_v34, %v3180_v20  ;;  %v1375_v6 = vpop.f32.mrb[87].mxu1  ;;  %2030 = vmatmul.mubr.bf16.gmra.mrb[80].mxu0 %v1774_v56  ;;  %v1658_v46 = vmax.f32 %v1370_v31, 0.0 }
 0x1f4   : > { %v1376_v43 = vadd.f32 %v1375_v6, %v3185_v48  ;;  %v1659_v25 = vmax.f32 %v1372_v17, 0.0 }
 0x1f5   : > { %v1660_v58 = vmax.f32 %v1374_v3, 0.0 }
 0x1f6   : > { %v1661_v29 = vmax.f32 %v1376_v43, 0.0 }
 0x1f7   : > { %v1776_v1 = vpack.c.bf16 %v1660_v58, %v1658_v46 }
 0x1f8   : > { %v1777_v7 = vpack.c.bf16 %v1661_v29, %v1659_v25  ;;  %v1379_v50 = vpop.f32.mrb[88].mxu1 }
 0x1f9   : > { %v1380_v55 = vadd.f32 %v1379_v50, %v3180_v20  ;;  %v1381_v35 = vpop.f32.mrb[89].mxu1 }
 0x1fa   : > { %v1382_v38 = vadd.f32 %v1381_v35, %v3185_v48  ;;  %v1383_v27 = vpop.f32.mrb[90].mxu1  ;;  %2037 = vmatprep.mubr.bf16.mxu0 %v1777_v7 }
 0x1fb   : > { %v1384_v63 = vadd.f32 %v1383_v27, %v3180_v20  ;;  %v1385_v0 = vpop.f32.mrb[91].mxu1  ;;  %2038 = vmatmul.mubr.bf16.gmra.mrb[84].mxu0 %v1776_v1  ;;  %v1662_v8 = vmax.f32 %v1380_v55, 0.0 }
 0x1fc   : > { %v1386_v5 = vadd.f32 %v1385_v0, %v3185_v48  ;;  %v1663_v11 = vmax.f32 %v1382_v38, 0.0 }
 0x1fd   : > { %v1664_v9 = vmax.f32 %v1384_v63, 0.0 }
 0x1fe   : > { %v1665_v13 = vmax.f32 %v1386_v5, 0.0 }
 0x1ff   : > { %v1778_v12 = vpack.c.bf16 %v1664_v9, %v1662_v8 }
 0x200   : > { %v1779_v18 = vpack.c.bf16 %v1665_v13, %v1663_v11  ;;  %v1389_v21 = vpop.f32.mrb[92].mxu1 }
 0x201   : > { %v1390_v24 = vadd.f32 %v1389_v21, %v3180_v20  ;;  %v1391_v10 = vpop.f32.mrb[93].mxu1 }
 0x202   : > { %v1392_v28 = vadd.f32 %v1391_v10, %v3185_v48  ;;  %v1393_v30 = vpop.f32.mrb[94].mxu1  ;;  %2045 = vmatprep.mubr.bf16.mxu0 %v1779_v18 }
 0x203   : > { %v1394_v32 = vadd.f32 %v1393_v30, %v3180_v20  ;;  %v1395_v33 = vpop.f32.mrb[95].mxu1  ;;  %2046 = vmatmul.mubr.bf16.gmra.mrb[88].mxu0 %v1778_v12  ;;  %v1666_v37 = vmax.f32 %v1390_v24, 0.0 }
 0x204   : > { %v1396_v36 = vadd.f32 %v1395_v33, %v3185_v48  ;;  %v1667_v40 = vmax.f32 %v1392_v28, 0.0 }
 0x205   : > { %v1668_v39 = vmax.f32 %v1394_v32, 0.0 }
 0x206   : > { %v1669_v41 = vmax.f32 %v1396_v36, 0.0 }
 0x207   : > { %v1780_v42 = vpack.c.bf16 %v1668_v39, %v1666_v37 }
 0x208   : > { %v1781_v2 = vpack.c.bf16 %v1669_v41, %v1667_v40  ;;  %v1399_v44 = vpop.f32.mrb[96].mxu1 }
 0x209   : > { %v1400_v45 = vadd.f32 %v1399_v44, %v3180_v20  ;;  %v1401_v4 = vpop.f32.mrb[97].mxu1 }
 0x20a   : > { %v1402_v47 = vadd.f32 %v1401_v4, %v3185_v48  ;;  %v1403_v52 = vpop.f32.mrb[98].mxu1  ;;  %2053 = vmatprep.mubr.bf16.mxu0 %v1781_v2 }
 0x20b   : > { %v1404_v54 = vadd.f32 %v1403_v52, %v3180_v20  ;;  %v1405_v57 = vpop.f32.mrb[99].mxu1  ;;  %2054 = vmatmul.mubr.bf16.gmra.mrb[92].mxu0 %v1780_v42  ;;  %v1670_v19 = vmax.f32 %v1400_v45, 0.0 }
 0x20c   : > { %v1406_v60 = vadd.f32 %v1405_v57, %v3185_v48  ;;  %v1671_v16 = vmax.f32 %v1402_v47, 0.0 }
 0x20d   : > { %v1672_v51 = vmax.f32 %v1404_v54, 0.0 }
 0x20e   : > { %v1673_v22 = vmax.f32 %v1406_v60, 0.0 }
 0x20f   : > { %v1782_v49 = vpack.c.bf16 %v1672_v51, %v1670_v19 }
 0x210   : > { %v1783_v62 = vpack.c.bf16 %v1673_v22, %v1671_v16  ;;  %v1409_v53 = vpop.f32.mrb[100].mxu1 }
 0x211   : > { %v1410_v23 = vadd.f32 %v1409_v53, %v3180_v20  ;;  %v1411_v61 = vpop.f32.mrb[101].mxu1 }
 0x212   : > { %v1412_v26 = vadd.f32 %v1411_v61, %v3185_v48  ;;  %v1413_v56 = vpop.f32.mrb[102].mxu1  ;;  %2061 = vmatprep.mubr.bf16.mxu0 %v1783_v62 }
 0x213   : > { %v1414_v15 = vadd.f32 %v1413_v56, %v3180_v20  ;;  %v1415_v59 = vpop.f32.mrb[103].mxu1  ;;  %2062 = vmatmul.mubr.bf16.gmra.mrb[96].mxu0 %v1782_v49  ;;  %v1674_v14 = vmax.f32 %v1410_v23, 0.0 }
 0x214   : > { %v1416_v31 = vadd.f32 %v1415_v59, %v3185_v48  ;;  %v1675_v34 = vmax.f32 %v1412_v26, 0.0 }
 0x215   : > { %v1676_v17 = vmax.f32 %v1414_v15, 0.0 }
 0x216   : > { %v1677_v3 = vmax.f32 %v1416_v31, 0.0 }
 0x217   : > { %v1784_v6 = vpack.c.bf16 %v1676_v17, %v1674_v14 }
 0x218   : > { %v1785_v43 = vpack.c.bf16 %v1677_v3, %v1675_v34  ;;  %v1419_v46 = vpop.f32.mrb[104].mxu1 }
 0x219   : > { %v1420_v58 = vadd.f32 %v1419_v46, %v3180_v20  ;;  %v1421_v25 = vpop.f32.mrb[105].mxu1 }
 0x21a   : > { %v1422_v29 = vadd.f32 %v1421_v25, %v3185_v48  ;;  %v1423_v1 = vpop.f32.mrb[106].mxu1  ;;  %2069 = vmatprep.mubr.bf16.mxu0 %v1785_v43 }
 0x21b   : > { %v1424_v7 = vadd.f32 %v1423_v1, %v3180_v20  ;;  %v1425_v50 = vpop.f32.mrb[107].mxu1  ;;  %2070 = vmatmul.mubr.bf16.gmra.mrb[100].mxu0 %v1784_v6  ;;  %v1678_v35 = vmax.f32 %v1420_v58, 0.0 }
 0x21c   : > { %v1426_v55 = vadd.f32 %v1425_v50, %v3185_v48  ;;  %v1679_v27 = vmax.f32 %v1422_v29, 0.0 }
 0x21d   : > { %v1680_v38 = vmax.f32 %v1424_v7, 0.0 }
 0x21e   : > { %v1681_v63 = vmax.f32 %v1426_v55, 0.0 }
 0x21f   : > { %v1786_v0 = vpack.c.bf16 %v1680_v38, %v1678_v35 }
 0x220   : > { %v1787_v5 = vpack.c.bf16 %v1681_v63, %v1679_v27  ;;  %v1429_v8 = vpop.f32.mrb[108].mxu1 }
 0x221   : > { %v1430_v9 = vadd.f32 %v1429_v8, %v3180_v20  ;;  %v1431_v11 = vpop.f32.mrb[109].mxu1 }
 0x222   : > { %v1432_v13 = vadd.f32 %v1431_v11, %v3185_v48  ;;  %v1433_v12 = vpop.f32.mrb[110].mxu1  ;;  %2077 = vmatprep.mubr.bf16.mxu0 %v1787_v5 }
 0x223   : > { %v1434_v18 = vadd.f32 %v1433_v12, %v3180_v20  ;;  %v1435_v21 = vpop.f32.mrb[111].mxu1  ;;  %2078 = vmatmul.mubr.bf16.gmra.mrb[104].mxu0 %v1786_v0  ;;  %v1682_v10 = vmax.f32 %v1430_v9, 0.0 }
 0x224   : > { %v1436_v24 = vadd.f32 %v1435_v21, %v3185_v48  ;;  %v1683_v30 = vmax.f32 %v1432_v13, 0.0 }
 0x225   : > { %v1684_v28 = vmax.f32 %v1434_v18, 0.0 }
 0x226   : > { %v1685_v32 = vmax.f32 %v1436_v24, 0.0 }
 0x227   : > { %v1788_v33 = vpack.c.bf16 %v1684_v28, %v1682_v10 }
 0x228   : > { %v1789_v36 = vpack.c.bf16 %v1685_v32, %v1683_v30  ;;  %v1439_v37 = vpop.f32.mrb[112].mxu1 }
 0x229   : > { %v1440_v39 = vadd.f32 %v1439_v37, %v3180_v20  ;;  %v1441_v40 = vpop.f32.mrb[113].mxu1 }
 0x22a   : > { %v1442_v41 = vadd.f32 %v1441_v40, %v3185_v48  ;;  %v1443_v42 = vpop.f32.mrb[114].mxu1  ;;  %2085 = vmatprep.mubr.bf16.mxu0 %v1789_v36 }
 0x22b   : > { %v1444_v2 = vadd.f32 %v1443_v42, %v3180_v20  ;;  %v1445_v44 = vpop.f32.mrb[115].mxu1  ;;  %2086 = vmatmul.mubr.bf16.gmra.mrb[108].mxu0 %v1788_v33  ;;  %v1686_v4 = vmax.f32 %v1440_v39, 0.0 }
 0x22c   : > { %v1446_v45 = vadd.f32 %v1445_v44, %v3185_v48  ;;  %v1687_v52 = vmax.f32 %v1442_v41, 0.0 }
 0x22d   : > { %v1688_v47 = vmax.f32 %v1444_v2, 0.0 }
 0x22e   : > { %v1689_v54 = vmax.f32 %v1446_v45, 0.0 }
 0x22f   : > { %v1790_v57 = vpack.c.bf16 %v1688_v47, %v1686_v4 }
 0x230   : > { %v1791_v60 = vpack.c.bf16 %v1689_v54, %v1687_v52  ;;  %v1449_v19 = vpop.f32.mrb[116].mxu1 }
 0x231   : > { %v1450_v51 = vadd.f32 %v1449_v19, %v3180_v20  ;;  %v1451_v16 = vpop.f32.mrb[117].mxu1 }
 0x232   : > { %v1452_v22 = vadd.f32 %v1451_v16, %v3185_v48  ;;  %v1453_v49 = vpop.f32.mrb[118].mxu1  ;;  %2093 = vmatprep.mubr.bf16.mxu0 %v1791_v60 }
 0x233   : > { %v1454_v62 = vadd.f32 %v1453_v49, %v3180_v20  ;;  %v1455_v53 = vpop.f32.mrb[119].mxu1  ;;  %2094 = vmatmul.mubr.bf16.gmra.mrb[112].mxu0 %v1790_v57  ;;  %v1690_v61 = vmax.f32 %v1450_v51, 0.0 }
 0x234   : > { %v1456_v23 = vadd.f32 %v1455_v53, %v3185_v48  ;;  %v1691_v56 = vmax.f32 %v1452_v22, 0.0 }
 0x235   : > { %v1692_v26 = vmax.f32 %v1454_v62, 0.0 }
 0x236   : > { %v1693_v15 = vmax.f32 %v1456_v23, 0.0 }
 0x237   : > { %v1792_v59 = vpack.c.bf16 %v1692_v26, %v1690_v61 }
 0x238   : > { %v1793_v31 = vpack.c.bf16 %v1693_v15, %v1691_v56  ;;  %v1459_v14 = vpop.f32.mrb[120].mxu1 }
 0x239   : > { %v1460_v17 = vadd.f32 %v1459_v14, %v3180_v20  ;;  %v1461_v34 = vpop.f32.mrb[121].mxu1 }
 0x23a   : > { %v1462_v3 = vadd.f32 %v1461_v34, %v3185_v48  ;;  %v1463_v6 = vpop.f32.mrb[122].mxu1  ;;  %2101 = vmatprep.mubr.bf16.mxu0 %v1793_v31 }
 0x23b   : > { %v1464_v43 = vadd.f32 %v1463_v6, %v3180_v20  ;;  %v1465_v46 = vpop.f32.mrb[123].mxu1  ;;  %2102 = vmatmul.mubr.bf16.gmra.mrb[116].mxu0 %v1792_v59  ;;  %v1694_v25 = vmax.f32 %v1460_v17, 0.0 }
 0x23c   : > { %v1466_v58 = vadd.f32 %v1465_v46, %v3185_v48  ;;  %v1695_v1 = vmax.f32 %v1462_v3, 0.0 }
 0x23d   : > { %v1696_v29 = vmax.f32 %v1464_v43, 0.0 }
 0x23e   : > { %v1697_v7 = vmax.f32 %v1466_v58, 0.0 }
 0x23f   : > { %v1794_v50 = vpack.c.bf16 %v1696_v29, %v1694_v25 }
 0x240   : > { %v1795_v55 = vpack.c.bf16 %v1697_v7, %v1695_v1  ;;  %v1469_v35 = vpop.f32.mrb[124].mxu1 }
 0x241   : > { %v1470_v38 = vadd.f32 %v1469_v35, %v3180_v20  ;;  %v1471_v27 = vpop.f32.mrb[125].mxu1 }
 0x242   : > { %v1472_v63 = vadd.f32 %v1471_v27, %v3185_v48  ;;  %v1473_v0 = vpop.f32.mrb[126].mxu1  ;;  %2109 = vmatprep.mubr.bf16.mxu0 %v1795_v55 }
 0x243   : > { %v1474_v5 = vadd.f32 %v1473_v0, %v3180_v20  ;;  %v1475_v8 = vpop.f32.mrb[127].mxu1  ;;  %2110 = vmatmul.mubr.bf16.gmra.mrb[120].mxu0 %v1794_v50  ;;  %v1698_v11 = vmax.f32 %v1470_v38, 0.0 }
 0x244   : > { %v1476_v9 = vadd.f32 %v1475_v8, %v3185_v48  ;;  %v1699_v12 = vmax.f32 %v1472_v63, 0.0 }
 0x245   : > { %v1700_v13 = vmax.f32 %v1474_v5, 0.0 }
 0x246   : > { %v1701_v18 = vmax.f32 %v1476_v9, 0.0 }
 0x247   : > { %v1796_v21 = vpack.c.bf16 %v1700_v13, %v1698_v11 }
 0x248   : > { %v1797_v24 = vpack.c.bf16 %v1701_v18, %v1699_v12  ;;  %v1479_v10 = vpop.f32.mrb[128].mxu1 }
 0x249   : > { %v1480_v28 = vadd.f32 %v1479_v10, %v3180_v20  ;;  %v1481_v30 = vpop.f32.mrb[129].mxu1 }
 0x24a   : > { %v1482_v32 = vadd.f32 %v1481_v30, %v3185_v48  ;;  %v1483_v33 = vpop.f32.mrb[130].mxu1  ;;  %2117 = vmatprep.mubr.bf16.mxu0 %v1797_v24 }
 0x24b   : > { %v1484_v36 = vadd.f32 %v1483_v33, %v3180_v20  ;;  %v1485_v37 = vpop.f32.mrb[131].mxu1  ;;  %2118 = vmatmul.mubr.bf16.gmra.mrb[124].mxu0 %v1796_v21  ;;  %v1702_v40 = vmax.f32 %v1480_v28, 0.0 }
 0x24c   : > { %v1486_v39 = vadd.f32 %v1485_v37, %v3185_v48  ;;  %v1703_v42 = vmax.f32 %v1482_v32, 0.0 }
 0x24d   : > { %v1704_v41 = vmax.f32 %v1484_v36, 0.0 }
 0x24e   : > { %v1705_v2 = vmax.f32 %v1486_v39, 0.0 }
 0x24f   : > { %v1798_v44 = vpack.c.bf16 %v1704_v41, %v1702_v40 }
 0x250   : > { %v1799_v45 = vpack.c.bf16 %v1705_v2, %v1703_v42  ;;  %v1489_v4 = vpop.f32.mrb[132].mxu1 }
 0x251   : > { %v1490_v47 = vadd.f32 %v1489_v4, %v3180_v20  ;;  %v1491_v52 = vpop.f32.mrb[133].mxu1 }
 0x252   : > { %v1492_v54 = vadd.f32 %v1491_v52, %v3185_v48  ;;  %v1493_v57 = vpop.f32.mrb[134].mxu1  ;;  %2125 = vmatprep.mubr.bf16.mxu0 %v1799_v45 }
 0x253   : > { %v1494_v60 = vadd.f32 %v1493_v57, %v3180_v20  ;;  %v1495_v19 = vpop.f32.mrb[135].mxu1  ;;  %2126 = vmatmul.mubr.bf16.gmra.mrb[128].mxu0 %v1798_v44  ;;  %v1706_v16 = vmax.f32 %v1490_v47, 0.0 }
 0x254   : > { %v1496_v51 = vadd.f32 %v1495_v19, %v3185_v48  ;;  %v1707_v49 = vmax.f32 %v1492_v54, 0.0 }
 0x255   : > { %v1708_v22 = vmax.f32 %v1494_v60, 0.0 }
 0x256   : > { %v1709_v62 = vmax.f32 %v1496_v51, 0.0 }
 0x257   : > { %v1800_v53 = vpack.c.bf16 %v1708_v22, %v1706_v16 }
 0x258   : > { %v1801_v23 = vpack.c.bf16 %v1709_v62, %v1707_v49  ;;  %v1499_v61 = vpop.f32.mrb[136].mxu1 }
 0x259   : > { %v1500_v26 = vadd.f32 %v1499_v61, %v3180_v20  ;;  %v1501_v56 = vpop.f32.mrb[137].mxu1 }
 0x25a   : > { %v1502_v15 = vadd.f32 %v1501_v56, %v3185_v48  ;;  %v1503_v59 = vpop.f32.mrb[138].mxu1  ;;  %2133 = vmatprep.mubr.bf16.mxu0 %v1801_v23 }
 0x25b   : > { %v1504_v31 = vadd.f32 %v1503_v59, %v3180_v20  ;;  %v1505_v14 = vpop.f32.mrb[139].mxu1  ;;  %2134 = vmatmul.mubr.bf16.gmra.mrb[132].mxu0 %v1800_v53  ;;  %v1710_v34 = vmax.f32 %v1500_v26, 0.0 }
 0x25c   : > { %v1506_v17 = vadd.f32 %v1505_v14, %v3185_v48  ;;  %v1711_v6 = vmax.f32 %v1502_v15, 0.0 }
 0x25d   : > { %v1712_v3 = vmax.f32 %v1504_v31, 0.0 }
 0x25e   : > { %v1713_v43 = vmax.f32 %v1506_v17, 0.0 }
 0x25f   : > { %v1802_v46 = vpack.c.bf16 %v1712_v3, %v1710_v34 }
 0x260   : > { %v1803_v58 = vpack.c.bf16 %v1713_v43, %v1711_v6  ;;  %v1509_v25 = vpop.f32.mrb[140].mxu1 }
 0x261   : > { %v1510_v29 = vadd.f32 %v1509_v25, %v3180_v20  ;;  %v1511_v1 = vpop.f32.mrb[141].mxu1 }
 0x262   : > { %v1512_v7 = vadd.f32 %v1511_v1, %v3185_v48  ;;  %v1513_v50 = vpop.f32.mrb[142].mxu1  ;;  %2141 = vmatprep.mubr.bf16.mxu0 %v1803_v58 }
 0x263   : > { %v1514_v55 = vadd.f32 %v1513_v50, %v3180_v20  ;;  %v1515_v35 = vpop.f32.mrb[143].mxu1  ;;  %2142 = vmatmul.mubr.bf16.gmra.mrb[136].mxu0 %v1802_v46  ;;  %v1714_v27 = vmax.f32 %v1510_v29, 0.0 }
 0x264   : > { %v1516_v38 = vadd.f32 %v1515_v35, %v3185_v48  ;;  %v1715_v0 = vmax.f32 %v1512_v7, 0.0 }
 0x265   : > { %v1716_v63 = vmax.f32 %v1514_v55, 0.0 }
 0x266   : > { %v1717_v5 = vmax.f32 %v1516_v38, 0.0 }
 0x267   : > { %v1804_v8 = vpack.c.bf16 %v1716_v63, %v1714_v27 }
 0x268   : > { %v1805_v9 = vpack.c.bf16 %v1717_v5, %v1715_v0  ;;  %v1519_v11 = vpop.f32.mrb[144].mxu1 }
 0x269   : > { %v1520_v13 = vadd.f32 %v1519_v11, %v3180_v20  ;;  %v1521_v12 = vpop.f32.mrb[145].mxu1 }
 0x26a   : > { %v1522_v18 = vadd.f32 %v1521_v12, %v3185_v48  ;;  %v1523_v21 = vpop.f32.mrb[146].mxu1  ;;  %2149 = vmatprep.mubr.bf16.mxu0 %v1805_v9 }
 0x26b   : > { %v1524_v24 = vadd.f32 %v1523_v21, %v3180_v20  ;;  %v1525_v10 = vpop.f32.mrb[147].mxu1  ;;  %2150 = vmatmul.mubr.bf16.gmra.mrb[140].mxu0 %v1804_v8  ;;  %v1718_v30 = vmax.f32 %v1520_v13, 0.0 }
 0x26c   : > { %v1526_v28 = vadd.f32 %v1525_v10, %v3185_v48  ;;  %v1719_v33 = vmax.f32 %v1522_v18, 0.0 }
 0x26d   : > { %v1720_v32 = vmax.f32 %v1524_v24, 0.0 }
 0x26e   : > { %v1721_v36 = vmax.f32 %v1526_v28, 0.0 }
 0x26f   : > { %v1806_v37 = vpack.c.bf16 %v1720_v32, %v1718_v30 }
 0x270   : > { %v1807_v39 = vpack.c.bf16 %v1721_v36, %v1719_v33  ;;  %v1529_v40 = vpop.f32.mrb[148].mxu1 }
 0x271   : > { %v1530_v41 = vadd.f32 %v1529_v40, %v3180_v20  ;;  %v1531_v42 = vpop.f32.mrb[149].mxu1 }
 0x272   : > { %v1532_v2 = vadd.f32 %v1531_v42, %v3185_v48  ;;  %v1533_v44 = vpop.f32.mrb[150].mxu1  ;;  %2157 = vmatprep.mubr.bf16.mxu0 %v1807_v39 }
 0x273   : > { %v1534_v45 = vadd.f32 %v1533_v44, %v3180_v20  ;;  %v1535_v4 = vpop.f32.mrb[151].mxu1  ;;  %2158 = vmatmul.mubr.bf16.gmra.mrb[144].mxu0 %v1806_v37  ;;  %v1722_v52 = vmax.f32 %v1530_v41, 0.0 }
 0x274   : > { %v1536_v47 = vadd.f32 %v1535_v4, %v3185_v48  ;;  %v1723_v57 = vmax.f32 %v1532_v2, 0.0 }
 0x275   : > { %v1724_v54 = vmax.f32 %v1534_v45, 0.0 }
 0x276   : > { %v1725_v60 = vmax.f32 %v1536_v47, 0.0 }
 0x277   : > { %v1808_v19 = vpack.c.bf16 %v1724_v54, %v1722_v52 }
 0x278   : > { %v1809_v51 = vpack.c.bf16 %v1725_v60, %v1723_v57  ;;  %v1539_v16 = vpop.f32.mrb[152].mxu1 }
 0x279   : > { %v1540_v22 = vadd.f32 %v1539_v16, %v3180_v20  ;;  %v1541_v49 = vpop.f32.mrb[153].mxu1 }
 0x27a   : > { %v1542_v62 = vadd.f32 %v1541_v49, %v3185_v48  ;;  %v1543_v53 = vpop.f32.mrb[154].mxu1  ;;  %2165 = vmatprep.mubr.bf16.mxu0 %v1809_v51 }
 0x27b   : > { %v1544_v23 = vadd.f32 %v1543_v53, %v3180_v20  ;;  %v1545_v61 = vpop.f32.mrb[155].mxu1  ;;  %2166 = vmatmul.mubr.bf16.gmra.mrb[148].mxu0 %v1808_v19  ;;  %v1726_v56 = vmax.f32 %v1540_v22, 0.0 }
 0x27c   : > { %v1546_v26 = vadd.f32 %v1545_v61, %v3185_v48  ;;  %v1727_v59 = vmax.f32 %v1542_v62, 0.0 }
 0x27d   : > { %v1728_v15 = vmax.f32 %v1544_v23, 0.0 }
 0x27e   : > { %v1729_v31 = vmax.f32 %v1546_v26, 0.0 }
 0x27f   : > { %v1810_v14 = vpack.c.bf16 %v1728_v15, %v1726_v56 }
 0x280   : > { %v1811_v17 = vpack.c.bf16 %v1729_v31, %v1727_v59  ;;  %v1549_v34 = vpop.f32.mrb[156].mxu1 }
 0x281   : > { %v1550_v3 = vadd.f32 %v1549_v34, %v3180_v20  ;;  %v1551_v6 = vpop.f32.mrb[157].mxu1 }
 0x282   : > { %v1552_v43 = vadd.f32 %v1551_v6, %v3185_v48  ;;  %v1553_v46 = vpop.f32.mrb[158].mxu1  ;;  %2173 = vmatprep.mubr.bf16.mxu0 %v1811_v17  ;;  %v3311_v6 = vld [vmem:[%s3473_s6] ss:$0 sm:$0xff] }
 0x283   : > { %v1554_v58 = vadd.f32 %v1553_v46, %v3180_v20  ;;  %v1555_v25 = vpop.f32.mrb[159].mxu1  ;;  %2174 = vmatmul.mubr.bf16.gmra.mrb[152].mxu0 %v1810_v14  ;;  %v1730_v1 = vmax.f32 %v1550_v3, 0.0 }
 0x284   : > { %v1556_v29 = vadd.f32 %v1555_v25, %v3185_v48  ;;  %v1731_v50 = vmax.f32 %v1552_v43, 0.0 }
 0x285   : > { %v1732_v7 = vmax.f32 %v1554_v58, 0.0 }
 0x286   : > { %v1733_v55 = vmax.f32 %v1556_v29, 0.0 }
 0x287   : > { %v1812_v35 = vpack.c.bf16 %v1732_v7, %v1730_v1 }
 0x288   : > { %v1813_v38 = vpack.c.bf16 %v1733_v55, %v1731_v50  ;;  %v1559_v27 = vpop.f32.mrb[160].mxu1 }
 0x289   : > { %v1560_v63 = vadd.f32 %v1559_v27, %v3180_v20  ;;  %v1561_v0 = vpop.f32.mrb[161].mxu1 }
 0x28a   : > { %v1562_v5 = vadd.f32 %v1561_v0, %v3185_v48  ;;  %v1563_v8 = vpop.f32.mrb[162].mxu1  ;;  %2181 = vmatprep.mubr.bf16.mxu0 %v1813_v38 }
 0x28b   : > { %v1564_v9 = vadd.f32 %v1563_v8, %v3180_v20  ;;  %v1565_v11 = vpop.f32.mrb[163].mxu1  ;;  %2182 = vmatmul.mubr.bf16.gmra.mrb[156].mxu0 %v1812_v35  ;;  %v1734_v12 = vmax.f32 %v1560_v63, 0.0 }
 0x28c   : > { %v1566_v13 = vadd.f32 %v1565_v11, %v3185_v48  ;;  %v1735_v21 = vmax.f32 %v1562_v5, 0.0 }
 0x28d   : > { %v1736_v18 = vmax.f32 %v1564_v9, 0.0 }
 0x28e   : > { %v1737_v24 = vmax.f32 %v1566_v13, 0.0 }
 0x28f   : > { %v1814_v10 = vpack.c.bf16 %v1736_v18, %v1734_v12 }
 0x290   : > { %v1815_v28 = vpack.c.bf16 %v1737_v24, %v1735_v21  ;;  %v1569_v30 = vpop.f32.mrb[164].mxu1 }
 0x291   : > { %v1570_v32 = vadd.f32 %v1569_v30, %v3180_v20  ;;  %v1571_v33 = vpop.f32.mrb[165].mxu1 }
 0x292   : > { %v1572_v36 = vadd.f32 %v1571_v33, %v3185_v48  ;;  %v1573_v37 = vpop.f32.mrb[166].mxu1  ;;  %2189 = vmatprep.mubr.bf16.mxu0 %v1815_v28 }
 0x293   : > { %v1574_v39 = vadd.f32 %v1573_v37, %v3180_v20  ;;  %v1575_v40 = vpop.f32.mrb[167].mxu1  ;;  %2190 = vmatmul.mubr.bf16.gmra.mrb[160].mxu0 %v1814_v10  ;;  %v1738_v42 = vmax.f32 %v1570_v32, 0.0 }
 0x294   : > { %v1576_v41 = vadd.f32 %v1575_v40, %v3185_v48  ;;  %v1739_v44 = vmax.f32 %v1572_v36, 0.0 }
 0x295   : > { %v1740_v2 = vmax.f32 %v1574_v39, 0.0 }
 0x296   : > { %v1741_v45 = vmax.f32 %v1576_v41, 0.0 }
 0x297   : > { %v1816_v4 = vpack.c.bf16 %v1740_v2, %v1738_v42 }
 0x298   : > { %v1817_v47 = vpack.c.bf16 %v1741_v45, %v1739_v44  ;;  %v1579_v52 = vpop.f32.mrb[168].mxu1 }
 0x299   : > { %v1580_v54 = vadd.f32 %v1579_v52, %v3180_v20  ;;  %v1581_v57 = vpop.f32.mrb[169].mxu1 }
 0x29a   : > { %v1582_v60 = vadd.f32 %v1581_v57, %v3185_v48  ;;  %v1583_v19 = vpop.f32.mrb[170].mxu1  ;;  %2197 = vmatprep.mubr.bf16.mxu0 %v1817_v47 }
 0x29b   : > { %v1584_v51 = vadd.f32 %v1583_v19, %v3180_v20  ;;  %v1585_v16 = vpop.f32.mrb[171].mxu1  ;;  %2198 = vmatmul.mubr.bf16.gmra.mrb[164].mxu0 %v1816_v4  ;;  %v1742_v49 = vmax.f32 %v1580_v54, 0.0 }
 0x29c   : > { %v1586_v22 = vadd.f32 %v1585_v16, %v3185_v48  ;;  %v1743_v53 = vmax.f32 %v1582_v60, 0.0 }
 0x29d   : > { %v1744_v62 = vmax.f32 %v1584_v51, 0.0 }
 0x29e   : > { %v1745_v23 = vmax.f32 %v1586_v22, 0.0 }
 0x29f   : > { %v1818_v61 = vpack.c.bf16 %v1744_v62, %v1742_v49 }
 0x2a0   : > { %v1819_v26 = vpack.c.bf16 %v1745_v23, %v1743_v53  ;;  %v1589_v56 = vpop.f32.mrb[172].mxu1 }
 0x2a1   : > { %v1590_v15 = vadd.f32 %v1589_v56, %v3180_v20  ;;  %v1591_v59 = vpop.f32.mrb[173].mxu1 }
 0x2a2   : > { %v1592_v31 = vadd.f32 %v1591_v59, %v3185_v48  ;;  %v1593_v14 = vpop.f32.mrb[174].mxu1  ;;  %2205 = vmatprep.mubr.bf16.mxu0 %v1819_v26 }
 0x2a3   : > { %v1594_v17 = vadd.f32 %v1593_v14, %v3180_v20  ;;  %v1595_v34 = vpop.f32.mrb[175].mxu1  ;;  %2206 = vmatmul.mubr.bf16.gmra.mrb[168].mxu0 %v1818_v61  ;;  %v1746_v43 = vmax.f32 %v1590_v15, 0.0 }
 0x2a4   : > { %v1596_v3 = vadd.f32 %v1595_v34, %v3185_v48  ;;  %v1747_v58 = vmax.f32 %v1592_v31, 0.0 }
 0x2a5   : > { %v1748_v46 = vmax.f32 %v1594_v17, 0.0 }
 0x2a6   : > { %v1749_v25 = vmax.f32 %v1596_v3, 0.0  ;;  %v1999_v29 = vpop.f32.mrb[64].mxu0 }
 0x2a7   : > { %v1820_v1 = vpack.c.bf16 %v1748_v46, %v1746_v43  ;;  %v2000_v7 = vadd.f32 %v3311_v6, %v1999_v29  ;;  %v2001_v50 = vpop.f32.mrb[65].mxu0 }
 0x2a8   : > { %v1821_v55 = vpack.c.bf16 %v1749_v25, %v1747_v58  ;;  %v1599_v35 = vpop.f32.mrb[176].mxu1  ;;  %v2002_v38 = vpop.f32.mrb[66].mxu0 }
 0x2a9   : > { %2254 = vst [vmem:[%s3318_s10] sm:$0xff] %v2000_v7  ;;  %v1600_v27 = vadd.f32 %v1599_v35, %v3180_v20  ;;  %v2003_v63 = vadd.f32 %v3311_v6, %v2002_v38  ;;  %v1601_v0 = vpop.f32.mrb[177].mxu1  ;;  %v2004_v5 = vpop.f32.mrb[67].mxu0 }
 0x2aa   : > { %v1602_v8 = vadd.f32 %v1601_v0, %v3185_v48  ;;  %v1603_v9 = vpop.f32.mrb[178].mxu1  ;;  %2213 = vmatprep.mubr.bf16.mxu0 %v1821_v55 }
 0x2ab   : > { %2255 = vst [vmem:[%s3318_s10 + $0x8] sm:$0xff] %v2003_v63  ;;  %v1604_v11 = vadd.f32 %v1603_v9, %v3180_v20  ;;  %v1605_v13 = vpop.f32.mrb[179].mxu1  ;;  %2214 = vmatmul.mubr.bf16.gmra.mrb[172].mxu0 %v1820_v1  ;;  %v1750_v18 = vmax.f32 %v1600_v27, 0.0 }
 0x2ac   : > { %v1606_v12 = vadd.f32 %v1605_v13, %v3185_v48  ;;  %v1751_v24 = vmax.f32 %v1602_v8, 0.0 }
 0x2ad   : > { %v1752_v21 = vmax.f32 %v1604_v11, 0.0 }
 0x2ae   : > { %v1753_v10 = vmax.f32 %v1606_v12, 0.0  ;;  %v2007_v28 = vpop.f32.mrb[68].mxu0 }
 0x2af   : > { %v1822_v30 = vpack.c.bf16 %v1752_v21, %v1750_v18  ;;  %v2008_v32 = vadd.f32 %v3311_v6, %v2007_v28  ;;  %v2009_v33 = vpop.f32.mrb[69].mxu0 }
 0x2b0   : > { %v1823_v36 = vpack.c.bf16 %v1753_v10, %v1751_v24  ;;  %v1609_v37 = vpop.f32.mrb[180].mxu1  ;;  %v2010_v39 = vpop.f32.mrb[70].mxu0 }
 0x2b1   : > { %2256 = vst [vmem:[%s3318_s10 + $0x10] sm:$0xff] %v2008_v32  ;;  %v1610_v40 = vadd.f32 %v1609_v37, %v3180_v20  ;;  %v2011_v41 = vadd.f32 %v3311_v6, %v2010_v39  ;;  %v1611_v42 = vpop.f32.mrb[181].mxu1  ;;  %v2012_v2 = vpop.f32.mrb[71].mxu0 }
 0x2b2   : > { %v1612_v44 = vadd.f32 %v1611_v42, %v3185_v48  ;;  %v1613_v45 = vpop.f32.mrb[182].mxu1  ;;  %2221 = vmatprep.mubr.bf16.mxu0 %v1823_v36 }
 0x2b3   : > { %2257 = vst [vmem:[%s3318_s10 + $0x18] sm:$0xff] %v2011_v41  ;;  %v1614_v4 = vadd.f32 %v1613_v45, %v3180_v20  ;;  %v1615_v47 = vpop.f32.mrb[183].mxu1  ;;  %2222 = vmatmul.mubr.bf16.gmra.mrb[176].mxu0 %v1822_v30  ;;  %v1754_v54 = vmax.f32 %v1610_v40, 0.0 }
 0x2b4   : > { %v1616_v52 = vadd.f32 %v1615_v47, %v3185_v48  ;;  %v1755_v60 = vmax.f32 %v1612_v44, 0.0 }
 0x2b5   : > { %v1756_v57 = vmax.f32 %v1614_v4, 0.0 }
 0x2b6   : > { %v1757_v19 = vmax.f32 %v1616_v52, 0.0  ;;  %v2015_v51 = vpop.f32.mrb[72].mxu0 }
 0x2b7   : > { %v1824_v16 = vpack.c.bf16 %v1756_v57, %v1754_v54  ;;  %v2016_v22 = vadd.f32 %v3311_v6, %v2015_v51  ;;  %v2017_v49 = vpop.f32.mrb[73].mxu0 }
 0x2b8   : > { %v1825_v62 = vpack.c.bf16 %v1757_v19, %v1755_v60  ;;  %v1619_v53 = vpop.f32.mrb[184].mxu1  ;;  %v2018_v23 = vpop.f32.mrb[74].mxu0 }
 0x2b9   : > { %2258 = vst [vmem:[%s3318_s10 + $0x20] sm:$0xff] %v2016_v22  ;;  %v1620_v61 = vadd.f32 %v1619_v53, %v3180_v20  ;;  %v2019_v26 = vadd.f32 %v3311_v6, %v2018_v23  ;;  %v1621_v56 = vpop.f32.mrb[185].mxu1  ;;  %v2020_v15 = vpop.f32.mrb[75].mxu0 }
 0x2ba   : > { %v1622_v59 = vadd.f32 %v1621_v56, %v3185_v48  ;;  %v1623_v31 = vpop.f32.mrb[186].mxu1  ;;  %2229 = vmatprep.mubr.bf16.mxu0 %v1825_v62 }
 0x2bb   : > { %2259 = vst [vmem:[%s3318_s10 + $0x28] sm:$0xff] %v2019_v26  ;;  %v1624_v14 = vadd.f32 %v1623_v31, %v3180_v20  ;;  %v1625_v17 = vpop.f32.mrb[187].mxu1  ;;  %2230 = vmatmul.mubr.bf16.gmra.mrb[180].mxu0 %v1824_v16  ;;  %v1758_v3 = vmax.f32 %v1620_v61, 0.0 }
 0x2bc   : > { %v1626_v34 = vadd.f32 %v1625_v17, %v3185_v48  ;;  %v1759_v46 = vmax.f32 %v1622_v59, 0.0 }
 0x2bd   : > { %v1760_v43 = vmax.f32 %v1624_v14, 0.0 }
 0x2be   : > { %v1761_v58 = vmax.f32 %v1626_v34, 0.0  ;;  %v2023_v25 = vpop.f32.mrb[76].mxu0 }
 0x2bf   : > { %v1826_v29 = vpack.c.bf16 %v1760_v43, %v1758_v3  ;;  %v2024_v1 = vadd.f32 %v3311_v6, %v2023_v25  ;;  %v2025_v7 = vpop.f32.mrb[77].mxu0 }
 0x2c0   : > { %v1827_v50 = vpack.c.bf16 %v1761_v58, %v1759_v46  ;;  %v1629_v55 = vpop.f32.mrb[188].mxu1  ;;  %v2026_v35 = vpop.f32.mrb[78].mxu0 }
 0x2c1   : > { %2260 = vst [vmem:[%s3318_s10 + $0x30] sm:$0xff] %v2024_v1  ;;  %v1630_v38 = vadd.f32 %v1629_v55, %v3180_v20  ;;  %v2027_v27 = vadd.f32 %v3311_v6, %v2026_v35  ;;  %v1631_v63 = vpop.f32.mrb[189].mxu1  ;;  %v2028_v0 = vpop.f32.mrb[79].mxu0 }
 0x2c2   : > { %v1632_v5 = vadd.f32 %v1631_v63, %v3185_v48  ;;  %v1633_v8 = vpop.f32.mrb[190].mxu1  ;;  %2237 = vmatprep.mubr.bf16.mxu0 %v1827_v50 }
 0x2c3   : > { %2261 = vst [vmem:[%s3318_s10 + $0x38] sm:$0xff] %v2027_v27  ;;  %v1634_v9 = vadd.f32 %v1633_v8, %v3180_v20  ;;  %v1635_v11 = vpop.f32.mrb[191].mxu1  ;;  %2238 = vmatmul.mubr.bf16.gmra.mrb[184].mxu0 %v1826_v29  ;;  %v1762_v12 = vmax.f32 %v1630_v38, 0.0 }
 0x2c4   : > { %v1636_v13 = vadd.f32 %v1635_v11, %v3185_v48  ;;  %v1763_v21 = vmax.f32 %v1632_v5, 0.0 }
 0x2c5   : > { %v1764_v18 = vmax.f32 %v1634_v9, 0.0 }
 0x2c6   : > { %v1765_v24 = vmax.f32 %v1636_v13, 0.0  ;;  %v2031_v10 = vpop.f32.mrb[80].mxu0 }
 0x2c7   : > { %v1828_v28 = vpack.c.bf16 %v1764_v18, %v1762_v12  ;;  %v2032_v30 = vadd.f32 %v3311_v6, %v2031_v10  ;;  %v2033_v32 = vpop.f32.mrb[81].mxu0 }
 0x2c8   : > { %v1829_v33 = vpack.c.bf16 %v1765_v24, %v1763_v21  ;;  %v2034_v36 = vpop.f32.mrb[82].mxu0 }
 0x2c9   : > { %2262 = vst [vmem:[%s3318_s10 + $0x40] sm:$0xff] %v2032_v30  ;;  %v2035_v20 = vadd.f32 %v3311_v6, %v2034_v36  ;;  %v2036_v37 = vpop.f32.mrb[83].mxu0 }
 0x2ca   : > { %2245 = vmatprep.mubr.bf16.mxu0 %v1829_v33 }
 0x2cb   : > { %2263 = vst [vmem:[%s3318_s10 + $0x48] sm:$0xff] %v2035_v20  ;;  %2246 = vmatmul.mubr.bf16.gmra.mrb[188].mxu0 %v1828_v28 }
 0x2ce   : > { %v2039_v48 = vpop.f32.mrb[84].mxu0 }
 0x2cf   : > { %v2040_v39 = vadd.f32 %v3311_v6, %v2039_v48  ;;  %v2041_v40 = vpop.f32.mrb[85].mxu0 }
 0x2d0   : > { %v2042_v41 = vpop.f32.mrb[86].mxu0 }
 0x2d1   : > { %2264 = vst [vmem:[%s3318_s10 + $0x50] sm:$0xff] %v2040_v39  ;;  %v2043_v42 = vadd.f32 %v3311_v6, %v2042_v41  ;;  %v2044_v2 = vpop.f32.mrb[87].mxu0 }
 0x2d3   : > { %2265 = vst [vmem:[%s3318_s10 + $0x58] sm:$0xff] %v2043_v42 }
 0x2d6   : > { %v2047_v44 = vpop.f32.mrb[88].mxu0 }
 0x2d7   : > { %v2048_v45 = vadd.f32 %v3311_v6, %v2047_v44  ;;  %v2049_v4 = vpop.f32.mrb[89].mxu0 }
 0x2d8   : > { %v2050_v47 = vpop.f32.mrb[90].mxu0 }
 0x2d9   : > { %2266 = vst [vmem:[%s3318_s10 + $0x60] sm:$0xff] %v2048_v45  ;;  %v2051_v52 = vadd.f32 %v3311_v6, %v2050_v47  ;;  %v2052_v54 = vpop.f32.mrb[91].mxu0 }
 0x2db   : > { %2267 = vst [vmem:[%s3318_s10 + $0x68] sm:$0xff] %v2051_v52 }
 0x2de   : > { %v2055_v57 = vpop.f32.mrb[92].mxu0 }
 0x2df   : > { %v2056_v60 = vadd.f32 %v3311_v6, %v2055_v57  ;;  %v2057_v19 = vpop.f32.mrb[93].mxu0 }
 0x2e0   : > { %v2058_v51 = vpop.f32.mrb[94].mxu0 }
 0x2e1   : > { %2268 = vst [vmem:[%s3318_s10 + $0x70] sm:$0xff] %v2056_v60  ;;  %v2059_v16 = vadd.f32 %v3311_v6, %v2058_v51  ;;  %v2060_v22 = vpop.f32.mrb[95].mxu0 }
 0x2e3   : > { %2269 = vst [vmem:[%s3318_s10 + $0x78] sm:$0xff] %v2059_v16 }
 0x2e6   : > { %v2063_v49 = vpop.f32.mrb[96].mxu0 }
 0x2e7   : > { %v2064_v62 = vadd.f32 %v3311_v6, %v2063_v49  ;;  %v2065_v53 = vpop.f32.mrb[97].mxu0 }
 0x2e8   : > { %v2066_v23 = vpop.f32.mrb[98].mxu0 }
 0x2e9   : > { %2270 = vst [vmem:[%s3318_s10 + $0x80] sm:$0xff] %v2064_v62  ;;  %v2067_v61 = vadd.f32 %v3311_v6, %v2066_v23  ;;  %v2068_v26 = vpop.f32.mrb[99].mxu0 }
 0x2eb   : > { %2271 = vst [vmem:[%s3318_s10 + $0x88] sm:$0xff] %v2067_v61 }
 0x2ee   : > { %v2071_v56 = vpop.f32.mrb[100].mxu0 }
 0x2ef   : > { %v2072_v15 = vadd.f32 %v3311_v6, %v2071_v56  ;;  %v2073_v59 = vpop.f32.mrb[101].mxu0 }
 0x2f0   : > { %v2074_v31 = vpop.f32.mrb[102].mxu0 }
 0x2f1   : > { %2272 = vst [vmem:[%s3318_s10 + $0x90] sm:$0xff] %v2072_v15  ;;  %v2075_v14 = vadd.f32 %v3311_v6, %v2074_v31  ;;  %v2076_v17 = vpop.f32.mrb[103].mxu0 }
 0x2f3   : > { %2273 = vst [vmem:[%s3318_s10 + $0x98] sm:$0xff] %v2075_v14 }
 0x2f6   : > { %v2079_v34 = vpop.f32.mrb[104].mxu0 }
 0x2f7   : > { %v2080_v3 = vadd.f32 %v3311_v6, %v2079_v34  ;;  %v2081_v43 = vpop.f32.mrb[105].mxu0 }
 0x2f8   : > { %v2082_v46 = vpop.f32.mrb[106].mxu0 }
 0x2f9   : > { %2274 = vst [vmem:[%s3318_s10 + $0xa0] sm:$0xff] %v2080_v3  ;;  %v2083_v58 = vadd.f32 %v3311_v6, %v2082_v46  ;;  %v2084_v25 = vpop.f32.mrb[107].mxu0 }
 0x2fb   : > { %2275 = vst [vmem:[%s3318_s10 + $0xa8] sm:$0xff] %v2083_v58 }
 0x2fe   : > { %v2087_v29 = vpop.f32.mrb[108].mxu0 }
 0x2ff   : > { %v2088_v1 = vadd.f32 %v3311_v6, %v2087_v29  ;;  %v2089_v7 = vpop.f32.mrb[109].mxu0 }
 0x300   : > { %v2090_v50 = vpop.f32.mrb[110].mxu0 }
 0x301   : > { %2276 = vst [vmem:[%s3318_s10 + $0xb0] sm:$0xff] %v2088_v1  ;;  %v2091_v55 = vadd.f32 %v3311_v6, %v2090_v50  ;;  %v2092_v35 = vpop.f32.mrb[111].mxu0 }
 0x303   : > { %2277 = vst [vmem:[%s3318_s10 + $0xb8] sm:$0xff] %v2091_v55 }
 0x306   : > { %v2095_v38 = vpop.f32.mrb[112].mxu0 }
 0x307   : > { %v2096_v27 = vadd.f32 %v3311_v6, %v2095_v38  ;;  %v2097_v63 = vpop.f32.mrb[113].mxu0 }
 0x308   : > { %v2098_v0 = vpop.f32.mrb[114].mxu0 }
 0x309   : > { %2278 = vst [vmem:[%s3318_s10 + $0xc0] sm:$0xff] %v2096_v27  ;;  %v2099_v5 = vadd.f32 %v3311_v6, %v2098_v0  ;;  %v2100_v8 = vpop.f32.mrb[115].mxu0 }
 0x30b   : > { %2279 = vst [vmem:[%s3318_s10 + $0xc8] sm:$0xff] %v2099_v5 }
 0x30e   : > { %v2103_v9 = vpop.f32.mrb[116].mxu0 }
 0x30f   : > { %v2104_v11 = vadd.f32 %v3311_v6, %v2103_v9  ;;  %v2105_v13 = vpop.f32.mrb[117].mxu0 }
 0x310   : > { %v2106_v12 = vpop.f32.mrb[118].mxu0 }
 0x311   : > { %2280 = vst [vmem:[%s3318_s10 + $0xd0] sm:$0xff] %v2104_v11  ;;  %v2107_v18 = vadd.f32 %v3311_v6, %v2106_v12  ;;  %v2108_v21 = vpop.f32.mrb[119].mxu0 }
 0x313   : > { %2281 = vst [vmem:[%s3318_s10 + $0xd8] sm:$0xff] %v2107_v18 }
 0x316   : > { %v2111_v24 = vpop.f32.mrb[120].mxu0 }
 0x317   : > { %v2112_v10 = vadd.f32 %v3311_v6, %v2111_v24  ;;  %v2113_v28 = vpop.f32.mrb[121].mxu0 }
 0x318   : > { %v2114_v30 = vpop.f32.mrb[122].mxu0 }
 0x319   : > { %2282 = vst [vmem:[%s3318_s10 + $0xe0] sm:$0xff] %v2112_v10  ;;  %v2115_v32 = vadd.f32 %v3311_v6, %v2114_v30  ;;  %v2116_v33 = vpop.f32.mrb[123].mxu0 }
 0x31b   : > { %2283 = vst [vmem:[%s3318_s10 + $0xe8] sm:$0xff] %v2115_v32 }
 0x31e   : > { %v2119_v36 = vpop.f32.mrb[124].mxu0 }
 0x31f   : > { %v2120_v20 = vadd.f32 %v3311_v6, %v2119_v36  ;;  %v2121_v37 = vpop.f32.mrb[125].mxu0 }
 0x320   : > { %v2122_v48 = vpop.f32.mrb[126].mxu0 }
 0x321   : > { %2284 = vst [vmem:[%s3318_s10 + $0xf0] sm:$0xff] %v2120_v20  ;;  %v2123_v39 = vadd.f32 %v3311_v6, %v2122_v48  ;;  %v2124_v40 = vpop.f32.mrb[127].mxu0 }
 0x323   : > { %2285 = vst [vmem:[%s3318_s10 + $0xf8] sm:$0xff] %v2123_v39 }
 0x326   : > { %v2127_v41 = vpop.f32.mrb[128].mxu0 }
 0x327   : > { %v2128_v42 = vadd.f32 %v3311_v6, %v2127_v41  ;;  %v2129_v2 = vpop.f32.mrb[129].mxu0 }
 0x328   : > { %v2130_v44 = vpop.f32.mrb[130].mxu0 }
 0x329   : > { %2286 = vst [vmem:[%s3318_s10 + $0x100] sm:$0xff] %v2128_v42  ;;  %v2131_v45 = vadd.f32 %v3311_v6, %v2130_v44  ;;  %v2132_v4 = vpop.f32.mrb[131].mxu0 }
 0x32b   : > { %2287 = vst [vmem:[%s3318_s10 + $0x108] sm:$0xff] %v2131_v45 }
 0x32e   : > { %v2135_v47 = vpop.f32.mrb[132].mxu0 }
 0x32f   : > { %v2136_v52 = vadd.f32 %v3311_v6, %v2135_v47  ;;  %v2137_v54 = vpop.f32.mrb[133].mxu0 }
 0x330   : > { %v2138_v57 = vpop.f32.mrb[134].mxu0 }
 0x331   : > { %2288 = vst [vmem:[%s3318_s10 + $0x110] sm:$0xff] %v2136_v52  ;;  %v2139_v60 = vadd.f32 %v3311_v6, %v2138_v57  ;;  %v2140_v19 = vpop.f32.mrb[135].mxu0 }
 0x333   : > { %2289 = vst [vmem:[%s3318_s10 + $0x118] sm:$0xff] %v2139_v60 }
 0x336   : > { %v2143_v51 = vpop.f32.mrb[136].mxu0 }
 0x337   : > { %v2144_v16 = vadd.f32 %v3311_v6, %v2143_v51  ;;  %v2145_v22 = vpop.f32.mrb[137].mxu0 }
 0x338   : > { %v2146_v49 = vpop.f32.mrb[138].mxu0 }
 0x339   : > { %2290 = vst [vmem:[%s3318_s10 + $0x120] sm:$0xff] %v2144_v16  ;;  %v2147_v62 = vadd.f32 %v3311_v6, %v2146_v49  ;;  %v2148_v53 = vpop.f32.mrb[139].mxu0 }
 0x33b   : > { %2291 = vst [vmem:[%s3318_s10 + $0x128] sm:$0xff] %v2147_v62 }
 0x33e   : > { %v2151_v23 = vpop.f32.mrb[140].mxu0 }
 0x33f   : > { %v2152_v61 = vadd.f32 %v3311_v6, %v2151_v23  ;;  %v2153_v26 = vpop.f32.mrb[141].mxu0 }
 0x340   : > { %v2154_v56 = vpop.f32.mrb[142].mxu0 }
 0x341   : > { %2292 = vst [vmem:[%s3318_s10 + $0x130] sm:$0xff] %v2152_v61  ;;  %v2155_v15 = vadd.f32 %v3311_v6, %v2154_v56  ;;  %v2156_v59 = vpop.f32.mrb[143].mxu0 }
 0x343   : > { %2293 = vst [vmem:[%s3318_s10 + $0x138] sm:$0xff] %v2155_v15 }
 0x346   : > { %v2159_v31 = vpop.f32.mrb[144].mxu0 }
 0x347   : > { %v2160_v14 = vadd.f32 %v3311_v6, %v2159_v31  ;;  %v2161_v17 = vpop.f32.mrb[145].mxu0 }
 0x348   : > { %v2162_v34 = vpop.f32.mrb[146].mxu0 }
 0x349   : > { %2294 = vst [vmem:[%s3318_s10 + $0x140] sm:$0xff] %v2160_v14  ;;  %v2163_v3 = vadd.f32 %v3311_v6, %v2162_v34  ;;  %v2164_v43 = vpop.f32.mrb[147].mxu0 }
 0x34b   : > { %2295 = vst [vmem:[%s3318_s10 + $0x148] sm:$0xff] %v2163_v3 }
 0x34e   : > { %v2167_v46 = vpop.f32.mrb[148].mxu0 }
 0x34f   : > { %v2168_v58 = vadd.f32 %v3311_v6, %v2167_v46  ;;  %v2169_v25 = vpop.f32.mrb[149].mxu0 }
 0x350   : > { %v2170_v29 = vpop.f32.mrb[150].mxu0 }
 0x351   : > { %2296 = vst [vmem:[%s3318_s10 + $0x150] sm:$0xff] %v2168_v58  ;;  %v2171_v1 = vadd.f32 %v3311_v6, %v2170_v29  ;;  %v2172_v7 = vpop.f32.mrb[151].mxu0 }
 0x353   : > { %2297 = vst [vmem:[%s3318_s10 + $0x158] sm:$0xff] %v2171_v1 }
 0x356   : > { %v2175_v50 = vpop.f32.mrb[152].mxu0 }
 0x357   : > { %v2176_v55 = vadd.f32 %v3311_v6, %v2175_v50  ;;  %v2177_v35 = vpop.f32.mrb[153].mxu0 }
 0x358   : > { %v2178_v38 = vpop.f32.mrb[154].mxu0 }
 0x359   : > { %2298 = vst [vmem:[%s3318_s10 + $0x160] sm:$0xff] %v2176_v55  ;;  %v2179_v27 = vadd.f32 %v3311_v6, %v2178_v38  ;;  %v2180_v63 = vpop.f32.mrb[155].mxu0 }
 0x35b   : > { %2299 = vst [vmem:[%s3318_s10 + $0x168] sm:$0xff] %v2179_v27 }
 0x35e   : > { %v2183_v0 = vpop.f32.mrb[156].mxu0 }
 0x35f   : > { %v2184_v5 = vadd.f32 %v3311_v6, %v2183_v0  ;;  %v2185_v8 = vpop.f32.mrb[157].mxu0 }
 0x360   : > { %v2186_v9 = vpop.f32.mrb[158].mxu0 }
 0x361   : > { %2300 = vst [vmem:[%s3318_s10 + $0x170] sm:$0xff] %v2184_v5  ;;  %v2187_v11 = vadd.f32 %v3311_v6, %v2186_v9  ;;  %v2188_v13 = vpop.f32.mrb[159].mxu0 }
 0x363   : > { %2301 = vst [vmem:[%s3318_s10 + $0x178] sm:$0xff] %v2187_v11 }
 0x366   : > { %v2191_v12 = vpop.f32.mrb[160].mxu0 }
 0x367   : > { %v2192_v18 = vadd.f32 %v3311_v6, %v2191_v12  ;;  %v2193_v21 = vpop.f32.mrb[161].mxu0 }
 0x368   : > { %v2194_v24 = vpop.f32.mrb[162].mxu0 }
 0x369   : > { %2302 = vst [vmem:[%s3318_s10 + $0x180] sm:$0xff] %v2192_v18  ;;  %v2195_v10 = vadd.f32 %v3311_v6, %v2194_v24  ;;  %v2196_v28 = vpop.f32.mrb[163].mxu0 }
 0x36b   : > { %2303 = vst [vmem:[%s3318_s10 + $0x188] sm:$0xff] %v2195_v10 }
 0x36e   : > { %v2199_v30 = vpop.f32.mrb[164].mxu0 }
 0x36f   : > { %v2200_v32 = vadd.f32 %v3311_v6, %v2199_v30  ;;  %v2201_v33 = vpop.f32.mrb[165].mxu0 }
 0x370   : > { %v2202_v36 = vpop.f32.mrb[166].mxu0 }
 0x371   : > { %2304 = vst [vmem:[%s3318_s10 + $0x190] sm:$0xff] %v2200_v32  ;;  %v2203_v20 = vadd.f32 %v3311_v6, %v2202_v36  ;;  %v2204_v37 = vpop.f32.mrb[167].mxu0 }
 0x373   : > { %2305 = vst [vmem:[%s3318_s10 + $0x198] sm:$0xff] %v2203_v20 }
 0x376   : > { %v2207_v48 = vpop.f32.mrb[168].mxu0 }
 0x377   : > { %v2208_v39 = vadd.f32 %v3311_v6, %v2207_v48  ;;  %v2209_v40 = vpop.f32.mrb[169].mxu0 }
 0x378   : > { %v2210_v41 = vpop.f32.mrb[170].mxu0 }
 0x379   : > { %2306 = vst [vmem:[%s3318_s10 + $0x1a0] sm:$0xff] %v2208_v39  ;;  %v2211_v42 = vadd.f32 %v3311_v6, %v2210_v41  ;;  %v2212_v2 = vpop.f32.mrb[171].mxu0 }
 0x37b   : > { %2307 = vst [vmem:[%s3318_s10 + $0x1a8] sm:$0xff] %v2211_v42 }
 0x37e   : > { %v2215_v44 = vpop.f32.mrb[172].mxu0 }
 0x37f   : > { %v2216_v45 = vadd.f32 %v3311_v6, %v2215_v44  ;;  %v2217_v4 = vpop.f32.mrb[173].mxu0 }
 0x380   : > { %v2218_v47 = vpop.f32.mrb[174].mxu0 }
 0x381   : > { %2308 = vst [vmem:[%s3318_s10 + $0x1b0] sm:$0xff] %v2216_v45  ;;  %v2219_v52 = vadd.f32 %v3311_v6, %v2218_v47  ;;  %v2220_v54 = vpop.f32.mrb[175].mxu0 }
 0x383   : > { %2309 = vst [vmem:[%s3318_s10 + $0x1b8] sm:$0xff] %v2219_v52 }
 0x386   : > { %v2223_v57 = vpop.f32.mrb[176].mxu0 }
 0x387   : > { %v2224_v60 = vadd.f32 %v3311_v6, %v2223_v57  ;;  %v2225_v19 = vpop.f32.mrb[177].mxu0 }
 0x388   : > { %v2226_v51 = vpop.f32.mrb[178].mxu0 }
 0x389   : > { %2310 = vst [vmem:[%s3318_s10 + $0x1c0] sm:$0xff] %v2224_v60  ;;  %v2227_v16 = vadd.f32 %v3311_v6, %v2226_v51  ;;  %v2228_v22 = vpop.f32.mrb[179].mxu0 }
 0x38b   : > { %2311 = vst [vmem:[%s3318_s10 + $0x1c8] sm:$0xff] %v2227_v16 }
 0x38e   : > { %v2231_v49 = vpop.f32.mrb[180].mxu0 }
 0x38f   : > { %v2232_v62 = vadd.f32 %v3311_v6, %v2231_v49  ;;  %v2233_v53 = vpop.f32.mrb[181].mxu0 }
 0x390   : > { %v2234_v23 = vpop.f32.mrb[182].mxu0 }
 0x391   : > { %2312 = vst [vmem:[%s3318_s10 + $0x1d0] sm:$0xff] %v2232_v62  ;;  %v2235_v61 = vadd.f32 %v3311_v6, %v2234_v23  ;;  %v2236_v26 = vpop.f32.mrb[183].mxu0 }
 0x393   : > { %2313 = vst [vmem:[%s3318_s10 + $0x1d8] sm:$0xff] %v2235_v61 }
 0x396   : > { %v2239_v56 = vpop.f32.mrb[184].mxu0 }
 0x397   : > { %v2240_v15 = vadd.f32 %v3311_v6, %v2239_v56  ;;  %v2241_v59 = vpop.f32.mrb[185].mxu0 }
 0x398   : > { %v2242_v31 = vpop.f32.mrb[186].mxu0 }
 0x399   : > { %2314 = vst [vmem:[%s3318_s10 + $0x1e0] sm:$0xff] %v2240_v15  ;;  %v2243_v14 = vadd.f32 %v3311_v6, %v2242_v31  ;;  %v2244_v17 = vpop.f32.mrb[187].mxu0 }
 0x39b   : > { %2315 = vst [vmem:[%s3318_s10 + $0x1e8] sm:$0xff] %v2243_v14 }
 0x39e   : > { %v2247_v34 = vpop.f32.mrb[188].mxu0 }
 0x39f   : > { %v2248_v3 = vadd.f32 %v3311_v6, %v2247_v34  ;;  %v2249_v43 = vpop.f32.mrb[189].mxu0 }
 0x3a0   : > { %v2250_v46 = vpop.f32.mrb[190].mxu0 }
 0x3a1   : > { %2316 = vst [vmem:[%s3318_s10 + $0x1f0] sm:$0xff] %v2248_v3  ;;  %v2251_v58 = vadd.f32 %v3311_v6, %v2250_v46  ;;  %v2252_v25 = vpop.f32.mrb[191].mxu0 }
 0x3a3   : > { %2317 = vst [vmem:[%s3318_s10 + $0x1f8] sm:$0xff] %v2251_v58 }
 0x3a4 PF: > { %s17_s24 = sadd.s32 1, %s2573_s24  }
 0x3a5   : > { %p14_p4 = scmp.ge.s32.totalorder %s17_s24, 6  }
 0x3a7   :  { %16 = sbr.rel (!%p14_p4) target bundleno = 1 (0x1), region = 78 }

// kernel: _bigan_mlp_jit.1
= control target key start
LH: loop header
LB: loop body
LE: loop exit
PB: predicated region body
PF: predicated region fallthrough
CT: control target
= control target key end

     0   :  { %s2616_s24 = smov 0   ;;  %s3467_s0 = inlined_call_operand.vmem [shape: f32[2048,64], index: 0, kind: input, shape index: {}]   ;;  %s3468_s1 = inlined_call_operand.vmem [shape: bf16[64,256], index: 1, kind: input, shape index: {}]   ;;  %s3469_s2 = inlined_call_operand.vmem [shape: f32[1,256], index: 2, kind: input, shape index: {}]   ;;  %s3470_s3 = inlined_call_operand.vmem [shape: bf16[256,256], index: 3, kind: input, shape index: {}]   ;;  %s3471_s4 = inlined_call_operand.vmem [shape: f32[1,256], index: 4, kind: input, shape index: {}]   ;;  %s3472_s5 = inlined_call_operand.vmem [shape: bf16[256,128], index: 5, kind: input, shape index: {}]   ;;  %s3473_s6 = inlined_call_operand.vmem [shape: f32[1,128], index: 6, kind: input, shape index: {}]   ;;  %s3474_s7 = inlined_call_operand.vmem [shape: f32[2048,128], index: 7, kind: output, shape index: {}]  }
   0x1 LB: > { %s2374_s25 = sadd.s32 4294967295, %s2573_s24   ;;  %p2378_p0 = scmp.ge.s32.totalorder %s2573_s24, 1  ;;  %s2573_s24 = sphi %s2616_s24, %s17_s24  }
   0x2   : > { %p238_p1 = scmp.lt.s32.totalorder %s2573_s24, 5 }
   0x4   : > { %p239_p2 = pnand %p2378_p0, %p238_p1 }
   0x5   : > { %v2491_v0 = vld [vmem:[%s3468_s1 + $0x4] ss:$8 sps:$4 sm:$0xff] (!%p239_p2)   ;;  %s2379_s28 = sshll.u32 (!%p239_p2), %s2374_s25, 6  ;;  %v2493_v1 = vld [vmem:[%s3468_s1] ss:$8 sps:$4 sm:$0xff] (!%p239_p2)   ;;  %v2575_v2 = vmov (!%p239_p2), 0  }
   0x6   : > { %242 = sbr.rel (%p239_p2) target bundleno = 932 (0x3a4), region = 48  ;;  %568 = vmatprep.mubr.bf16.mxu0 (!%p239_p2), %v2575_v2  ;;  %p271_p3 = scmp.lt.s32.totalorder (!%p239_p2), %s2379_s28, 255  ;;  %728 = vmatprep.mubr.bf16.mxu1 (!%p239_p2), %v2575_v2  ;;  %v2494_v3 = vld [vmem:[%s3468_s1 + $0x14] ss:$8 sps:$4 sm:$0xff] (!%p239_p2)   ;;  %v2496_v4 = vld [vmem:[%s3468_s1 + $0x10] ss:$8 sps:$4 sm:$0xff] (!%p239_p2)  }
   0x7   : > { %536 = vmatprep.subr.bf16.mxu0 (!%p239_p2), %v2491_v0  ;;  %2474 = vmatprep.subr.bf16.mxu1 (!%p239_p2), %v2491_v0  ;;  %v2497_v5 = vld [vmem:[%s3468_s1 + $0x24] ss:$8 sps:$4 sm:$0xff] (!%p239_p2)   ;;  %v2499_v6 = vld [vmem:[%s3468_s1 + $0x20] ss:$8 sps:$4 sm:$0xff] (!%p239_p2)   ;;  %v2500_v7 = vld [vmem:[%s3468_s1 + $0x34] ss:$8 sps:$4 sm:$0xff] (!%p239_p2)  }
   0x8   : > { %537 = vmatpush1.bf16.msra.mxu0 (!%p239_p2), %v2493_v1  ;;  %2478 = vmatpush1.bf16.msra.mxu1 (!%p239_p2), %v2493_v1  ;;  %v2502_v8 = vld [vmem:[%s3468_s1 + $0x30] ss:$8 sps:$4 sm:$0xff] (!%p239_p2)   ;;  %v2505_v11 = vld [vmem:[%s3470_s3 + $0x4] ss:$8 sps:$4 sm:$0xff] (!%p239_p2)   ;;  %vm439_vm0 = vcmask (!%p239_p2), 523264  }
   0x9   : > { %538 = vmatprep.subr.bf16.mxu0 (!%p239_p2), %v2494_v3  ;;  %2475 = vmatprep.subr.bf16.mxu1 (!%p239_p2), %v2494_v3  ;;  %v2503_v15 = vld [vmem:[%s3470_s3] ss:$8 sps:$4 sm:$0xff] (!%p239_p2)   ;;  %v2508_v18 = vld [vmem:[%s3470_s3 + $0x14] ss:$8 sps:$4 sm:$0xff] (!%p239_p2)   ;;  %v2506_v22 = vld [vmem:[%s3470_s3 + $0x10] ss:$8 sps:$4 sm:$0xff] (!%p239_p2)  }
   0xa   : > { %v2511_v23 = vld [vmem:[%s3470_s3 + $0x24] ss:$8 sps:$4 sm:$0xff] (!%p239_p2)   ;;  %v2509_v26 = vld [vmem:[%s3470_s3 + $0x20] ss:$8 sps:$4 sm:$0xff] (!%p239_p2)   ;;  %v2514_v27 = vld [vmem:[%s3470_s3 + $0x34] ss:$8 sps:$4 sm:$0xff] (!%p239_p2)  }
   0xb   : > { %v2512_v32 = vld [vmem:[%s3470_s3 + $0x30] ss:$8 sps:$4 sm:$0xff] (!%p239_p2)   ;;  %v2517_v33 = vld [vmem:[%s3470_s3 + $0x44] ss:$8 sps:$4 sm:$0xff] (!%p239_p2)   ;;  %v2515_v36 = vld [vmem:[%s3470_s3 + $0x40] ss:$8 sps:$4 sm:$0xff] (!%p239_p2)  }
   0xc   : > { %539 = vmatpush1.bf16.msra.mxu0 (!%p239_p2), %v2496_v4  ;;  %2479 = vmatpush1.bf16.msra.mxu1 (!%p239_p2), %v2496_v4  ;;  %v2520_v37 = vld [vmem:[%s3470_s3 + $0x54] ss:$8 sps:$4 sm:$0xff] (!%p239_p2)   ;;  %v2518_v42 = vld [vmem:[%s3470_s3 + $0x50] ss:$8 sps:$4 sm:$0xff] (!%p239_p2)   ;;  %v2523_v43 = vld [vmem:[%s3470_s3 + $0x64] ss:$8 sps:$4 sm:$0xff] (!%p239_p2)  }
   0xd   : > { %s3476_s28 = smov (!%p271_p3, %s2379_s28), 255  ;;  %540 = vmatprep.subr.bf16.mxu0 %v2497_v5  ;;  %2476 = vmatprep.subr.bf16.mxu1 %v2497_v5  ;;  %v2521_v46 = vld [vmem:[%s3470_s3 + $0x60] ss:$8 sps:$4 sm:$0xff]   ;;  %v2526_v47 = vld [vmem:[%s3470_s3 + $0x74] ss:$8 sps:$4 sm:$0xff]  }
   0xe   : > { %s2380_s14 = sshll.u32 %s3476_s28, 3  ;;  %v2524_v52 = vld [vmem:[%s3470_s3 + $0x70] ss:$8 sps:$4 sm:$0xff]   ;;  %v2529_v53 = vld [vmem:[%s3470_s3 + $0x84] ss:$8 sps:$4 sm:$0xff]  }
   0xf   : > { %s2655_s21 = scalar_lea.vmem %s3467_s0, %s2380_s14  ;;  %v2527_v56 = vld [vmem:[%s3470_s3 + $0x80] ss:$8 sps:$4 sm:$0xff]   ;;  %v2532_v57 = vld [vmem:[%s3470_s3 + $0x94] ss:$8 sps:$4 sm:$0xff]   ;;  %v2530_v62 = vld [vmem:[%s3470_s3 + $0x90] ss:$8 sps:$4 sm:$0xff]   ;;  %s3318_s10 = scalar_lea.vmem %s3474_s7, %s2380_s14 }
  0x10   : > { %541 = vmatpush1.bf16.msra.mxu0 %v2499_v6  ;;  %v283_v9 = vld [vmem:[%s2655_s21] sm:$0xff]  ;;  %v284_v10 = vld [vmem:[%s2655_s21 + $0x8] sm:$0xff]  ;;  %2480 = vmatpush1.bf16.msra.mxu1 %v2499_v6  ;;  %v285_v17 = vld [vmem:[%s2655_s21 + $0x10] sm:$0xff] }
  0x11   : > { %542 = vmatprep.subr.bf16.mxu0 %v2500_v7  ;;  %2477 = vmatprep.subr.bf16.mxu1 %v2500_v7  ;;  %v347_v12 = vpack.c.bf16 %v284_v10, %v283_v9  ;;  %v315_v13 = vld [vmem:[%s2655_s21 + $0x100] sm:$0xff]  ;;  %v316_v14 = vld [vmem:[%s2655_s21 + $0x108] sm:$0xff]  ;;  %v286_v19 = vld [vmem:[%s2655_s21 + $0x18] sm:$0xff] }
  0x12   : > { %v363_v16 = vpack.c.bf16 %v316_v14, %v315_v13  ;;  %v317_v20 = vld [vmem:[%s2655_s21 + $0x110] sm:$0xff]  ;;  %v318_v21 = vld [vmem:[%s2655_s21 + $0x118] sm:$0xff]  ;;  %v348_v24 = vpack.c.bf16 %v286_v19, %v285_v17  ;;  %v287_v28 = vld [vmem:[%s2655_s21 + $0x20] sm:$0xff] }
  0x13   : > { %v364_v25 = vpack.c.bf16 %v318_v21, %v317_v20  ;;  %v288_v29 = vld [vmem:[%s2655_s21 + $0x28] sm:$0xff]  ;;  %v319_v30 = vld [vmem:[%s2655_s21 + $0x120] sm:$0xff]  ;;  %v289_v38 = vld [vmem:[%s2655_s21 + $0x30] sm:$0xff] }
  0x14   : > { %543 = vmatpush1.bf16.msra.mxu0 %v2502_v8  ;;  %2481 = vmatpush1.bf16.msra.mxu1 %v2502_v8  ;;  %v320_v31 = vld [vmem:[%s2655_s21 + $0x128] sm:$0xff]  ;;  %v349_v34 = vpack.c.bf16 %v288_v29, %v287_v28  ;;  %v290_v39 = vld [vmem:[%s2655_s21 + $0x38] sm:$0xff]  ;;  %v321_v40 = vld [vmem:[%s2655_s21 + $0x130] sm:$0xff] }
  0x15   : > { %1285 = vmatprep.subr.bf16.mxu1 %v2505_v11  ;;  %1965 = vmatprep.subr.bf16.mxu0 %v2575_v2  ;;  %v365_v35 = vpack.c.bf16 %v320_v31, %v319_v30  ;;  %v322_v41 = vld [vmem:[%s2655_s21 + $0x138] sm:$0xff]  ;;  %v350_v44 = vpack.c.bf16 %v290_v39, %v289_v38  ;;  %v291_v48 = vld [vmem:[%s2655_s21 + $0x40] sm:$0xff]  ;;  %v292_v49 = vld [vmem:[%s2655_s21 + $0x48] sm:$0xff] }
  0x16   : > { %v366_v45 = vpack.c.bf16 %v322_v41, %v321_v40  ;;  %v323_v50 = vld [vmem:[%s2655_s21 + $0x140] sm:$0xff]  ;;  %v324_v51 = vld [vmem:[%s2655_s21 + $0x148] sm:$0xff]  ;;  %v351_v54 = vpack.c.bf16 %v292_v49, %v291_v48  ;;  %v293_v58 = vld [vmem:[%s2655_s21 + $0x50] sm:$0xff] }
  0x17   : > { %2391 = vmatmul.mubr.msk.bf16.vlgmr.msra.gmra.mrb[0].mxu0 %vm439_vm0, %v347_v12  ;;  %2407 = vmatmul.mubr.msk.bf16.vlgmr.msra.gmra.mrb[0].mxu1 %vm439_vm0, %v363_v16  ;;  %v367_v55 = vpack.c.bf16 %v324_v51, %v323_v50  ;;  %v294_v59 = vld [vmem:[%s2655_s21 + $0x58] sm:$0xff]  ;;  %v325_v60 = vld [vmem:[%s2655_s21 + $0x150] sm:$0xff]  ;;  %v2535_v63 = vld [vmem:[%s3470_s3 + $0xa4] ss:$8 sps:$4 sm:$0xff]  }
  0x18   : > { %578 = vmatprep.mubr.bf16.mxu0 %v2575_v2  ;;  %1286 = vmatpush1.bf16.msra.mxu1 %v2503_v15  ;;  %v326_v61 = vld [vmem:[%s2655_s21 + $0x158] sm:$0xff]  ;;  %v352_v0 = vpack.c.bf16 %v294_v59, %v293_v58  ;;  %v2533_v3 = vld [vmem:[%s3470_s3 + $0xa0] ss:$8 sps:$4 sm:$0xff]   ;;  %v2541_v10 = vld [vmem:[%s3470_s3 + $0xc4] ss:$8 sps:$4 sm:$0xff]  }
  0x19   : > { %738 = vmatprep.mubr.bf16.mxu1 %v2575_v2  ;;  %1287 = vmatprep.subr.bf16.mxu1 %v2508_v18  ;;  %v368_v1 = vpack.c.bf16 %v326_v61, %v325_v60  ;;  %v2538_v4 = vld [vmem:[%s3470_s3 + $0xb4] ss:$8 sps:$4 sm:$0xff]   ;;  %v295_v5 = vld [vmem:[%s2655_s21 + $0x60] sm:$0xff]  ;;  %v296_v6 = vld [vmem:[%s2655_s21 + $0x68] sm:$0xff] }
  0x1a   : > { %v327_v7 = vld [vmem:[%s2655_s21 + $0x160] sm:$0xff]  ;;  %v328_v8 = vld [vmem:[%s2655_s21 + $0x168] sm:$0xff]  ;;  %v2536_v9 = vld [vmem:[%s3470_s3 + $0xb0] ss:$8 sps:$4 sm:$0xff]   ;;  %v353_v11 = vpack.c.bf16 %v296_v6, %v295_v5 }
  0x1b   : > { %v369_v12 = vpack.c.bf16 %v328_v8, %v327_v7  ;;  %v2539_v13 = vld [vmem:[%s3470_s3 + $0xc0] ss:$8 sps:$4 sm:$0xff]   ;;  %v2544_v14 = vld [vmem:[%s3470_s3 + $0xd4] ss:$8 sps:$4 sm:$0xff]   ;;  %v2542_v19 = vld [vmem:[%s3470_s3 + $0xd0] ss:$8 sps:$4 sm:$0xff]  }
  0x1c   : > { %1288 = vmatpush1.bf16.msra.mxu1 %v2506_v22  ;;  %v297_v15 = vld [vmem:[%s2655_s21 + $0x70] sm:$0xff]  ;;  %v298_v16 = vld [vmem:[%s2655_s21 + $0x78] sm:$0xff]  ;;  %v2547_v20 = vld [vmem:[%s3470_s3 + $0xe4] ss:$8 sps:$4 sm:$0xff]  }
  0x1d   : > { %1289 = vmatprep.subr.bf16.mxu1 %v2511_v23  ;;  %v329_v17 = vld [vmem:[%s2655_s21 + $0x170] sm:$0xff]  ;;  %v330_v18 = vld [vmem:[%s2655_s21 + $0x178] sm:$0xff]  ;;  %v354_v21 = vpack.c.bf16 %v298_v16, %v297_v15  ;;  %v2545_v23 = vld [vmem:[%s3470_s3 + $0xe0] ss:$8 sps:$4 sm:$0xff]  }
  0x1e   : > { %v370_v22 = vpack.c.bf16 %v330_v18, %v329_v17  ;;  %v301_v30 = vld [vmem:[%s2655_s21 + $0x90] sm:$0xff]  ;;  %v302_v31 = vld [vmem:[%s2655_s21 + $0x98] sm:$0xff]  ;;  %v335_v38 = vld [vmem:[%s2655_s21 + $0x1a0] sm:$0xff] }
  0x1f   : > { %2392 = vmatmul.mubr.msk.bf16.gmra.mrb[4].mxu0 %vm439_vm0, %v348_v24  ;;  %2408 = vmatmul.mubr.msk.bf16.gmra.mrb[4].mxu1 %vm439_vm0, %v364_v25  ;;  %v299_v24 = vld [vmem:[%s2655_s21 + $0x80] sm:$0xff]  ;;  %v300_v25 = vld [vmem:[%s2655_s21 + $0x88] sm:$0xff]  ;;  %v2550_v50 = vld [vmem:[%s3470_s3 + $0xf4] ss:$8 sps:$4 sm:$0xff]  }
  0x20   : > { %588 = vmatprep.mubr.bf16.mxu0 %v2575_v2  ;;  %748 = vmatprep.mubr.bf16.mxu1 %v2575_v2  ;;  %v355_v28 = vpack.c.bf16 %v300_v25, %v299_v24  ;;  %v336_v39 = vld [vmem:[%s2655_s21 + $0x1a8] sm:$0xff]  ;;  %v307_v48 = vld [vmem:[%s2655_s21 + $0xc0] sm:$0xff]  ;;  %v341_v58 = vld [vmem:[%s2655_s21 + $0x1d0] sm:$0xff] }
  0x21   : > { %1290 = vmatpush1.bf16.msra.mxu1 %v2509_v26  ;;  %v331_v26 = vld [vmem:[%s2655_s21 + $0x180] sm:$0xff]  ;;  %v373_v41 = vpack.c.bf16 %v336_v39, %v335_v38  ;;  %v308_v49 = vld [vmem:[%s2655_s21 + $0xc8] sm:$0xff]  ;;  %v342_v59 = vld [vmem:[%s2655_s21 + $0x1d8] sm:$0xff] }
  0x22   : > { %1291 = vmatprep.subr.bf16.mxu1 %v2514_v27  ;;  %v332_v27 = vld [vmem:[%s2655_s21 + $0x188] sm:$0xff]  ;;  %v339_v51 = vld [vmem:[%s2655_s21 + $0x1c0] sm:$0xff]  ;;  %v376_v61 = vpack.c.bf16 %v342_v59, %v341_v58  ;;  %v313_v5 = vld [vmem:[%s2655_s21 + $0xf0] sm:$0xff] }
  0x23   : > { %v371_v29 = vpack.c.bf16 %v332_v27, %v331_v26  ;;  %v314_v6 = vld [vmem:[%s2655_s21 + $0xf8] sm:$0xff]  ;;  %v345_v7 = vld [vmem:[%s2655_s21 + $0x1f0] sm:$0xff]  ;;  %v387_v16 = vld [vmem:[%s3469_s2] sm:$0x3] }
  0x24   : > { %v346_v8 = vld [vmem:[%s2655_s21 + $0x1f8] sm:$0xff]  ;;  %v2553_v18 = vld [vmem:[%s3472_s5 + $0x10] sm:$0xff]  }
  0x25   : > { %1292 = vmatpush1.bf16.msra.mxu1 %v2512_v32  ;;  %v333_v32 = vld [vmem:[%s2655_s21 + $0x190] sm:$0xff] }
  0x26   : > { %1293 = vmatprep.subr.bf16.mxu1 %v2517_v33  ;;  %v334_v33 = vld [vmem:[%s2655_s21 + $0x198] sm:$0xff] }
  0x27   : > { %2393 = vmatmul.mubr.msk.bf16.gmra.mrb[8].mxu0 %vm439_vm0, %v349_v34  ;;  %2409 = vmatmul.mubr.msk.bf16.gmra.mrb[8].mxu1 %vm439_vm0, %v365_v35  ;;  %v356_v34 = vpack.c.bf16 %v302_v31, %v301_v30  ;;  %v372_v35 = vpack.c.bf16 %v334_v33, %v333_v32 }
  0x28   : > { %598 = vmatprep.mubr.bf16.mxu0 %v2575_v2  ;;  %758 = vmatprep.mubr.bf16.mxu1 %v2575_v2 }
  0x29   : > { %1294 = vmatpush1.bf16.msra.mxu1 %v2515_v36  ;;  %v303_v36 = vld [vmem:[%s2655_s21 + $0xa0] sm:$0xff] }
  0x2a   : > { %1295 = vmatprep.subr.bf16.mxu1 %v2520_v37  ;;  %v304_v37 = vld [vmem:[%s2655_s21 + $0xa8] sm:$0xff] }
  0x2b   : > { %v357_v40 = vpack.c.bf16 %v304_v37, %v303_v36 }
  0x2d   : > { %1296 = vmatpush1.bf16.msra.mxu1 %v2518_v42  ;;  %v305_v42 = vld [vmem:[%s2655_s21 + $0xb0] sm:$0xff] }
  0x2e   : > { %1297 = vmatprep.subr.bf16.mxu1 %v2523_v43  ;;  %v306_v43 = vld [vmem:[%s2655_s21 + $0xb8] sm:$0xff] }
  0x2f   : > { %2394 = vmatmul.mubr.msk.bf16.gmra.mrb[12].mxu0 %vm439_vm0, %v350_v44  ;;  %2410 = vmatmul.mubr.msk.bf16.gmra.mrb[12].mxu1 %vm439_vm0, %v366_v45  ;;  %v337_v44 = vld [vmem:[%s2655_s21 + $0x1b0] sm:$0xff]  ;;  %v338_v45 = vld [vmem:[%s2655_s21 + $0x1b8] sm:$0xff] }
  0x30   : > { %608 = vmatprep.mubr.bf16.mxu0 %v2575_v2  ;;  %768 = vmatprep.mubr.bf16.mxu1 %v2575_v2 }
  0x31   : > { %1298 = vmatpush1.bf16.msra.mxu1 %v2521_v46  ;;  %v358_v46 = vpack.c.bf16 %v306_v43, %v305_v42 }
  0x32   : > { %1299 = vmatprep.subr.bf16.mxu1 %v2526_v47  ;;  %v374_v47 = vpack.c.bf16 %v338_v45, %v337_v44 }
  0x35   : > { %1300 = vmatpush1.bf16.msra.mxu1 %v2524_v52  ;;  %v340_v52 = vld [vmem:[%s2655_s21 + $0x1c8] sm:$0xff] }
  0x36   : > { %1301 = vmatprep.subr.bf16.mxu1 %v2529_v53  ;;  %v2548_v53 = vld [vmem:[%s3470_s3 + $0xf0] ss:$8 sps:$4 sm:$0xff]  }
  0x37   : > { %2395 = vmatmul.mubr.msk.bf16.gmra.mrb[16].mxu0 %vm439_vm0, %v351_v54  ;;  %2411 = vmatmul.mubr.msk.bf16.gmra.mrb[16].mxu1 %vm439_vm0, %v367_v55  ;;  %v359_v54 = vpack.c.bf16 %v308_v49, %v307_v48  ;;  %v375_v55 = vpack.c.bf16 %v340_v52, %v339_v51 }
  0x38   : > { %618 = vmatprep.mubr.bf16.mxu0 %v2575_v2  ;;  %778 = vmatprep.mubr.bf16.mxu1 %v2575_v2 }
  0x39   : > { %1302 = vmatpush1.bf16.msra.mxu1 %v2527_v56  ;;  %v309_v56 = vld [vmem:[%s2655_s21 + $0xd0] sm:$0xff] }
  0x3a   : > { %1303 = vmatprep.subr.bf16.mxu1 %v2532_v57  ;;  %v310_v57 = vld [vmem:[%s2655_s21 + $0xd8] sm:$0xff] }
  0x3b   : > { %v360_v60 = vpack.c.bf16 %v310_v57, %v309_v56 }
  0x3d   : > { %1304 = vmatpush1.bf16.msra.mxu1 %v2530_v62  ;;  %v311_v62 = vld [vmem:[%s2655_s21 + $0xe0] sm:$0xff] }
  0x3e   : > { %1305 = vmatprep.subr.bf16.mxu1 %v2535_v63  ;;  %v312_v63 = vld [vmem:[%s2655_s21 + $0xe8] sm:$0xff] }
  0x3f   : > { %2396 = vmatmul.mubr.msk.bf16.gmra.mrb[20].mxu0 %vm439_vm0, %v352_v0  ;;  %2412 = vmatmul.mubr.msk.bf16.gmra.mrb[20].mxu1 %vm439_vm0, %v368_v1  ;;  %v343_v0 = vld [vmem:[%s2655_s21 + $0x1e0] sm:$0xff]  ;;  %v344_v1 = vld [vmem:[%s2655_s21 + $0x1e8] sm:$0xff] }
  0x40   : > { %628 = vmatprep.mubr.bf16.mxu0 %v2575_v2  ;;  %788 = vmatprep.mubr.bf16.mxu1 %v2575_v2 }
  0x41   : > { %1306 = vmatpush1.bf16.msra.mxu1 %v2533_v3  ;;  %v361_v3 = vpack.c.bf16 %v312_v63, %v311_v62 }
  0x42   : > { %1307 = vmatprep.subr.bf16.mxu1 %v2538_v4  ;;  %v377_v4 = vpack.c.bf16 %v344_v1, %v343_v0 }
  0x45   : > { %1308 = vmatpush1.bf16.msra.mxu1 %v2536_v9  ;;  %v362_v9 = vpack.c.bf16 %v314_v6, %v313_v5  ;;  %v2556_v6 = vld [vmem:[%s3472_s5 + $0x28] sm:$0xff]  }
  0x46   : > { %1309 = vmatprep.subr.bf16.mxu1 %v2541_v10  ;;  %v378_v10 = vpack.c.bf16 %v346_v8, %v345_v7 }
  0x47   : > { %2397 = vmatmul.mubr.msk.bf16.gmra.mrb[24].mxu0 %vm439_vm0, %v353_v11  ;;  %2413 = vmatmul.mubr.msk.bf16.gmra.mrb[24].mxu1 %vm439_vm0, %v369_v12  ;;  %v2551_v11 = vld [vmem:[%s3472_s5] sm:$0xff]   ;;  %v389_v12 = vlaneseq }
  0x48   : > { %638 = vmatprep.mubr.bf16.mxu0 %v2575_v2  ;;  %798 = vmatprep.mubr.bf16.mxu1 %v2575_v2 }
  0x49   : > { %1310 = vmatpush1.bf16.msra.mxu1 %v2539_v13  ;;  %1966 = vmatpush1.bf16.msra.mxu0 %v2551_v11  ;;  %v2552_v13 = vld [vmem:[%s3472_s5 + $0x8] sm:$0xff]  }
  0x4a   : > { %1311 = vmatprep.subr.bf16.mxu1 %v2544_v14  ;;  %1967 = vmatprep.subr.bf16.mxu0 %v2575_v2  ;;  %v2890_v14 = vshrl.u32 %v389_v12, 7 }
  0x4c   : > { %v391_v15 = vsub.s32 0, %v2890_v14  ;;  %v395_v17 = vsub.s32 1, %v2890_v14 }
  0x4d   : > { %1312 = vmatpush1.bf16.msra.mxu1 %v2542_v19  ;;  %1968 = vmatpush1.bf16.msra.mxu0 %v2552_v13 }
  0x4e   : > { %1313 = vmatprep.subr.bf16.mxu1 %v2547_v20  ;;  %1969 = vmatprep.subr.bf16.mxu0 %v2575_v2  ;;  %v2903_v19 = vrot.slane %v387_v16, %v391_v15  ;;  %v2907_v20 = vrot.slane %v387_v16, %v395_v17 }
  0x4f   : > { %2398 = vmatmul.mubr.msk.bf16.gmra.mrb[28].mxu0 %vm439_vm0, %v354_v21  ;;  %2414 = vmatmul.mubr.msk.bf16.gmra.mrb[28].mxu1 %vm439_vm0, %v370_v22 }
  0x50   : > { %648 = vmatprep.mubr.bf16.mxu0 %v2575_v2  ;;  %808 = vmatprep.mubr.bf16.mxu1 %v2575_v2 }
  0x51   : > { %1314 = vmatpush1.bf16.msra.mxu1 %v2545_v23  ;;  %1970 = vmatpush1.bf16.msra.mxu0 %v2553_v18  ;;  %v2554_v23 = vld [vmem:[%s3472_s5 + $0x18] sm:$0xff]  }
  0x52   : > { %1315 = vmatprep.subr.bf16.mxu1 %v2550_v50  ;;  %1971 = vmatprep.subr.bf16.mxu0 %v2575_v2 }
  0x55   : > { %1316 = vmatpush1.bf16.msra.mxu1 %v2548_v53  ;;  %1972 = vmatpush1.bf16.msra.mxu0 %v2554_v23 }
  0x56   : > { %1973 = vmatprep.subr.bf16.mxu0 %v2575_v2 }
  0x57   : > { %2399 = vmatmul.mubr.msk.bf16.gmra.mrb[32].mxu0 %vm439_vm0, %v355_v28  ;;  %2415 = vmatmul.mubr.msk.bf16.gmra.mrb[32].mxu1 %vm439_vm0, %v371_v29 }
  0x58   : > { %658 = vmatprep.mubr.bf16.mxu0 %v2575_v2  ;;  %818 = vmatprep.mubr.bf16.mxu1 %v2575_v2 }
  0x5f   : > { %2400 = vmatmul.mubr.msk.bf16.gmra.mrb[36].mxu0 %vm439_vm0, %v356_v34  ;;  %2416 = vmatmul.mubr.msk.bf16.gmra.mrb[36].mxu1 %vm439_vm0, %v372_v35 }
  0x60   : > { %668 = vmatprep.mubr.bf16.mxu0 %v2575_v2  ;;  %828 = vmatprep.mubr.bf16.mxu1 %v2575_v2 }
  0x67   : > { %2401 = vmatmul.mubr.msk.bf16.gmra.mrb[40].mxu0 %vm439_vm0, %v357_v40  ;;  %2417 = vmatmul.mubr.msk.bf16.gmra.mrb[40].mxu1 %vm439_vm0, %v373_v41  ;;  %v2555_v40 = vld [vmem:[%s3472_s5 + $0x20] sm:$0xff]  }
  0x68   : > { %678 = vmatprep.mubr.bf16.mxu0 %v2575_v2  ;;  %838 = vmatprep.mubr.bf16.mxu1 %v2575_v2 }
  0x69   : > { %1974 = vmatpush1.bf16.msra.mxu0 %v2555_v40  ;;  %v2557_v40 = vld [vmem:[%s3472_s5 + $0x30] sm:$0xff]  }
  0x6a   : > { %1975 = vmatprep.subr.bf16.mxu0 %v2575_v2 }
  0x6d   : > { %1976 = vmatpush1.bf16.msra.mxu0 %v2556_v6 }
  0x6e   : > { %1977 = vmatprep.subr.bf16.mxu0 %v2575_v2 }
  0x6f   : > { %2402 = vmatmul.mubr.msk.bf16.gmra.mrb[44].mxu0 %vm439_vm0, %v358_v46  ;;  %2418 = vmatmul.mubr.msk.bf16.gmra.mrb[44].mxu1 %vm439_vm0, %v374_v47 }
  0x70   : > { %688 = vmatprep.mubr.bf16.mxu0 %v2575_v2  ;;  %848 = vmatprep.mubr.bf16.mxu1 %v2575_v2 }
  0x71   : > { %1978 = vmatpush1.bf16.msra.mxu0 %v2557_v40 }
  0x72   : > { %1979 = vmatprep.subr.bf16.mxu0 %v2575_v2 }
  0x77   : > { %2403 = vmatmul.mubr.msk.bf16.gmra.mrb[48].mxu0 %vm439_vm0, %v359_v54  ;;  %2419 = vmatmul.mubr.msk.bf16.gmra.mrb[48].mxu1 %vm439_vm0, %v375_v55 }
  0x78   : > { %698 = vmatprep.mubr.bf16.mxu0 %v2575_v2  ;;  %858 = vmatprep.mubr.bf16.mxu1 %v2575_v2 }
  0x7f   : > { %2404 = vmatmul.mubr.msk.bf16.gmra.mrb[52].mxu0 %vm439_vm0, %v360_v60  ;;  %2420 = vmatmul.mubr.msk.bf16.gmra.mrb[52].mxu1 %vm439_vm0, %v376_v61 }
  0x80   : > { %708 = vmatprep.mubr.bf16.mxu0 %v2575_v2  ;;  %868 = vmatprep.mubr.bf16.mxu1 %v2575_v2 }
  0x87   : > { %2405 = vmatmul.mubr.msk.bf16.gmra.mrb[56].mxu0 %vm439_vm0, %v361_v3  ;;  %2421 = vmatmul.mubr.msk.bf16.gmra.mrb[56].mxu1 %vm439_vm0, %v377_v4 }
  0x88   : > { %718 = vmatprep.mubr.bf16.mxu0 %v2575_v2  ;;  %878 = vmatprep.mubr.bf16.mxu1 %v2575_v2 }
  0x8f   : > { %2406 = vmatmul.mubr.msk.bf16.gmra.mrb[60].mxu0 %vm439_vm0, %v362_v9  ;;  %2422 = vmatmul.mubr.msk.bf16.gmra.mrb[60].mxu1 %vm439_vm0, %v378_v10 }
  0xea   : > { %v570_v21 = vpop.f32.mrb[0].mxu0  ;;  %v730_v22 = vpop.f32.mrb[0].mxu1 }
  0xeb   : > { %v571_v24 = vadd.f32 %v570_v21, %v2903_v19  ;;  %v572_v25 = vpop.f32.mrb[1].mxu0  ;;  %v731_v26 = vadd.f32 %v730_v22, %v2903_v19  ;;  %v732_v27 = vpop.f32.mrb[1].mxu1 }
  0xec   : > { %v573_v28 = vadd.f32 %v572_v25, %v2907_v20  ;;  %v574_v29 = vpop.f32.mrb[2].mxu0  ;;  %v733_v30 = vadd.f32 %v732_v27, %v2907_v20  ;;  %v734_v31 = vpop.f32.mrb[2].mxu1 }
  0xed   : > { %v575_v32 = vadd.f32 %v574_v29, %v2903_v19  ;;  %v576_v33 = vpop.f32.mrb[3].mxu0  ;;  %v953_v34 = vmax.f32 %v731_v26, 0.0  ;;  %v735_v35 = vadd.f32 %v734_v31, %v2903_v19  ;;  %v736_v36 = vpop.f32.mrb[3].mxu1  ;;  %v889_v41 = vmax.f32 %v571_v24, 0.0 }
  0xee   : > { %v577_v37 = vadd.f32 %v576_v33, %v2907_v20  ;;  %v954_v38 = vmax.f32 %v733_v30, 0.0  ;;  %v737_v39 = vadd.f32 %v736_v36, %v2907_v20  ;;  %v890_v44 = vmax.f32 %v573_v28, 0.0 }
  0xef   : > { %v891_v42 = vmax.f32 %v575_v32, 0.0  ;;  %v955_v43 = vmax.f32 %v735_v35, 0.0 }
  0xf0   : > { %v892_v45 = vmax.f32 %v577_v37, 0.0  ;;  %v956_v46 = vmax.f32 %v737_v39, 0.0 }
  0xf1   : > { %v1017_v47 = vpack.c.bf16 %v891_v42, %v889_v41  ;;  %v2925_v48 = vpack.c.bf16 %v955_v43, %v953_v34 }
  0xf2   : > { %v1018_v49 = vpack.c.bf16 %v892_v45, %v890_v44  ;;  %v580_v50 = vpop.f32.mrb[4].mxu0  ;;  %v2928_v51 = vpack.c.bf16 %v956_v46, %v954_v38  ;;  %v740_v52 = vpop.f32.mrb[4].mxu1 }
  0xf3   : > { %v581_v53 = vadd.f32 %v580_v50, %v2903_v19  ;;  %v582_v54 = vpop.f32.mrb[5].mxu0  ;;  %v741_v55 = vadd.f32 %v740_v52, %v2903_v19  ;;  %v742_v56 = vpop.f32.mrb[5].mxu1 }
  0xf4   : > { %v583_v57 = vadd.f32 %v582_v54, %v2907_v20  ;;  %v584_v58 = vpop.f32.mrb[6].mxu0  ;;  %1317 = vmatprep.mubr.bf16.mxu1 %v1018_v49  ;;  %v743_v59 = vadd.f32 %v742_v56, %v2907_v20  ;;  %v744_v60 = vpop.f32.mrb[6].mxu1 }
  0xf5   : > { %v585_v61 = vadd.f32 %v584_v58, %v2903_v19  ;;  %v586_v62 = vpop.f32.mrb[7].mxu0  ;;  %1318 = vmatmul.mubr.bf16.vlgmr.msra.gmra.mrb[64].mxu1 %v1017_v47  ;;  %v957_v63 = vmax.f32 %v741_v55, 0.0  ;;  %v745_v0 = vadd.f32 %v744_v60, %v2903_v19  ;;  %v746_v1 = vpop.f32.mrb[7].mxu1  ;;  %v893_v7 = vmax.f32 %v581_v53, 0.0 }
  0xf6   : > { %v587_v3 = vadd.f32 %v586_v62, %v2907_v20  ;;  %v958_v4 = vmax.f32 %v743_v59, 0.0  ;;  %v747_v5 = vadd.f32 %v746_v1, %v2907_v20  ;;  %v894_v10 = vmax.f32 %v583_v57, 0.0 }
  0xf7   : > { %v895_v8 = vmax.f32 %v585_v61, 0.0  ;;  %v959_v9 = vmax.f32 %v745_v0, 0.0 }
  0xf8   : > { %v896_v11 = vmax.f32 %v587_v3, 0.0  ;;  %v960_v12 = vmax.f32 %v747_v5, 0.0 }
  0xf9   : > { %v1019_v13 = vpack.c.bf16 %v895_v8, %v893_v7  ;;  %v2941_v16 = vpack.c.bf16 %v959_v9, %v957_v63  ;;  %v2558_v8 = vld [vmem:[%s3472_s5 + $0x38] sm:$0xff]  }
  0xfa   : > { %v1020_v18 = vpack.c.bf16 %v896_v11, %v894_v10  ;;  %v590_v21 = vpop.f32.mrb[8].mxu0  ;;  %v2944_v22 = vpack.c.bf16 %v960_v12, %v958_v4  ;;  %v750_v23 = vpop.f32.mrb[8].mxu1  ;;  %1980 = vmatpush1.bf16.msra.mxu0 %v2558_v8 }
  0xfb   : > { %v591_v24 = vadd.f32 %v590_v21, %v2903_v19  ;;  %v592_v25 = vpop.f32.mrb[9].mxu0  ;;  %v751_v26 = vadd.f32 %v750_v23, %v2903_v19  ;;  %v752_v27 = vpop.f32.mrb[9].mxu1  ;;  %1981 = vmatprep.subr.bf16.mxu0 %v2575_v2 }
  0xfc   : > { %v593_v28 = vadd.f32 %v592_v25, %v2907_v20  ;;  %v594_v29 = vpop.f32.mrb[10].mxu0  ;;  %1327 = vmatprep.mubr.bf16.mxu1 %v1020_v18  ;;  %v753_v30 = vadd.f32 %v752_v27, %v2907_v20  ;;  %v754_v31 = vpop.f32.mrb[10].mxu1 }
  0xfd   : > { %v595_v32 = vadd.f32 %v594_v29, %v2903_v19  ;;  %v596_v33 = vpop.f32.mrb[11].mxu0  ;;  %1328 = vmatmul.mubr.bf16.gmra.mrb[68].mxu1 %v1019_v13  ;;  %v961_v34 = vmax.f32 %v751_v26, 0.0  ;;  %v755_v35 = vadd.f32 %v754_v31, %v2903_v19  ;;  %v756_v36 = vpop.f32.mrb[11].mxu1  ;;  %v897_v41 = vmax.f32 %v591_v24, 0.0 }
  0xfe   : > { %v597_v37 = vadd.f32 %v596_v33, %v2907_v20  ;;  %v962_v38 = vmax.f32 %v753_v30, 0.0  ;;  %v757_v39 = vadd.f32 %v756_v36, %v2907_v20  ;;  %v898_v44 = vmax.f32 %v593_v28, 0.0 }
  0xff   : > { %v899_v42 = vmax.f32 %v595_v32, 0.0  ;;  %v963_v43 = vmax.f32 %v755_v35, 0.0 }
 0x100   : > { %v900_v45 = vmax.f32 %v597_v37, 0.0  ;;  %v964_v46 = vmax.f32 %v757_v39, 0.0 }
 0x101   : > { %v1021_v47 = vpack.c.bf16 %v899_v42, %v897_v41  ;;  %v2957_v49 = vpack.c.bf16 %v963_v43, %v961_v34 }
 0x102   : > { %v1022_v50 = vpack.c.bf16 %v900_v45, %v898_v44  ;;  %v600_v52 = vpop.f32.mrb[12].mxu0  ;;  %v2960_v53 = vpack.c.bf16 %v964_v46, %v962_v38  ;;  %v760_v54 = vpop.f32.mrb[12].mxu1  ;;  %v2559_v44 = vld [vmem:[%s3472_s5 + $0x40] sm:$0xff]  }
 0x103   : > { %v601_v55 = vadd.f32 %v600_v52, %v2903_v19  ;;  %v602_v56 = vpop.f32.mrb[13].mxu0  ;;  %v761_v57 = vadd.f32 %v760_v54, %v2903_v19  ;;  %v762_v58 = vpop.f32.mrb[13].mxu1  ;;  %1982 = vmatpush1.bf16.msra.mxu0 %v2559_v44 }
 0x104   : > { %v603_v59 = vadd.f32 %v602_v56, %v2907_v20  ;;  %v604_v60 = vpop.f32.mrb[14].mxu0  ;;  %1337 = vmatprep.mubr.bf16.mxu1 %v1022_v50  ;;  %v763_v61 = vadd.f32 %v762_v58, %v2907_v20  ;;  %v764_v62 = vpop.f32.mrb[14].mxu1  ;;  %1983 = vmatprep.subr.bf16.mxu0 %v2575_v2 }
 0x105   : > { %v605_v63 = vadd.f32 %v604_v60, %v2903_v19  ;;  %v606_v0 = vpop.f32.mrb[15].mxu0  ;;  %1338 = vmatmul.mubr.bf16.gmra.mrb[72].mxu1 %v1021_v47  ;;  %v965_v1 = vmax.f32 %v761_v57, 0.0  ;;  %v765_v3 = vadd.f32 %v764_v62, %v2903_v19  ;;  %v766_v4 = vpop.f32.mrb[15].mxu1  ;;  %v901_v9 = vmax.f32 %v601_v55, 0.0 }
 0x106   : > { %v607_v5 = vadd.f32 %v606_v0, %v2907_v20  ;;  %v966_v6 = vmax.f32 %v763_v61, 0.0  ;;  %v767_v7 = vadd.f32 %v766_v4, %v2907_v20  ;;  %v902_v12 = vmax.f32 %v603_v59, 0.0 }
 0x107   : > { %v903_v10 = vmax.f32 %v605_v63, 0.0  ;;  %v967_v11 = vmax.f32 %v765_v3, 0.0 }
 0x108   : > { %v904_v13 = vmax.f32 %v607_v5, 0.0  ;;  %v968_v18 = vmax.f32 %v767_v7, 0.0 }
 0x109   : > { %v1023_v21 = vpack.c.bf16 %v903_v10, %v901_v9  ;;  %v2973_v23 = vpack.c.bf16 %v967_v11, %v965_v1 }
 0x10a   : > { %v1024_v24 = vpack.c.bf16 %v904_v13, %v902_v12  ;;  %v610_v25 = vpop.f32.mrb[16].mxu0  ;;  %v2976_v26 = vpack.c.bf16 %v968_v18, %v966_v6  ;;  %v770_v27 = vpop.f32.mrb[16].mxu1  ;;  %v2560_v18 = vld [vmem:[%s3472_s5 + $0x48] sm:$0xff]  }
 0x10b   : > { %v611_v28 = vadd.f32 %v610_v25, %v2903_v19  ;;  %v612_v29 = vpop.f32.mrb[17].mxu0  ;;  %v771_v30 = vadd.f32 %v770_v27, %v2903_v19  ;;  %v772_v31 = vpop.f32.mrb[17].mxu1  ;;  %1984 = vmatpush1.bf16.msra.mxu0 %v2560_v18 }
 0x10c   : > { %v613_v32 = vadd.f32 %v612_v29, %v2907_v20  ;;  %v614_v33 = vpop.f32.mrb[18].mxu0  ;;  %1347 = vmatprep.mubr.bf16.mxu1 %v1024_v24  ;;  %v773_v34 = vadd.f32 %v772_v31, %v2907_v20  ;;  %v774_v35 = vpop.f32.mrb[18].mxu1  ;;  %1985 = vmatprep.subr.bf16.mxu0 %v2575_v2 }
 0x10d   : > { %v615_v36 = vadd.f32 %v614_v33, %v2903_v19  ;;  %v616_v37 = vpop.f32.mrb[19].mxu0  ;;  %1348 = vmatmul.mubr.bf16.gmra.mrb[76].mxu1 %v1023_v21  ;;  %v969_v38 = vmax.f32 %v771_v30, 0.0  ;;  %v775_v39 = vadd.f32 %v774_v35, %v2903_v19  ;;  %v776_v40 = vpop.f32.mrb[19].mxu1  ;;  %v905_v45 = vmax.f32 %v611_v28, 0.0 }
 0x10e   : > { %v617_v41 = vadd.f32 %v616_v37, %v2907_v20  ;;  %v970_v42 = vmax.f32 %v773_v34, 0.0  ;;  %v777_v43 = vadd.f32 %v776_v40, %v2907_v20  ;;  %v906_v50 = vmax.f32 %v613_v32, 0.0 }
 0x10f   : > { %v907_v46 = vmax.f32 %v615_v36, 0.0  ;;  %v971_v47 = vmax.f32 %v775_v39, 0.0 }
 0x110   : > { %v908_v52 = vmax.f32 %v617_v41, 0.0  ;;  %v972_v54 = vmax.f32 %v777_v43, 0.0 }
 0x111   : > { %v1025_v55 = vpack.c.bf16 %v907_v46, %v905_v45  ;;  %v2989_v56 = vpack.c.bf16 %v971_v47, %v969_v38 }
 0x112   : > { %v1026_v57 = vpack.c.bf16 %v908_v52, %v906_v50  ;;  %v620_v58 = vpop.f32.mrb[20].mxu0  ;;  %v2992_v59 = vpack.c.bf16 %v972_v54, %v970_v42  ;;  %v780_v60 = vpop.f32.mrb[20].mxu1 }
 0x113   : > { %v621_v61 = vadd.f32 %v620_v58, %v2903_v19  ;;  %v622_v62 = vpop.f32.mrb[21].mxu0  ;;  %v781_v63 = vadd.f32 %v780_v60, %v2903_v19  ;;  %v782_v0 = vpop.f32.mrb[21].mxu1 }
 0x114   : > { %v623_v1 = vadd.f32 %v622_v62, %v2907_v20  ;;  %v624_v3 = vpop.f32.mrb[22].mxu0  ;;  %1357 = vmatprep.mubr.bf16.mxu1 %v1026_v57  ;;  %v783_v4 = vadd.f32 %v782_v0, %v2907_v20  ;;  %v784_v5 = vpop.f32.mrb[22].mxu1  ;;  %v2561_v57 = vld [vmem:[%s3472_s5 + $0x50] sm:$0xff]  }
 0x115   : > { %v625_v6 = vadd.f32 %v624_v3, %v2903_v19  ;;  %v626_v7 = vpop.f32.mrb[23].mxu0  ;;  %1358 = vmatmul.mubr.bf16.gmra.mrb[80].mxu1 %v1025_v55  ;;  %v973_v8 = vmax.f32 %v781_v63, 0.0  ;;  %v785_v9 = vadd.f32 %v784_v5, %v2903_v19  ;;  %v786_v10 = vpop.f32.mrb[23].mxu1  ;;  %v909_v21 = vmax.f32 %v621_v61, 0.0  ;;  %1986 = vmatpush1.bf16.msra.mxu0 %v2561_v57 }
 0x116   : > { %v627_v11 = vadd.f32 %v626_v7, %v2907_v20  ;;  %v974_v12 = vmax.f32 %v783_v4, 0.0  ;;  %v787_v13 = vadd.f32 %v786_v10, %v2907_v20  ;;  %v910_v27 = vmax.f32 %v623_v1, 0.0  ;;  %1987 = vmatprep.subr.bf16.mxu0 %v2575_v2 }
 0x117   : > { %v911_v24 = vmax.f32 %v625_v6, 0.0  ;;  %v975_v25 = vmax.f32 %v785_v9, 0.0 }
 0x118   : > { %v912_v28 = vmax.f32 %v627_v11, 0.0  ;;  %v976_v29 = vmax.f32 %v787_v13, 0.0 }
 0x119   : > { %v1027_v30 = vpack.c.bf16 %v911_v24, %v909_v21  ;;  %v3005_v31 = vpack.c.bf16 %v975_v25, %v973_v8 }
 0x11a   : > { %v1028_v32 = vpack.c.bf16 %v912_v28, %v910_v27  ;;  %v630_v33 = vpop.f32.mrb[24].mxu0  ;;  %v3008_v34 = vpack.c.bf16 %v976_v29, %v974_v12  ;;  %v790_v35 = vpop.f32.mrb[24].mxu1 }
 0x11b   : > { %v631_v36 = vadd.f32 %v630_v33, %v2903_v19  ;;  %v632_v37 = vpop.f32.mrb[25].mxu0  ;;  %v791_v38 = vadd.f32 %v790_v35, %v2903_v19  ;;  %v792_v39 = vpop.f32.mrb[25].mxu1  ;;  %v2562_v35 = vld [vmem:[%s3472_s5 + $0x58] sm:$0xff]  }
 0x11c   : > { %v633_v40 = vadd.f32 %v632_v37, %v2907_v20  ;;  %v634_v41 = vpop.f32.mrb[26].mxu0  ;;  %1367 = vmatprep.mubr.bf16.mxu1 %v1028_v32  ;;  %v793_v42 = vadd.f32 %v792_v39, %v2907_v20  ;;  %v794_v43 = vpop.f32.mrb[26].mxu1  ;;  %1988 = vmatpush1.bf16.msra.mxu0 %v2562_v35 }
 0x11d   : > { %v635_v44 = vadd.f32 %v634_v41, %v2903_v19  ;;  %v636_v45 = vpop.f32.mrb[27].mxu0  ;;  %1368 = vmatmul.mubr.bf16.gmra.mrb[84].mxu1 %v1027_v30  ;;  %v977_v46 = vmax.f32 %v791_v38, 0.0  ;;  %v795_v47 = vadd.f32 %v794_v43, %v2903_v19  ;;  %v796_v50 = vpop.f32.mrb[27].mxu1  ;;  %v913_v58 = vmax.f32 %v631_v36, 0.0  ;;  %1989 = vmatprep.subr.bf16.mxu0 %v2575_v2 }
 0x11e   : > { %v637_v52 = vadd.f32 %v636_v45, %v2907_v20  ;;  %v978_v54 = vmax.f32 %v793_v42, 0.0  ;;  %v797_v55 = vadd.f32 %v796_v50, %v2907_v20  ;;  %v914_v62 = vmax.f32 %v633_v40, 0.0 }
 0x11f   : > { %v915_v60 = vmax.f32 %v635_v44, 0.0  ;;  %v979_v61 = vmax.f32 %v795_v47, 0.0 }
 0x120   : > { %v916_v63 = vmax.f32 %v637_v52, 0.0  ;;  %v980_v0 = vmax.f32 %v797_v55, 0.0 }
 0x121   : > { %v1029_v1 = vpack.c.bf16 %v915_v60, %v913_v58  ;;  %v3021_v3 = vpack.c.bf16 %v979_v61, %v977_v46 }
 0x122   : > { %v1030_v4 = vpack.c.bf16 %v916_v63, %v914_v62  ;;  %v640_v5 = vpop.f32.mrb[28].mxu0  ;;  %v3024_v6 = vpack.c.bf16 %v980_v0, %v978_v54  ;;  %v800_v7 = vpop.f32.mrb[28].mxu1 }
 0x123   : > { %v641_v8 = vadd.f32 %v640_v5, %v2903_v19  ;;  %v642_v9 = vpop.f32.mrb[29].mxu0  ;;  %v801_v10 = vadd.f32 %v800_v7, %v2903_v19  ;;  %v802_v11 = vpop.f32.mrb[29].mxu1 }
 0x124   : > { %v643_v12 = vadd.f32 %v642_v9, %v2907_v20  ;;  %v644_v13 = vpop.f32.mrb[30].mxu0  ;;  %1377 = vmatprep.mubr.bf16.mxu1 %v1030_v4  ;;  %v803_v18 = vadd.f32 %v802_v11, %v2907_v20  ;;  %v804_v21 = vpop.f32.mrb[30].mxu1  ;;  %v2563_v9 = vld [vmem:[%s3472_s5 + $0x60] sm:$0xff]  }
 0x125   : > { %v645_v24 = vadd.f32 %v644_v13, %v2903_v19  ;;  %v646_v25 = vpop.f32.mrb[31].mxu0  ;;  %1378 = vmatmul.mubr.bf16.gmra.mrb[88].mxu1 %v1029_v1  ;;  %v981_v27 = vmax.f32 %v801_v10, 0.0  ;;  %v805_v28 = vadd.f32 %v804_v21, %v2903_v19  ;;  %v806_v29 = vpop.f32.mrb[31].mxu1  ;;  %v917_v36 = vmax.f32 %v641_v8, 0.0  ;;  %1990 = vmatpush1.bf16.msra.mxu0 %v2563_v9 }
 0x126   : > { %v647_v30 = vadd.f32 %v646_v25, %v2907_v20  ;;  %v982_v32 = vmax.f32 %v803_v18, 0.0  ;;  %v807_v33 = vadd.f32 %v806_v29, %v2907_v20  ;;  %v918_v39 = vmax.f32 %v643_v12, 0.0  ;;  %1991 = vmatprep.subr.bf16.mxu0 %v2575_v2 }
 0x127   : > { %v919_v37 = vmax.f32 %v645_v24, 0.0  ;;  %v983_v38 = vmax.f32 %v805_v28, 0.0 }
 0x128   : > { %v920_v40 = vmax.f32 %v647_v30, 0.0  ;;  %v984_v41 = vmax.f32 %v807_v33, 0.0 }
 0x129   : > { %v1031_v42 = vpack.c.bf16 %v919_v37, %v917_v36  ;;  %v3037_v43 = vpack.c.bf16 %v983_v38, %v981_v27 }
 0x12a   : > { %v1032_v44 = vpack.c.bf16 %v920_v40, %v918_v39  ;;  %v650_v45 = vpop.f32.mrb[32].mxu0  ;;  %v3040_v46 = vpack.c.bf16 %v984_v41, %v982_v32  ;;  %v810_v47 = vpop.f32.mrb[32].mxu1 }
 0x12b   : > { %v651_v50 = vadd.f32 %v650_v45, %v2903_v19  ;;  %v652_v52 = vpop.f32.mrb[33].mxu0  ;;  %v811_v54 = vadd.f32 %v810_v47, %v2903_v19  ;;  %v812_v55 = vpop.f32.mrb[33].mxu1 }
 0x12c   : > { %v653_v57 = vadd.f32 %v652_v52, %v2907_v20  ;;  %v654_v58 = vpop.f32.mrb[34].mxu0  ;;  %1387 = vmatprep.mubr.bf16.mxu1 %v1032_v44  ;;  %v813_v60 = vadd.f32 %v812_v55, %v2907_v20  ;;  %v814_v61 = vpop.f32.mrb[34].mxu1  ;;  %v2564_v55 = vld [vmem:[%s3472_s5 + $0x68] sm:$0xff]  }
 0x12d   : > { %v655_v62 = vadd.f32 %v654_v58, %v2903_v19  ;;  %v656_v63 = vpop.f32.mrb[35].mxu0  ;;  %1388 = vmatmul.mubr.bf16.gmra.mrb[92].mxu1 %v1031_v42  ;;  %v985_v0 = vmax.f32 %v811_v54, 0.0  ;;  %v815_v1 = vadd.f32 %v814_v61, %v2903_v19  ;;  %v816_v4 = vpop.f32.mrb[35].mxu1  ;;  %v921_v10 = vmax.f32 %v651_v50, 0.0  ;;  %1992 = vmatpush1.bf16.msra.mxu0 %v2564_v55 }
 0x12e   : > { %v657_v5 = vadd.f32 %v656_v63, %v2907_v20  ;;  %v986_v7 = vmax.f32 %v813_v60, 0.0  ;;  %v817_v8 = vadd.f32 %v816_v4, %v2907_v20  ;;  %v922_v13 = vmax.f32 %v653_v57, 0.0  ;;  %1993 = vmatprep.subr.bf16.mxu0 %v2575_v2 }
 0x12f   : > { %v923_v11 = vmax.f32 %v655_v62, 0.0  ;;  %v987_v12 = vmax.f32 %v815_v1, 0.0 }
 0x130   : > { %v924_v18 = vmax.f32 %v657_v5, 0.0  ;;  %v988_v21 = vmax.f32 %v817_v8, 0.0 }
 0x131   : > { %v1033_v24 = vpack.c.bf16 %v923_v11, %v921_v10  ;;  %v3053_v25 = vpack.c.bf16 %v987_v12, %v985_v0 }
 0x132   : > { %v1034_v27 = vpack.c.bf16 %v924_v18, %v922_v13  ;;  %v660_v28 = vpop.f32.mrb[36].mxu0  ;;  %v3056_v29 = vpack.c.bf16 %v988_v21, %v986_v7  ;;  %v820_v30 = vpop.f32.mrb[36].mxu1 }
 0x133   : > { %v661_v32 = vadd.f32 %v660_v28, %v2903_v19  ;;  %v662_v33 = vpop.f32.mrb[37].mxu0  ;;  %v821_v35 = vadd.f32 %v820_v30, %v2903_v19  ;;  %v822_v36 = vpop.f32.mrb[37].mxu1 }
 0x134   : > { %v663_v37 = vadd.f32 %v662_v33, %v2907_v20  ;;  %v664_v38 = vpop.f32.mrb[38].mxu0  ;;  %1397 = vmatprep.mubr.bf16.mxu1 %v1034_v27  ;;  %v823_v39 = vadd.f32 %v822_v36, %v2907_v20  ;;  %v824_v40 = vpop.f32.mrb[38].mxu1 }
 0x135   : > { %v665_v41 = vadd.f32 %v664_v38, %v2903_v19  ;;  %v666_v42 = vpop.f32.mrb[39].mxu0  ;;  %1398 = vmatmul.mubr.bf16.gmra.mrb[96].mxu1 %v1033_v24  ;;  %v989_v44 = vmax.f32 %v821_v35, 0.0  ;;  %v825_v45 = vadd.f32 %v824_v40, %v2903_v19  ;;  %v826_v47 = vpop.f32.mrb[39].mxu1  ;;  %v925_v57 = vmax.f32 %v661_v32, 0.0  ;;  %v2565_v38 = vld [vmem:[%s3472_s5 + $0x70] sm:$0xff]  }
 0x136   : > { %v667_v50 = vadd.f32 %v666_v42, %v2907_v20  ;;  %v990_v52 = vmax.f32 %v823_v39, 0.0  ;;  %v827_v54 = vadd.f32 %v826_v47, %v2907_v20  ;;  %v926_v61 = vmax.f32 %v663_v37, 0.0  ;;  %1994 = vmatpush1.bf16.msra.mxu0 %v2565_v38 }
 0x137   : > { %v927_v58 = vmax.f32 %v665_v41, 0.0  ;;  %v991_v60 = vmax.f32 %v825_v45, 0.0  ;;  %1995 = vmatprep.subr.bf16.mxu0 %v2575_v2 }
 0x138   : > { %v928_v62 = vmax.f32 %v667_v50, 0.0  ;;  %v992_v63 = vmax.f32 %v827_v54, 0.0 }
 0x139   : > { %v1035_v0 = vpack.c.bf16 %v927_v58, %v925_v57  ;;  %v3069_v1 = vpack.c.bf16 %v991_v60, %v989_v44 }
 0x13a   : > { %v1036_v4 = vpack.c.bf16 %v928_v62, %v926_v61  ;;  %v670_v5 = vpop.f32.mrb[40].mxu0  ;;  %v3072_v7 = vpack.c.bf16 %v992_v63, %v990_v52  ;;  %v830_v8 = vpop.f32.mrb[40].mxu1 }
 0x13b   : > { %v671_v9 = vadd.f32 %v670_v5, %v2903_v19  ;;  %v672_v10 = vpop.f32.mrb[41].mxu0  ;;  %v831_v11 = vadd.f32 %v830_v8, %v2903_v19  ;;  %v832_v12 = vpop.f32.mrb[41].mxu1 }
 0x13c   : > { %v673_v13 = vadd.f32 %v672_v10, %v2907_v20  ;;  %v674_v18 = vpop.f32.mrb[42].mxu0  ;;  %1407 = vmatprep.mubr.bf16.mxu1 %v1036_v4  ;;  %v833_v21 = vadd.f32 %v832_v12, %v2907_v20  ;;  %v834_v24 = vpop.f32.mrb[42].mxu1 }
 0x13d   : > { %v675_v27 = vadd.f32 %v674_v18, %v2903_v19  ;;  %v676_v28 = vpop.f32.mrb[43].mxu0  ;;  %1408 = vmatmul.mubr.bf16.gmra.mrb[100].mxu1 %v1035_v0  ;;  %v993_v30 = vmax.f32 %v831_v11, 0.0  ;;  %v835_v32 = vadd.f32 %v834_v24, %v2903_v19  ;;  %v836_v33 = vpop.f32.mrb[43].mxu1  ;;  %v929_v39 = vmax.f32 %v671_v9, 0.0 }
 0x13e   : > { %v677_v35 = vadd.f32 %v676_v28, %v2907_v20  ;;  %v994_v36 = vmax.f32 %v833_v21, 0.0  ;;  %v837_v37 = vadd.f32 %v836_v33, %v2907_v20  ;;  %v930_v42 = vmax.f32 %v673_v13, 0.0 }
 0x13f   : > { %v931_v40 = vmax.f32 %v675_v27, 0.0  ;;  %v995_v41 = vmax.f32 %v835_v32, 0.0 }
 0x140   : > { %v932_v44 = vmax.f32 %v677_v35, 0.0  ;;  %v996_v45 = vmax.f32 %v837_v37, 0.0 }
 0x141   : > { %v1037_v47 = vpack.c.bf16 %v931_v40, %v929_v39  ;;  %v3085_v50 = vpack.c.bf16 %v995_v41, %v993_v30 }
 0x142   : > { %v1038_v52 = vpack.c.bf16 %v932_v44, %v930_v42  ;;  %v680_v54 = vpop.f32.mrb[44].mxu0  ;;  %v3088_v55 = vpack.c.bf16 %v996_v45, %v994_v36  ;;  %v840_v57 = vpop.f32.mrb[44].mxu1 }
 0x143   : > { %v681_v58 = vadd.f32 %v680_v54, %v2903_v19  ;;  %v682_v60 = vpop.f32.mrb[45].mxu0  ;;  %v841_v61 = vadd.f32 %v840_v57, %v2903_v19  ;;  %v842_v62 = vpop.f32.mrb[45].mxu1 }
 0x144   : > { %v683_v63 = vadd.f32 %v682_v60, %v2907_v20  ;;  %v684_v0 = vpop.f32.mrb[46].mxu0  ;;  %1417 = vmatprep.mubr.bf16.mxu1 %v1038_v52  ;;  %v843_v4 = vadd.f32 %v842_v62, %v2907_v20  ;;  %v844_v5 = vpop.f32.mrb[46].mxu1 }
 0x145   : > { %v685_v2 = vadd.f32 %v684_v0, %v2903_v19  ;;  %v686_v8 = vpop.f32.mrb[47].mxu0  ;;  %1418 = vmatmul.mubr.bf16.gmra.mrb[104].mxu1 %v1037_v47  ;;  %v997_v9 = vmax.f32 %v841_v61, 0.0  ;;  %v845_v10 = vadd.f32 %v844_v5, %v2903_v19  ;;  %v846_v11 = vpop.f32.mrb[47].mxu1  ;;  %v933_v21 = vmax.f32 %v681_v58, 0.0  ;;  %v2566_v5 = vld [vmem:[%s3472_s5 + $0x78] sm:$0xff]  }
 0x146   : > { %v687_v12 = vadd.f32 %v686_v8, %v2907_v20  ;;  %v998_v13 = vmax.f32 %v843_v4, 0.0  ;;  %v847_v18 = vadd.f32 %v846_v11, %v2907_v20  ;;  %v934_v28 = vmax.f32 %v683_v63, 0.0  ;;  %1996 = vmatpush1.bf16.msra.mxu0 %v2566_v5 }
 0x147   : > { %v935_v24 = vmax.f32 %v685_v2, 0.0  ;;  %v999_v27 = vmax.f32 %v845_v10, 0.0 }
 0x148   : > { %v936_v30 = vmax.f32 %v687_v12, 0.0  ;;  %v1000_v32 = vmax.f32 %v847_v18, 0.0 }
 0x149   : > { %v1039_v33 = vpack.c.bf16 %v935_v24, %v933_v21  ;;  %v3098_v35 = vpack.c.bf16 %v999_v27, %v997_v9 }
 0x14a   : > { %v1040_v36 = vpack.c.bf16 %v936_v30, %v934_v28  ;;  %v690_v37 = vpop.f32.mrb[48].mxu0  ;;  %v3100_v38 = vpack.c.bf16 %v1000_v32, %v998_v13  ;;  %v850_v39 = vpop.f32.mrb[48].mxu1 }
 0x14b   : > { %v691_v40 = vadd.f32 %v690_v37, %v2903_v19  ;;  %v692_v41 = vpop.f32.mrb[49].mxu0  ;;  %v851_v42 = vadd.f32 %v850_v39, %v2903_v19  ;;  %v852_v44 = vpop.f32.mrb[49].mxu1 }
 0x14c   : > { %v693_v45 = vadd.f32 %v692_v41, %v2907_v20  ;;  %v694_v47 = vpop.f32.mrb[50].mxu0  ;;  %1427 = vmatprep.mubr.bf16.mxu1 %v1040_v36  ;;  %v853_v52 = vadd.f32 %v852_v44, %v2907_v20  ;;  %v854_v54 = vpop.f32.mrb[50].mxu1 }
 0x14d   : > { %v695_v57 = vadd.f32 %v694_v47, %v2903_v19  ;;  %v696_v58 = vpop.f32.mrb[51].mxu0  ;;  %1428 = vmatmul.mubr.bf16.gmra.mrb[108].mxu1 %v1039_v33  ;;  %v1001_v60 = vmax.f32 %v851_v42, 0.0  ;;  %v855_v61 = vadd.f32 %v854_v54, %v2903_v19  ;;  %v856_v62 = vpop.f32.mrb[51].mxu1  ;;  %v937_v2 = vmax.f32 %v691_v40, 0.0 }
 0x14e   : > { %v697_v63 = vadd.f32 %v696_v58, %v2907_v20  ;;  %v1002_v0 = vmax.f32 %v853_v52, 0.0  ;;  %v857_v4 = vadd.f32 %v856_v62, %v2907_v20  ;;  %v938_v10 = vmax.f32 %v693_v45, 0.0 }
 0x14f   : > { %v939_v8 = vmax.f32 %v695_v57, 0.0  ;;  %v1003_v9 = vmax.f32 %v855_v61, 0.0 }
 0x150   : > { %v940_v11 = vmax.f32 %v697_v63, 0.0  ;;  %v1004_v12 = vmax.f32 %v857_v4, 0.0 }
 0x151   : > { %v1041_v13 = vpack.c.bf16 %v939_v8, %v937_v2  ;;  %v3113_v18 = vpack.c.bf16 %v1003_v9, %v1001_v60 }
 0x152   : > { %v1042_v21 = vpack.c.bf16 %v940_v11, %v938_v10  ;;  %v700_v24 = vpop.f32.mrb[52].mxu0  ;;  %v3115_v27 = vpack.c.bf16 %v1004_v12, %v1002_v0  ;;  %v860_v28 = vpop.f32.mrb[52].mxu1 }
 0x153   : > { %v701_v30 = vadd.f32 %v700_v24, %v2903_v19  ;;  %v702_v32 = vpop.f32.mrb[53].mxu0  ;;  %v861_v33 = vadd.f32 %v860_v28, %v2903_v19  ;;  %v862_v36 = vpop.f32.mrb[53].mxu1 }
 0x154   : > { %v703_v37 = vadd.f32 %v702_v32, %v2907_v20  ;;  %v704_v39 = vpop.f32.mrb[54].mxu0  ;;  %1437 = vmatprep.mubr.bf16.mxu1 %v1042_v21  ;;  %v863_v40 = vadd.f32 %v862_v36, %v2907_v20  ;;  %v864_v41 = vpop.f32.mrb[54].mxu1 }
 0x155   : > { %v705_v42 = vadd.f32 %v704_v39, %v2903_v19  ;;  %v706_v44 = vpop.f32.mrb[55].mxu0  ;;  %1438 = vmatmul.mubr.bf16.gmra.mrb[112].mxu1 %v1041_v13  ;;  %v1005_v45 = vmax.f32 %v861_v33, 0.0  ;;  %v865_v47 = vadd.f32 %v864_v41, %v2903_v19  ;;  %v866_v52 = vpop.f32.mrb[55].mxu1  ;;  %v941_v60 = vmax.f32 %v701_v30, 0.0 }
 0x156   : > { %v707_v54 = vadd.f32 %v706_v44, %v2907_v20  ;;  %v1006_v57 = vmax.f32 %v863_v40, 0.0  ;;  %v867_v58 = vadd.f32 %v866_v52, %v2907_v20  ;;  %v942_v63 = vmax.f32 %v703_v37, 0.0 }
 0x157   : > { %v943_v61 = vmax.f32 %v705_v42, 0.0  ;;  %v1007_v62 = vmax.f32 %v865_v47, 0.0 }
 0x158   : > { %v944_v0 = vmax.f32 %v707_v54, 0.0  ;;  %v1008_v4 = vmax.f32 %v867_v58, 0.0 }
 0x159   : > { %v1043_v5 = vpack.c.bf16 %v943_v61, %v941_v60  ;;  %v3125_v2 = vpack.c.bf16 %v1007_v62, %v1005_v45 }
 0x15a   : > { %v1044_v8 = vpack.c.bf16 %v944_v0, %v942_v63  ;;  %v710_v9 = vpop.f32.mrb[56].mxu0  ;;  %v3127_v10 = vpack.c.bf16 %v1008_v4, %v1006_v57  ;;  %v870_v11 = vpop.f32.mrb[56].mxu1 }
 0x15b   : > { %v711_v12 = vadd.f32 %v710_v9, %v2903_v19  ;;  %v712_v13 = vpop.f32.mrb[57].mxu0  ;;  %v871_v21 = vadd.f32 %v870_v11, %v2903_v19  ;;  %v872_v24 = vpop.f32.mrb[57].mxu1 }
 0x15c   : > { %v713_v28 = vadd.f32 %v712_v13, %v2907_v20  ;;  %v714_v30 = vpop.f32.mrb[58].mxu0  ;;  %1447 = vmatprep.mubr.bf16.mxu1 %v1044_v8  ;;  %v873_v32 = vadd.f32 %v872_v24, %v2907_v20  ;;  %v874_v33 = vpop.f32.mrb[58].mxu1 }
 0x15d   : > { %v715_v36 = vadd.f32 %v714_v30, %v2903_v19  ;;  %v716_v37 = vpop.f32.mrb[59].mxu0  ;;  %1448 = vmatmul.mubr.bf16.gmra.mrb[116].mxu1 %v1043_v5  ;;  %v1009_v39 = vmax.f32 %v871_v21, 0.0  ;;  %v875_v40 = vadd.f32 %v874_v33, %v2903_v19  ;;  %v876_v41 = vpop.f32.mrb[59].mxu1  ;;  %v945_v47 = vmax.f32 %v711_v12, 0.0 }
 0x15e   : > { %v717_v42 = vadd.f32 %v716_v37, %v2907_v20  ;;  %v1010_v44 = vmax.f32 %v873_v32, 0.0  ;;  %v877_v45 = vadd.f32 %v876_v41, %v2907_v20  ;;  %v946_v57 = vmax.f32 %v713_v28, 0.0 }
 0x15f   : > { %v947_v52 = vmax.f32 %v715_v36, 0.0  ;;  %v1011_v54 = vmax.f32 %v875_v40, 0.0 }
 0x160   : > { %v948_v58 = vmax.f32 %v717_v42, 0.0  ;;  %v1012_v60 = vmax.f32 %v877_v45, 0.0 }
 0x161   : > { %v1045_v61 = vpack.c.bf16 %v947_v52, %v945_v47  ;;  %v3137_v62 = vpack.c.bf16 %v1011_v54, %v1009_v39 }
 0x162   : > { %v1046_v63 = vpack.c.bf16 %v948_v58, %v946_v57  ;;  %v720_v0 = vpop.f32.mrb[60].mxu0  ;;  %v3139_v4 = vpack.c.bf16 %v1012_v60, %v1010_v44  ;;  %v880_v5 = vpop.f32.mrb[60].mxu1 }
 0x163   : > { %v721_v8 = vadd.f32 %v720_v0, %v2903_v19  ;;  %v722_v9 = vpop.f32.mrb[61].mxu0  ;;  %v881_v11 = vadd.f32 %v880_v5, %v2903_v19  ;;  %v882_v13 = vpop.f32.mrb[61].mxu1 }
 0x164   : > { %v723_v12 = vadd.f32 %v722_v9, %v2907_v20  ;;  %v724_v21 = vpop.f32.mrb[62].mxu0  ;;  %1457 = vmatprep.mubr.bf16.mxu1 %v1046_v63  ;;  %v883_v24 = vadd.f32 %v882_v13, %v2907_v20  ;;  %v884_v28 = vpop.f32.mrb[62].mxu1 }
 0x165   : > { %v725_v30 = vadd.f32 %v724_v21, %v2903_v19  ;;  %v726_v32 = vpop.f32.mrb[63].mxu0  ;;  %1458 = vmatmul.mubr.bf16.gmra.mrb[120].mxu1 %v1045_v61  ;;  %v1013_v33 = vmax.f32 %v881_v11, 0.0  ;;  %v885_v36 = vadd.f32 %v884_v28, %v2903_v19  ;;  %v886_v37 = vpop.f32.mrb[63].mxu1  ;;  %v949_v42 = vmax.f32 %v721_v8, 0.0  ;;  %v1113_v19 = vld [vmem:[%s3471_s4] sm:$0x3] }
 0x166   : > { %v727_v39 = vadd.f32 %v726_v32, %v2907_v20  ;;  %v1014_v40 = vmax.f32 %v883_v24, 0.0  ;;  %v887_v41 = vadd.f32 %v886_v37, %v2907_v20  ;;  %v950_v47 = vmax.f32 %v723_v12, 0.0 }
 0x167   : > { %v951_v44 = vmax.f32 %v725_v30, 0.0  ;;  %v1015_v45 = vmax.f32 %v885_v36, 0.0  ;;  %v3180_v20 = vrot.slane %v1113_v19, %v391_v15 }
 0x168   : > { %v952_v52 = vmax.f32 %v727_v39, 0.0  ;;  %v1016_v54 = vmax.f32 %v887_v41, 0.0 }
 0x169   : > { %v1047_v57 = vpack.c.bf16 %v951_v44, %v949_v42  ;;  %v3149_v58 = vpack.c.bf16 %v1015_v45, %v1013_v33 }
 0x16a   : > { %v1048_v60 = vpack.c.bf16 %v952_v52, %v950_v47  ;;  %v3151_v61 = vpack.c.bf16 %v1016_v54, %v1014_v40 }
 0x16c   : > { %1467 = vmatprep.mubr.bf16.mxu1 %v1048_v60 }
 0x16d   : > { %1468 = vmatmul.mubr.bf16.gmra.mrb[124].mxu1 %v1047_v57 }
 0x16e   : > { %1477 = vmatprep.mubr.bf16.mxu1 %v2928_v51 }
 0x175   : > { %1478 = vmatmul.mubr.bf16.gmra.mrb[128].mxu1 %v2925_v48  ;;  %v3185_v48 = vrot.slane %v1113_v19, %v395_v17 }
 0x176   : > { %1487 = vmatprep.mubr.bf16.mxu1 %v2944_v22 }
 0x17d   : > { %1488 = vmatmul.mubr.bf16.gmra.mrb[132].mxu1 %v2941_v16 }
 0x17e   : > { %1497 = vmatprep.mubr.bf16.mxu1 %v2960_v53 }
 0x185   : > { %1498 = vmatmul.mubr.bf16.gmra.mrb[136].mxu1 %v2957_v49 }
 0x186   : > { %1507 = vmatprep.mubr.bf16.mxu1 %v2976_v26 }
 0x18d   : > { %1508 = vmatmul.mubr.bf16.gmra.mrb[140].mxu1 %v2973_v23 }
 0x18e   : > { %1517 = vmatprep.mubr.bf16.mxu1 %v2992_v59 }
 0x195   : > { %1518 = vmatmul.mubr.bf16.gmra.mrb[144].mxu1 %v2989_v56 }
 0x196   : > { %1527 = vmatprep.mubr.bf16.mxu1 %v3008_v34 }
 0x19d   : > { %1528 = vmatmul.mubr.bf16.gmra.mrb[148].mxu1 %v3005_v31 }
 0x19e   : > { %1537 = vmatprep.mubr.bf16.mxu1 %v3024_v6 }
 0x1a5   : > { %1538 = vmatmul.mubr.bf16.gmra.mrb[152].mxu1 %v3021_v3 }
 0x1a6   : > { %1547 = vmatprep.mubr.bf16.mxu1 %v3040_v46 }
 0x1ad   : > { %1548 = vmatmul.mubr.bf16.gmra.mrb[156].mxu1 %v3037_v43 }
 0x1ae   : > { %1557 = vmatprep.mubr.bf16.mxu1 %v3056_v29 }
 0x1b5   : > { %1558 = vmatmul.mubr.bf16.gmra.mrb[160].mxu1 %v3053_v25 }
 0x1b6   : > { %1567 = vmatprep.mubr.bf16.mxu1 %v3072_v7 }
 0x1bd   : > { %1568 = vmatmul.mubr.bf16.gmra.mrb[164].mxu1 %v3069_v1 }
 0x1be   : > { %1577 = vmatprep.mubr.bf16.mxu1 %v3088_v55 }
 0x1c5   : > { %1578 = vmatmul.mubr.bf16.gmra.mrb[168].mxu1 %v3085_v50 }
 0x1c6   : > { %1587 = vmatprep.mubr.bf16.mxu1 %v3100_v38 }
 0x1c8   : > { %v1319_v51 = vpop.f32.mrb[64].mxu1 }
 0x1c9   : > { %v1320_v16 = vadd.f32 %v1319_v51, %v3180_v20  ;;  %v1321_v22 = vpop.f32.mrb[65].mxu1 }
 0x1ca   : > { %v1322_v49 = vadd.f32 %v1321_v22, %v3185_v48  ;;  %v1323_v53 = vpop.f32.mrb[66].mxu1 }
 0x1cb   : > { %v1324_v23 = vadd.f32 %v1323_v53, %v3180_v20  ;;  %v1325_v26 = vpop.f32.mrb[67].mxu1  ;;  %v1638_v15 = vmax.f32 %v1320_v16, 0.0 }
 0x1cc   : > { %v1326_v56 = vadd.f32 %v1325_v26, %v3185_v48  ;;  %v1639_v31 = vmax.f32 %v1322_v49, 0.0 }
 0x1cd   : > { %v1640_v59 = vmax.f32 %v1324_v23, 0.0  ;;  %1588 = vmatmul.mubr.bf16.gmra.mrb[172].mxu1 %v3098_v35 }
 0x1ce   : > { %v1641_v14 = vmax.f32 %v1326_v56, 0.0  ;;  %1597 = vmatprep.mubr.bf16.mxu1 %v3115_v27 }
 0x1cf   : > { %v1766_v17 = vpack.c.bf16 %v1640_v59, %v1638_v15 }
 0x1d0   : > { %v1767_v34 = vpack.c.bf16 %v1641_v14, %v1639_v31  ;;  %v1329_v3 = vpop.f32.mrb[68].mxu1 }
 0x1d1   : > { %v1330_v6 = vadd.f32 %v1329_v3, %v3180_v20  ;;  %v1331_v43 = vpop.f32.mrb[69].mxu1 }
 0x1d2   : > { %v1332_v46 = vadd.f32 %v1331_v43, %v3185_v48  ;;  %v1333_v25 = vpop.f32.mrb[70].mxu1  ;;  %1997 = vmatprep.mubr.bf16.mxu0 %v1767_v34 }
 0x1d3   : > { %v1334_v29 = vadd.f32 %v1333_v25, %v3180_v20  ;;  %v1335_v1 = vpop.f32.mrb[71].mxu1  ;;  %1998 = vmatmul.mubr.bf16.vlgmr.msra.gmra.mrb[64].mxu0 %v1766_v17  ;;  %v1642_v50 = vmax.f32 %v1330_v6, 0.0 }
 0x1d4   : > { %v1336_v7 = vadd.f32 %v1335_v1, %v3185_v48  ;;  %v1643_v35 = vmax.f32 %v1332_v46, 0.0 }
 0x1d5   : > { %v1644_v55 = vmax.f32 %v1334_v29, 0.0  ;;  %1598 = vmatmul.mubr.bf16.gmra.mrb[176].mxu1 %v3113_v18 }
 0x1d6   : > { %v1645_v38 = vmax.f32 %v1336_v7, 0.0  ;;  %1607 = vmatprep.mubr.bf16.mxu1 %v3127_v10 }
 0x1d7   : > { %v1768_v27 = vpack.c.bf16 %v1644_v55, %v1642_v50 }
 0x1d8   : > { %v1769_v63 = vpack.c.bf16 %v1645_v38, %v1643_v35  ;;  %v1339_v0 = vpop.f32.mrb[72].mxu1 }
 0x1d9   : > { %v1340_v5 = vadd.f32 %v1339_v0, %v3180_v20  ;;  %v1341_v8 = vpop.f32.mrb[73].mxu1 }
 0x1da   : > { %v1342_v9 = vadd.f32 %v1341_v8, %v3185_v48  ;;  %v1343_v11 = vpop.f32.mrb[74].mxu1  ;;  %2005 = vmatprep.mubr.bf16.mxu0 %v1769_v63 }
 0x1db   : > { %v1344_v13 = vadd.f32 %v1343_v11, %v3180_v20  ;;  %v1345_v12 = vpop.f32.mrb[75].mxu1  ;;  %2006 = vmatmul.mubr.bf16.gmra.mrb[68].mxu0 %v1768_v27  ;;  %v1646_v21 = vmax.f32 %v1340_v5, 0.0 }
 0x1dc   : > { %v1346_v18 = vadd.f32 %v1345_v12, %v3185_v48  ;;  %v1647_v10 = vmax.f32 %v1342_v9, 0.0 }
 0x1dd   : > { %v1648_v24 = vmax.f32 %v1344_v13, 0.0  ;;  %1608 = vmatmul.mubr.bf16.gmra.mrb[180].mxu1 %v3125_v2 }
 0x1de   : > { %v1649_v28 = vmax.f32 %v1346_v18, 0.0  ;;  %1617 = vmatprep.mubr.bf16.mxu1 %v3139_v4 }
 0x1df   : > { %v1770_v30 = vpack.c.bf16 %v1648_v24, %v1646_v21 }
 0x1e0   : > { %v1771_v32 = vpack.c.bf16 %v1649_v28, %v1647_v10  ;;  %v1349_v33 = vpop.f32.mrb[76].mxu1 }
 0x1e1   : > { %v1350_v36 = vadd.f32 %v1349_v33, %v3180_v20  ;;  %v1351_v37 = vpop.f32.mrb[77].mxu1 }
 0x1e2   : > { %v1352_v39 = vadd.f32 %v1351_v37, %v3185_v48  ;;  %v1353_v40 = vpop.f32.mrb[78].mxu1  ;;  %2013 = vmatprep.mubr.bf16.mxu0 %v1771_v32 }
 0x1e3   : > { %v1354_v41 = vadd.f32 %v1353_v40, %v3180_v20  ;;  %v1355_v42 = vpop.f32.mrb[79].mxu1  ;;  %2014 = vmatmul.mubr.bf16.gmra.mrb[72].mxu0 %v1770_v30  ;;  %v1650_v44 = vmax.f32 %v1350_v36, 0.0 }
 0x1e4   : > { %v1356_v2 = vadd.f32 %v1355_v42, %v3185_v48  ;;  %v1651_v4 = vmax.f32 %v1352_v39, 0.0 }
 0x1e5   : > { %v1652_v45 = vmax.f32 %v1354_v41, 0.0  ;;  %1618 = vmatmul.mubr.bf16.gmra.mrb[184].mxu1 %v3137_v62 }
 0x1e6   : > { %v1653_v47 = vmax.f32 %v1356_v2, 0.0  ;;  %1627 = vmatprep.mubr.bf16.mxu1 %v3151_v61 }
 0x1e7   : > { %v1772_v52 = vpack.c.bf16 %v1652_v45, %v1650_v44 }
 0x1e8   : > { %v1773_v54 = vpack.c.bf16 %v1653_v47, %v1651_v4  ;;  %v1359_v57 = vpop.f32.mrb[80].mxu1 }
 0x1e9   : > { %v1360_v60 = vadd.f32 %v1359_v57, %v3180_v20  ;;  %v1361_v19 = vpop.f32.mrb[81].mxu1 }
 0x1ea   : > { %v1362_v51 = vadd.f32 %v1361_v19, %v3185_v48  ;;  %v1363_v16 = vpop.f32.mrb[82].mxu1  ;;  %2021 = vmatprep.mubr.bf16.mxu0 %v1773_v54 }
 0x1eb   : > { %v1364_v22 = vadd.f32 %v1363_v16, %v3180_v20  ;;  %v1365_v49 = vpop.f32.mrb[83].mxu1  ;;  %2022 = vmatmul.mubr.bf16.gmra.mrb[76].mxu0 %v1772_v52  ;;  %v1654_v53 = vmax.f32 %v1360_v60, 0.0 }
 0x1ec   : > { %v1366_v62 = vadd.f32 %v1365_v49, %v3185_v48  ;;  %v1655_v61 = vmax.f32 %v1362_v51, 0.0 }
 0x1ed   : > { %v1656_v23 = vmax.f32 %v1364_v22, 0.0  ;;  %1628 = vmatmul.mubr.bf16.gmra.mrb[188].mxu1 %v3149_v58 }
 0x1ee   : > { %v1657_v26 = vmax.f32 %v1366_v62, 0.0 }
 0x1ef   : > { %v1774_v56 = vpack.c.bf16 %v1656_v23, %v1654_v53 }
 0x1f0   : > { %v1775_v15 = vpack.c.bf16 %v1657_v26, %v1655_v61  ;;  %v1369_v59 = vpop.f32.mrb[84].mxu1 }
 0x1f1   : > { %v1370_v31 = vadd.f32 %v1369_v59, %v3180_v20  ;;  %v1371_v14 = vpop.f32.mrb[85].mxu1 }
 0x1f2   : > { %v1372_v17 = vadd.f32 %v1371_v14, %v3185_v48  ;;  %v1373_v34 = vpop.f32.mrb[86].mxu1  ;;  %2029 = vmatprep.mubr.bf16.mxu0 %v1775_v15 }
 0x1f3   : > { %v1374_v3 = vadd.f32 %v1373_v34, %v3180_v20  ;;  %v1375_v6 = vpop.f32.mrb[87].mxu1  ;;  %2030 = vmatmul.mubr.bf16.gmra.mrb[80].mxu0 %v1774_v56  ;;  %v1658_v46 = vmax.f32 %v1370_v31, 0.0 }
 0x1f4   : > { %v1376_v43 = vadd.f32 %v1375_v6, %v3185_v48  ;;  %v1659_v25 = vmax.f32 %v1372_v17, 0.0 }
 0x1f5   : > { %v1660_v58 = vmax.f32 %v1374_v3, 0.0 }
 0x1f6   : > { %v1661_v29 = vmax.f32 %v1376_v43, 0.0 }
 0x1f7   : > { %v1776_v1 = vpack.c.bf16 %v1660_v58, %v1658_v46 }
 0x1f8   : > { %v1777_v7 = vpack.c.bf16 %v1661_v29, %v1659_v25  ;;  %v1379_v50 = vpop.f32.mrb[88].mxu1 }
 0x1f9   : > { %v1380_v55 = vadd.f32 %v1379_v50, %v3180_v20  ;;  %v1381_v35 = vpop.f32.mrb[89].mxu1 }
 0x1fa   : > { %v1382_v38 = vadd.f32 %v1381_v35, %v3185_v48  ;;  %v1383_v27 = vpop.f32.mrb[90].mxu1  ;;  %2037 = vmatprep.mubr.bf16.mxu0 %v1777_v7 }
 0x1fb   : > { %v1384_v63 = vadd.f32 %v1383_v27, %v3180_v20  ;;  %v1385_v0 = vpop.f32.mrb[91].mxu1  ;;  %2038 = vmatmul.mubr.bf16.gmra.mrb[84].mxu0 %v1776_v1  ;;  %v1662_v8 = vmax.f32 %v1380_v55, 0.0 }
 0x1fc   : > { %v1386_v5 = vadd.f32 %v1385_v0, %v3185_v48  ;;  %v1663_v11 = vmax.f32 %v1382_v38, 0.0 }
 0x1fd   : > { %v1664_v9 = vmax.f32 %v1384_v63, 0.0 }
 0x1fe   : > { %v1665_v13 = vmax.f32 %v1386_v5, 0.0 }
 0x1ff   : > { %v1778_v12 = vpack.c.bf16 %v1664_v9, %v1662_v8 }
 0x200   : > { %v1779_v18 = vpack.c.bf16 %v1665_v13, %v1663_v11  ;;  %v1389_v21 = vpop.f32.mrb[92].mxu1 }
 0x201   : > { %v1390_v24 = vadd.f32 %v1389_v21, %v3180_v20  ;;  %v1391_v10 = vpop.f32.mrb[93].mxu1 }
 0x202   : > { %v1392_v28 = vadd.f32 %v1391_v10, %v3185_v48  ;;  %v1393_v30 = vpop.f32.mrb[94].mxu1  ;;  %2045 = vmatprep.mubr.bf16.mxu0 %v1779_v18 }
 0x203   : > { %v1394_v32 = vadd.f32 %v1393_v30, %v3180_v20  ;;  %v1395_v33 = vpop.f32.mrb[95].mxu1  ;;  %2046 = vmatmul.mubr.bf16.gmra.mrb[88].mxu0 %v1778_v12  ;;  %v1666_v37 = vmax.f32 %v1390_v24, 0.0 }
 0x204   : > { %v1396_v36 = vadd.f32 %v1395_v33, %v3185_v48  ;;  %v1667_v40 = vmax.f32 %v1392_v28, 0.0 }
 0x205   : > { %v1668_v39 = vmax.f32 %v1394_v32, 0.0 }
 0x206   : > { %v1669_v41 = vmax.f32 %v1396_v36, 0.0 }
 0x207   : > { %v1780_v42 = vpack.c.bf16 %v1668_v39, %v1666_v37 }
 0x208   : > { %v1781_v2 = vpack.c.bf16 %v1669_v41, %v1667_v40  ;;  %v1399_v44 = vpop.f32.mrb[96].mxu1 }
 0x209   : > { %v1400_v45 = vadd.f32 %v1399_v44, %v3180_v20  ;;  %v1401_v4 = vpop.f32.mrb[97].mxu1 }
 0x20a   : > { %v1402_v47 = vadd.f32 %v1401_v4, %v3185_v48  ;;  %v1403_v52 = vpop.f32.mrb[98].mxu1  ;;  %2053 = vmatprep.mubr.bf16.mxu0 %v1781_v2 }
 0x20b   : > { %v1404_v54 = vadd.f32 %v1403_v52, %v3180_v20  ;;  %v1405_v57 = vpop.f32.mrb[99].mxu1  ;;  %2054 = vmatmul.mubr.bf16.gmra.mrb[92].mxu0 %v1780_v42  ;;  %v1670_v19 = vmax.f32 %v1400_v45, 0.0 }
 0x20c   : > { %v1406_v60 = vadd.f32 %v1405_v57, %v3185_v48  ;;  %v1671_v16 = vmax.f32 %v1402_v47, 0.0 }
 0x20d   : > { %v1672_v51 = vmax.f32 %v1404_v54, 0.0 }
 0x20e   : > { %v1673_v22 = vmax.f32 %v1406_v60, 0.0 }
 0x20f   : > { %v1782_v49 = vpack.c.bf16 %v1672_v51, %v1670_v19 }
 0x210   : > { %v1783_v62 = vpack.c.bf16 %v1673_v22, %v1671_v16  ;;  %v1409_v53 = vpop.f32.mrb[100].mxu1 }
 0x211   : > { %v1410_v23 = vadd.f32 %v1409_v53, %v3180_v20  ;;  %v1411_v61 = vpop.f32.mrb[101].mxu1 }
 0x212   : > { %v1412_v26 = vadd.f32 %v1411_v61, %v3185_v48  ;;  %v1413_v56 = vpop.f32.mrb[102].mxu1  ;;  %2061 = vmatprep.mubr.bf16.mxu0 %v1783_v62 }
 0x213   : > { %v1414_v15 = vadd.f32 %v1413_v56, %v3180_v20  ;;  %v1415_v59 = vpop.f32.mrb[103].mxu1  ;;  %2062 = vmatmul.mubr.bf16.gmra.mrb[96].mxu0 %v1782_v49  ;;  %v1674_v14 = vmax.f32 %v1410_v23, 0.0 }
 0x214   : > { %v1416_v31 = vadd.f32 %v1415_v59, %v3185_v48  ;;  %v1675_v34 = vmax.f32 %v1412_v26, 0.0 }
 0x215   : > { %v1676_v17 = vmax.f32 %v1414_v15, 0.0 }
 0x216   : > { %v1677_v3 = vmax.f32 %v1416_v31, 0.0 }
 0x217   : > { %v1784_v6 = vpack.c.bf16 %v1676_v17, %v1674_v14 }
 0x218   : > { %v1785_v43 = vpack.c.bf16 %v1677_v3, %v1675_v34  ;;  %v1419_v46 = vpop.f32.mrb[104].mxu1 }
 0x219   : > { %v1420_v58 = vadd.f32 %v1419_v46, %v3180_v20  ;;  %v1421_v25 = vpop.f32.mrb[105].mxu1 }
 0x21a   : > { %v1422_v29 = vadd.f32 %v1421_v25, %v3185_v48  ;;  %v1423_v1 = vpop.f32.mrb[106].mxu1  ;;  %2069 = vmatprep.mubr.bf16.mxu0 %v1785_v43 }
 0x21b   : > { %v1424_v7 = vadd.f32 %v1423_v1, %v3180_v20  ;;  %v1425_v50 = vpop.f32.mrb[107].mxu1  ;;  %2070 = vmatmul.mubr.bf16.gmra.mrb[100].mxu0 %v1784_v6  ;;  %v1678_v35 = vmax.f32 %v1420_v58, 0.0 }
 0x21c   : > { %v1426_v55 = vadd.f32 %v1425_v50, %v3185_v48  ;;  %v1679_v27 = vmax.f32 %v1422_v29, 0.0 }
 0x21d   : > { %v1680_v38 = vmax.f32 %v1424_v7, 0.0 }
 0x21e   : > { %v1681_v63 = vmax.f32 %v1426_v55, 0.0 }
 0x21f   : > { %v1786_v0 = vpack.c.bf16 %v1680_v38, %v1678_v35 }
 0x220   : > { %v1787_v5 = vpack.c.bf16 %v1681_v63, %v1679_v27  ;;  %v1429_v8 = vpop.f32.mrb[108].mxu1 }
 0x221   : > { %v1430_v9 = vadd.f32 %v1429_v8, %v3180_v20  ;;  %v1431_v11 = vpop.f32.mrb[109].mxu1 }
 0x222   : > { %v1432_v13 = vadd.f32 %v1431_v11, %v3185_v48  ;;  %v1433_v12 = vpop.f32.mrb[110].mxu1  ;;  %2077 = vmatprep.mubr.bf16.mxu0 %v1787_v5 }
 0x223   : > { %v1434_v18 = vadd.f32 %v1433_v12, %v3180_v20  ;;  %v1435_v21 = vpop.f32.mrb[111].mxu1  ;;  %2078 = vmatmul.mubr.bf16.gmra.mrb[104].mxu0 %v1786_v0  ;;  %v1682_v10 = vmax.f32 %v1430_v9, 0.0 }
 0x224   : > { %v1436_v24 = vadd.f32 %v1435_v21, %v3185_v48  ;;  %v1683_v30 = vmax.f32 %v1432_v13, 0.0 }
 0x225   : > { %v1684_v28 = vmax.f32 %v1434_v18, 0.0 }
 0x226   : > { %v1685_v32 = vmax.f32 %v1436_v24, 0.0 }
 0x227   : > { %v1788_v33 = vpack.c.bf16 %v1684_v28, %v1682_v10 }
 0x228   : > { %v1789_v36 = vpack.c.bf16 %v1685_v32, %v1683_v30  ;;  %v1439_v37 = vpop.f32.mrb[112].mxu1 }
 0x229   : > { %v1440_v39 = vadd.f32 %v1439_v37, %v3180_v20  ;;  %v1441_v40 = vpop.f32.mrb[113].mxu1 }
 0x22a   : > { %v1442_v41 = vadd.f32 %v1441_v40, %v3185_v48  ;;  %v1443_v42 = vpop.f32.mrb[114].mxu1  ;;  %2085 = vmatprep.mubr.bf16.mxu0 %v1789_v36 }
 0x22b   : > { %v1444_v2 = vadd.f32 %v1443_v42, %v3180_v20  ;;  %v1445_v44 = vpop.f32.mrb[115].mxu1  ;;  %2086 = vmatmul.mubr.bf16.gmra.mrb[108].mxu0 %v1788_v33  ;;  %v1686_v4 = vmax.f32 %v1440_v39, 0.0 }
 0x22c   : > { %v1446_v45 = vadd.f32 %v1445_v44, %v3185_v48  ;;  %v1687_v52 = vmax.f32 %v1442_v41, 0.0 }
 0x22d   : > { %v1688_v47 = vmax.f32 %v1444_v2, 0.0 }
 0x22e   : > { %v1689_v54 = vmax.f32 %v1446_v45, 0.0 }
 0x22f   : > { %v1790_v57 = vpack.c.bf16 %v1688_v47, %v1686_v4 }
 0x230   : > { %v1791_v60 = vpack.c.bf16 %v1689_v54, %v1687_v52  ;;  %v1449_v19 = vpop.f32.mrb[116].mxu1 }
 0x231   : > { %v1450_v51 = vadd.f32 %v1449_v19, %v3180_v20  ;;  %v1451_v16 = vpop.f32.mrb[117].mxu1 }
 0x232   : > { %v1452_v22 = vadd.f32 %v1451_v16, %v3185_v48  ;;  %v1453_v49 = vpop.f32.mrb[118].mxu1  ;;  %2093 = vmatprep.mubr.bf16.mxu0 %v1791_v60 }
 0x233   : > { %v1454_v62 = vadd.f32 %v1453_v49, %v3180_v20  ;;  %v1455_v53 = vpop.f32.mrb[119].mxu1  ;;  %2094 = vmatmul.mubr.bf16.gmra.mrb[112].mxu0 %v1790_v57  ;;  %v1690_v61 = vmax.f32 %v1450_v51, 0.0 }
 0x234   : > { %v1456_v23 = vadd.f32 %v1455_v53, %v3185_v48  ;;  %v1691_v56 = vmax.f32 %v1452_v22, 0.0 }
 0x235   : > { %v1692_v26 = vmax.f32 %v1454_v62, 0.0 }
 0x236   : > { %v1693_v15 = vmax.f32 %v1456_v23, 0.0 }
 0x237   : > { %v1792_v59 = vpack.c.bf16 %v1692_v26, %v1690_v61 }
 0x238   : > { %v1793_v31 = vpack.c.bf16 %v1693_v15, %v1691_v56  ;;  %v1459_v14 = vpop.f32.mrb[120].mxu1 }
 0x239   : > { %v1460_v17 = vadd.f32 %v1459_v14, %v3180_v20  ;;  %v1461_v34 = vpop.f32.mrb[121].mxu1 }
 0x23a   : > { %v1462_v3 = vadd.f32 %v1461_v34, %v3185_v48  ;;  %v1463_v6 = vpop.f32.mrb[122].mxu1  ;;  %2101 = vmatprep.mubr.bf16.mxu0 %v1793_v31 }
 0x23b   : > { %v1464_v43 = vadd.f32 %v1463_v6, %v3180_v20  ;;  %v1465_v46 = vpop.f32.mrb[123].mxu1  ;;  %2102 = vmatmul.mubr.bf16.gmra.mrb[116].mxu0 %v1792_v59  ;;  %v1694_v25 = vmax.f32 %v1460_v17, 0.0 }
 0x23c   : > { %v1466_v58 = vadd.f32 %v1465_v46, %v3185_v48  ;;  %v1695_v1 = vmax.f32 %v1462_v3, 0.0 }
 0x23d   : > { %v1696_v29 = vmax.f32 %v1464_v43, 0.0 }
 0x23e   : > { %v1697_v7 = vmax.f32 %v1466_v58, 0.0 }
 0x23f   : > { %v1794_v50 = vpack.c.bf16 %v1696_v29, %v1694_v25 }
 0x240   : > { %v1795_v55 = vpack.c.bf16 %v1697_v7, %v1695_v1  ;;  %v1469_v35 = vpop.f32.mrb[124].mxu1 }
 0x241   : > { %v1470_v38 = vadd.f32 %v1469_v35, %v3180_v20  ;;  %v1471_v27 = vpop.f32.mrb[125].mxu1 }
 0x242   : > { %v1472_v63 = vadd.f32 %v1471_v27, %v3185_v48  ;;  %v1473_v0 = vpop.f32.mrb[126].mxu1  ;;  %2109 = vmatprep.mubr.bf16.mxu0 %v1795_v55 }
 0x243   : > { %v1474_v5 = vadd.f32 %v1473_v0, %v3180_v20  ;;  %v1475_v8 = vpop.f32.mrb[127].mxu1  ;;  %2110 = vmatmul.mubr.bf16.gmra.mrb[120].mxu0 %v1794_v50  ;;  %v1698_v11 = vmax.f32 %v1470_v38, 0.0 }
 0x244   : > { %v1476_v9 = vadd.f32 %v1475_v8, %v3185_v48  ;;  %v1699_v12 = vmax.f32 %v1472_v63, 0.0 }
 0x245   : > { %v1700_v13 = vmax.f32 %v1474_v5, 0.0 }
 0x246   : > { %v1701_v18 = vmax.f32 %v1476_v9, 0.0 }
 0x247   : > { %v1796_v21 = vpack.c.bf16 %v1700_v13, %v1698_v11 }
 0x248   : > { %v1797_v24 = vpack.c.bf16 %v1701_v18, %v1699_v12  ;;  %v1479_v10 = vpop.f32.mrb[128].mxu1 }
 0x249   : > { %v1480_v28 = vadd.f32 %v1479_v10, %v3180_v20  ;;  %v1481_v30 = vpop.f32.mrb[129].mxu1 }
 0x24a   : > { %v1482_v32 = vadd.f32 %v1481_v30, %v3185_v48  ;;  %v1483_v33 = vpop.f32.mrb[130].mxu1  ;;  %2117 = vmatprep.mubr.bf16.mxu0 %v1797_v24 }
 0x24b   : > { %v1484_v36 = vadd.f32 %v1483_v33, %v3180_v20  ;;  %v1485_v37 = vpop.f32.mrb[131].mxu1  ;;  %2118 = vmatmul.mubr.bf16.gmra.mrb[124].mxu0 %v1796_v21  ;;  %v1702_v40 = vmax.f32 %v1480_v28, 0.0 }
 0x24c   : > { %v1486_v39 = vadd.f32 %v1485_v37, %v3185_v48  ;;  %v1703_v42 = vmax.f32 %v1482_v32, 0.0 }
 0x24d   : > { %v1704_v41 = vmax.f32 %v1484_v36, 0.0 }
 0x24e   : > { %v1705_v2 = vmax.f32 %v1486_v39, 0.0 }
 0x24f   : > { %v1798_v44 = vpack.c.bf16 %v1704_v41, %v1702_v40 }
 0x250   : > { %v1799_v45 = vpack.c.bf16 %v1705_v2, %v1703_v42  ;;  %v1489_v4 = vpop.f32.mrb[132].mxu1 }
 0x251   : > { %v1490_v47 = vadd.f32 %v1489_v4, %v3180_v20  ;;  %v1491_v52 = vpop.f32.mrb[133].mxu1 }
 0x252   : > { %v1492_v54 = vadd.f32 %v1491_v52, %v3185_v48  ;;  %v1493_v57 = vpop.f32.mrb[134].mxu1  ;;  %2125 = vmatprep.mubr.bf16.mxu0 %v1799_v45 }
 0x253   : > { %v1494_v60 = vadd.f32 %v1493_v57, %v3180_v20  ;;  %v1495_v19 = vpop.f32.mrb[135].mxu1  ;;  %2126 = vmatmul.mubr.bf16.gmra.mrb[128].mxu0 %v1798_v44  ;;  %v1706_v16 = vmax.f32 %v1490_v47, 0.0 }
 0x254   : > { %v1496_v51 = vadd.f32 %v1495_v19, %v3185_v48  ;;  %v1707_v49 = vmax.f32 %v1492_v54, 0.0 }
 0x255   : > { %v1708_v22 = vmax.f32 %v1494_v60, 0.0 }
 0x256   : > { %v1709_v62 = vmax.f32 %v1496_v51, 0.0 }
 0x257   : > { %v1800_v53 = vpack.c.bf16 %v1708_v22, %v1706_v16 }
 0x258   : > { %v1801_v23 = vpack.c.bf16 %v1709_v62, %v1707_v49  ;;  %v1499_v61 = vpop.f32.mrb[136].mxu1 }
 0x259   : > { %v1500_v26 = vadd.f32 %v1499_v61, %v3180_v20  ;;  %v1501_v56 = vpop.f32.mrb[137].mxu1 }
 0x25a   : > { %v1502_v15 = vadd.f32 %v1501_v56, %v3185_v48  ;;  %v1503_v59 = vpop.f32.mrb[138].mxu1  ;;  %2133 = vmatprep.mubr.bf16.mxu0 %v1801_v23 }
 0x25b   : > { %v1504_v31 = vadd.f32 %v1503_v59, %v3180_v20  ;;  %v1505_v14 = vpop.f32.mrb[139].mxu1  ;;  %2134 = vmatmul.mubr.bf16.gmra.mrb[132].mxu0 %v1800_v53  ;;  %v1710_v34 = vmax.f32 %v1500_v26, 0.0 }
 0x25c   : > { %v1506_v17 = vadd.f32 %v1505_v14, %v3185_v48  ;;  %v1711_v6 = vmax.f32 %v1502_v15, 0.0 }
 0x25d   : > { %v1712_v3 = vmax.f32 %v1504_v31, 0.0 }
 0x25e   : > { %v1713_v43 = vmax.f32 %v1506_v17, 0.0 }
 0x25f   : > { %v1802_v46 = vpack.c.bf16 %v1712_v3, %v1710_v34 }
 0x260   : > { %v1803_v58 = vpack.c.bf16 %v1713_v43, %v1711_v6  ;;  %v1509_v25 = vpop.f32.mrb[140].mxu1 }
 0x261   : > { %v1510_v29 = vadd.f32 %v1509_v25, %v3180_v20  ;;  %v1511_v1 = vpop.f32.mrb[141].mxu1 }
 0x262   : > { %v1512_v7 = vadd.f32 %v1511_v1, %v3185_v48  ;;  %v1513_v50 = vpop.f32.mrb[142].mxu1  ;;  %2141 = vmatprep.mubr.bf16.mxu0 %v1803_v58 }
 0x263   : > { %v1514_v55 = vadd.f32 %v1513_v50, %v3180_v20  ;;  %v1515_v35 = vpop.f32.mrb[143].mxu1  ;;  %2142 = vmatmul.mubr.bf16.gmra.mrb[136].mxu0 %v1802_v46  ;;  %v1714_v27 = vmax.f32 %v1510_v29, 0.0 }
 0x264   : > { %v1516_v38 = vadd.f32 %v1515_v35, %v3185_v48  ;;  %v1715_v0 = vmax.f32 %v1512_v7, 0.0 }
 0x265   : > { %v1716_v63 = vmax.f32 %v1514_v55, 0.0 }
 0x266   : > { %v1717_v5 = vmax.f32 %v1516_v38, 0.0 }
 0x267   : > { %v1804_v8 = vpack.c.bf16 %v1716_v63, %v1714_v27 }
 0x268   : > { %v1805_v9 = vpack.c.bf16 %v1717_v5, %v1715_v0  ;;  %v1519_v11 = vpop.f32.mrb[144].mxu1 }
 0x269   : > { %v1520_v13 = vadd.f32 %v1519_v11, %v3180_v20  ;;  %v1521_v12 = vpop.f32.mrb[145].mxu1 }
 0x26a   : > { %v1522_v18 = vadd.f32 %v1521_v12, %v3185_v48  ;;  %v1523_v21 = vpop.f32.mrb[146].mxu1  ;;  %2149 = vmatprep.mubr.bf16.mxu0 %v1805_v9 }
 0x26b   : > { %v1524_v24 = vadd.f32 %v1523_v21, %v3180_v20  ;;  %v1525_v10 = vpop.f32.mrb[147].mxu1  ;;  %2150 = vmatmul.mubr.bf16.gmra.mrb[140].mxu0 %v1804_v8  ;;  %v1718_v30 = vmax.f32 %v1520_v13, 0.0 }
 0x26c   : > { %v1526_v28 = vadd.f32 %v1525_v10, %v3185_v48  ;;  %v1719_v33 = vmax.f32 %v1522_v18, 0.0 }
 0x26d   : > { %v1720_v32 = vmax.f32 %v1524_v24, 0.0 }
 0x26e   : > { %v1721_v36 = vmax.f32 %v1526_v28, 0.0 }
 0x26f   : > { %v1806_v37 = vpack.c.bf16 %v1720_v32, %v1718_v30 }
 0x270   : > { %v1807_v39 = vpack.c.bf16 %v1721_v36, %v1719_v33  ;;  %v1529_v40 = vpop.f32.mrb[148].mxu1 }
 0x271   : > { %v1530_v41 = vadd.f32 %v1529_v40, %v3180_v20  ;;  %v1531_v42 = vpop.f32.mrb[149].mxu1 }
 0x272   : > { %v1532_v2 = vadd.f32 %v1531_v42, %v3185_v48  ;;  %v1533_v44 = vpop.f32.mrb[150].mxu1  ;;  %2157 = vmatprep.mubr.bf16.mxu0 %v1807_v39 }
 0x273   : > { %v1534_v45 = vadd.f32 %v1533_v44, %v3180_v20  ;;  %v1535_v4 = vpop.f32.mrb[151].mxu1  ;;  %2158 = vmatmul.mubr.bf16.gmra.mrb[144].mxu0 %v1806_v37  ;;  %v1722_v52 = vmax.f32 %v1530_v41, 0.0 }
 0x274   : > { %v1536_v47 = vadd.f32 %v1535_v4, %v3185_v48  ;;  %v1723_v57 = vmax.f32 %v1532_v2, 0.0 }
 0x275   : > { %v1724_v54 = vmax.f32 %v1534_v45, 0.0 }
 0x276   : > { %v1725_v60 = vmax.f32 %v1536_v47, 0.0 }
 0x277   : > { %v1808_v19 = vpack.c.bf16 %v1724_v54, %v1722_v52 }
 0x278   : > { %v1809_v51 = vpack.c.bf16 %v1725_v60, %v1723_v57  ;;  %v1539_v16 = vpop.f32.mrb[152].mxu1 }
 0x279   : > { %v1540_v22 = vadd.f32 %v1539_v16, %v3180_v20  ;;  %v1541_v49 = vpop.f32.mrb[153].mxu1 }
 0x27a   : > { %v1542_v62 = vadd.f32 %v1541_v49, %v3185_v48  ;;  %v1543_v53 = vpop.f32.mrb[154].mxu1  ;;  %2165 = vmatprep.mubr.bf16.mxu0 %v1809_v51 }
 0x27b   : > { %v1544_v23 = vadd.f32 %v1543_v53, %v3180_v20  ;;  %v1545_v61 = vpop.f32.mrb[155].mxu1  ;;  %2166 = vmatmul.mubr.bf16.gmra.mrb[148].mxu0 %v1808_v19  ;;  %v1726_v56 = vmax.f32 %v1540_v22, 0.0 }
 0x27c   : > { %v1546_v26 = vadd.f32 %v1545_v61, %v3185_v48  ;;  %v1727_v59 = vmax.f32 %v1542_v62, 0.0 }
 0x27d   : > { %v1728_v15 = vmax.f32 %v1544_v23, 0.0 }
 0x27e   : > { %v1729_v31 = vmax.f32 %v1546_v26, 0.0 }
 0x27f   : > { %v1810_v14 = vpack.c.bf16 %v1728_v15, %v1726_v56 }
 0x280   : > { %v1811_v17 = vpack.c.bf16 %v1729_v31, %v1727_v59  ;;  %v1549_v34 = vpop.f32.mrb[156].mxu1 }
 0x281   : > { %v1550_v3 = vadd.f32 %v1549_v34, %v3180_v20  ;;  %v1551_v6 = vpop.f32.mrb[157].mxu1 }
 0x282   : > { %v1552_v43 = vadd.f32 %v1551_v6, %v3185_v48  ;;  %v1553_v46 = vpop.f32.mrb[158].mxu1  ;;  %2173 = vmatprep.mubr.bf16.mxu0 %v1811_v17  ;;  %v3311_v6 = vld [vmem:[%s3473_s6] ss:$0 sm:$0xff] }
 0x283   : > { %v1554_v58 = vadd.f32 %v1553_v46, %v3180_v20  ;;  %v1555_v25 = vpop.f32.mrb[159].mxu1  ;;  %2174 = vmatmul.mubr.bf16.gmra.mrb[152].mxu0 %v1810_v14  ;;  %v1730_v1 = vmax.f32 %v1550_v3, 0.0 }
 0x284   : > { %v1556_v29 = vadd.f32 %v1555_v25, %v3185_v48  ;;  %v1731_v50 = vmax.f32 %v1552_v43, 0.0 }
 0x285   : > { %v1732_v7 = vmax.f32 %v1554_v58, 0.0 }
 0x286   : > { %v1733_v55 = vmax.f32 %v1556_v29, 0.0 }
 0x287   : > { %v1812_v35 = vpack.c.bf16 %v1732_v7, %v1730_v1 }
 0x288   : > { %v1813_v38 = vpack.c.bf16 %v1733_v55, %v1731_v50  ;;  %v1559_v27 = vpop.f32.mrb[160].mxu1 }
 0x289   : > { %v1560_v63 = vadd.f32 %v1559_v27, %v3180_v20  ;;  %v1561_v0 = vpop.f32.mrb[161].mxu1 }
 0x28a   : > { %v1562_v5 = vadd.f32 %v1561_v0, %v3185_v48  ;;  %v1563_v8 = vpop.f32.mrb[162].mxu1  ;;  %2181 = vmatprep.mubr.bf16.mxu0 %v1813_v38 }
 0x28b   : > { %v1564_v9 = vadd.f32 %v1563_v8, %v3180_v20  ;;  %v1565_v11 = vpop.f32.mrb[163].mxu1  ;;  %2182 = vmatmul.mubr.bf16.gmra.mrb[156].mxu0 %v1812_v35  ;;  %v1734_v12 = vmax.f32 %v1560_v63, 0.0 }
 0x28c   : > { %v1566_v13 = vadd.f32 %v1565_v11, %v3185_v48  ;;  %v1735_v21 = vmax.f32 %v1562_v5, 0.0 }
 0x28d   : > { %v1736_v18 = vmax.f32 %v1564_v9, 0.0 }
 0x28e   : > { %v1737_v24 = vmax.f32 %v1566_v13, 0.0 }
 0x28f   : > { %v1814_v10 = vpack.c.bf16 %v1736_v18, %v1734_v12 }
 0x290   : > { %v1815_v28 = vpack.c.bf16 %v1737_v24, %v1735_v21  ;;  %v1569_v30 = vpop.f32.mrb[164].mxu1 }
 0x291   : > { %v1570_v32 = vadd.f32 %v1569_v30, %v3180_v20  ;;  %v1571_v33 = vpop.f32.mrb[165].mxu1 }
 0x292   : > { %v1572_v36 = vadd.f32 %v1571_v33, %v3185_v48  ;;  %v1573_v37 = vpop.f32.mrb[166].mxu1  ;;  %2189 = vmatprep.mubr.bf16.mxu0 %v1815_v28 }
 0x293   : > { %v1574_v39 = vadd.f32 %v1573_v37, %v3180_v20  ;;  %v1575_v40 = vpop.f32.mrb[167].mxu1  ;;  %2190 = vmatmul.mubr.bf16.gmra.mrb[160].mxu0 %v1814_v10  ;;  %v1738_v42 = vmax.f32 %v1570_v32, 0.0 }
 0x294   : > { %v1576_v41 = vadd.f32 %v1575_v40, %v3185_v48  ;;  %v1739_v44 = vmax.f32 %v1572_v36, 0.0 }
 0x295   : > { %v1740_v2 = vmax.f32 %v1574_v39, 0.0 }
 0x296   : > { %v1741_v45 = vmax.f32 %v1576_v41, 0.0 }
 0x297   : > { %v1816_v4 = vpack.c.bf16 %v1740_v2, %v1738_v42 }
 0x298   : > { %v1817_v47 = vpack.c.bf16 %v1741_v45, %v1739_v44  ;;  %v1579_v52 = vpop.f32.mrb[168].mxu1 }
 0x299   : > { %v1580_v54 = vadd.f32 %v1579_v52, %v3180_v20  ;;  %v1581_v57 = vpop.f32.mrb[169].mxu1 }
 0x29a   : > { %v1582_v60 = vadd.f32 %v1581_v57, %v3185_v48  ;;  %v1583_v19 = vpop.f32.mrb[170].mxu1  ;;  %2197 = vmatprep.mubr.bf16.mxu0 %v1817_v47 }
 0x29b   : > { %v1584_v51 = vadd.f32 %v1583_v19, %v3180_v20  ;;  %v1585_v16 = vpop.f32.mrb[171].mxu1  ;;  %2198 = vmatmul.mubr.bf16.gmra.mrb[164].mxu0 %v1816_v4  ;;  %v1742_v49 = vmax.f32 %v1580_v54, 0.0 }
 0x29c   : > { %v1586_v22 = vadd.f32 %v1585_v16, %v3185_v48  ;;  %v1743_v53 = vmax.f32 %v1582_v60, 0.0 }
 0x29d   : > { %v1744_v62 = vmax.f32 %v1584_v51, 0.0 }
 0x29e   : > { %v1745_v23 = vmax.f32 %v1586_v22, 0.0 }
 0x29f   : > { %v1818_v61 = vpack.c.bf16 %v1744_v62, %v1742_v49 }
 0x2a0   : > { %v1819_v26 = vpack.c.bf16 %v1745_v23, %v1743_v53  ;;  %v1589_v56 = vpop.f32.mrb[172].mxu1 }
 0x2a1   : > { %v1590_v15 = vadd.f32 %v1589_v56, %v3180_v20  ;;  %v1591_v59 = vpop.f32.mrb[173].mxu1 }
 0x2a2   : > { %v1592_v31 = vadd.f32 %v1591_v59, %v3185_v48  ;;  %v1593_v14 = vpop.f32.mrb[174].mxu1  ;;  %2205 = vmatprep.mubr.bf16.mxu0 %v1819_v26 }
 0x2a3   : > { %v1594_v17 = vadd.f32 %v1593_v14, %v3180_v20  ;;  %v1595_v34 = vpop.f32.mrb[175].mxu1  ;;  %2206 = vmatmul.mubr.bf16.gmra.mrb[168].mxu0 %v1818_v61  ;;  %v1746_v43 = vmax.f32 %v1590_v15, 0.0 }
 0x2a4   : > { %v1596_v3 = vadd.f32 %v1595_v34, %v3185_v48  ;;  %v1747_v58 = vmax.f32 %v1592_v31, 0.0 }
 0x2a5   : > { %v1748_v46 = vmax.f32 %v1594_v17, 0.0 }
 0x2a6   : > { %v1749_v25 = vmax.f32 %v1596_v3, 0.0  ;;  %v1999_v29 = vpop.f32.mrb[64].mxu0 }
 0x2a7   : > { %v1820_v1 = vpack.c.bf16 %v1748_v46, %v1746_v43  ;;  %v2000_v7 = vadd.f32 %v3311_v6, %v1999_v29  ;;  %v2001_v50 = vpop.f32.mrb[65].mxu0 }
 0x2a8   : > { %v1821_v55 = vpack.c.bf16 %v1749_v25, %v1747_v58  ;;  %v1599_v35 = vpop.f32.mrb[176].mxu1  ;;  %v2002_v38 = vpop.f32.mrb[66].mxu0 }
 0x2a9   : > { %2254 = vst [vmem:[%s3318_s10] sm:$0xff] %v2000_v7  ;;  %v1600_v27 = vadd.f32 %v1599_v35, %v3180_v20  ;;  %v2003_v63 = vadd.f32 %v3311_v6, %v2002_v38  ;;  %v1601_v0 = vpop.f32.mrb[177].mxu1  ;;  %v2004_v5 = vpop.f32.mrb[67].mxu0 }
 0x2aa   : > { %v1602_v8 = vadd.f32 %v1601_v0, %v3185_v48  ;;  %v1603_v9 = vpop.f32.mrb[178].mxu1  ;;  %2213 = vmatprep.mubr.bf16.mxu0 %v1821_v55 }
 0x2ab   : > { %2255 = vst [vmem:[%s3318_s10 + $0x8] sm:$0xff] %v2003_v63  ;;  %v1604_v11 = vadd.f32 %v1603_v9, %v3180_v20  ;;  %v1605_v13 = vpop.f32.mrb[179].mxu1  ;;  %2214 = vmatmul.mubr.bf16.gmra.mrb[172].mxu0 %v1820_v1  ;;  %v1750_v18 = vmax.f32 %v1600_v27, 0.0 }
 0x2ac   : > { %v1606_v12 = vadd.f32 %v1605_v13, %v3185_v48  ;;  %v1751_v24 = vmax.f32 %v1602_v8, 0.0 }
 0x2ad   : > { %v1752_v21 = vmax.f32 %v1604_v11, 0.0 }
 0x2ae   : > { %v1753_v10 = vmax.f32 %v1606_v12, 0.0  ;;  %v2007_v28 = vpop.f32.mrb[68].mxu0 }
 0x2af   : > { %v1822_v30 = vpack.c.bf16 %v1752_v21, %v1750_v18  ;;  %v2008_v32 = vadd.f32 %v3311_v6, %v2007_v28  ;;  %v2009_v33 = vpop.f32.mrb[69].mxu0 }
 0x2b0   : > { %v1823_v36 = vpack.c.bf16 %v1753_v10, %v1751_v24  ;;  %v1609_v37 = vpop.f32.mrb[180].mxu1  ;;  %v2010_v39 = vpop.f32.mrb[70].mxu0 }
 0x2b1   : > { %2256 = vst [vmem:[%s3318_s10 + $0x10] sm:$0xff] %v2008_v32  ;;  %v1610_v40 = vadd.f32 %v1609_v37, %v3180_v20  ;;  %v2011_v41 = vadd.f32 %v3311_v6, %v2010_v39  ;;  %v1611_v42 = vpop.f32.mrb[181].mxu1  ;;  %v2012_v2 = vpop.f32.mrb[71].mxu0 }
 0x2b2   : > { %v1612_v44 = vadd.f32 %v1611_v42, %v3185_v48  ;;  %v1613_v45 = vpop.f32.mrb[182].mxu1  ;;  %2221 = vmatprep.mubr.bf16.mxu0 %v1823_v36 }
 0x2b3   : > { %2257 = vst [vmem:[%s3318_s10 + $0x18] sm:$0xff] %v2011_v41  ;;  %v1614_v4 = vadd.f32 %v1613_v45, %v3180_v20  ;;  %v1615_v47 = vpop.f32.mrb[183].mxu1  ;;  %2222 = vmatmul.mubr.bf16.gmra.mrb[176].mxu0 %v1822_v30  ;;  %v1754_v54 = vmax.f32 %v1610_v40, 0.0 }
 0x2b4   : > { %v1616_v52 = vadd.f32 %v1615_v47, %v3185_v48  ;;  %v1755_v60 = vmax.f32 %v1612_v44, 0.0 }
 0x2b5   : > { %v1756_v57 = vmax.f32 %v1614_v4, 0.0 }
 0x2b6   : > { %v1757_v19 = vmax.f32 %v1616_v52, 0.0  ;;  %v2015_v51 = vpop.f32.mrb[72].mxu0 }
 0x2b7   : > { %v1824_v16 = vpack.c.bf16 %v1756_v57, %v1754_v54  ;;  %v2016_v22 = vadd.f32 %v3311_v6, %v2015_v51  ;;  %v2017_v49 = vpop.f32.mrb[73].mxu0 }
 0x2b8   : > { %v1825_v62 = vpack.c.bf16 %v1757_v19, %v1755_v60  ;;  %v1619_v53 = vpop.f32.mrb[184].mxu1  ;;  %v2018_v23 = vpop.f32.mrb[74].mxu0 }
 0x2b9   : > { %2258 = vst [vmem:[%s3318_s10 + $0x20] sm:$0xff] %v2016_v22  ;;  %v1620_v61 = vadd.f32 %v1619_v53, %v3180_v20  ;;  %v2019_v26 = vadd.f32 %v3311_v6, %v2018_v23  ;;  %v1621_v56 = vpop.f32.mrb[185].mxu1  ;;  %v2020_v15 = vpop.f32.mrb[75].mxu0 }
 0x2ba   : > { %v1622_v59 = vadd.f32 %v1621_v56, %v3185_v48  ;;  %v1623_v31 = vpop.f32.mrb[186].mxu1  ;;  %2229 = vmatprep.mubr.bf16.mxu0 %v1825_v62 }
 0x2bb   : > { %2259 = vst [vmem:[%s3318_s10 + $0x28] sm:$0xff] %v2019_v26  ;;  %v1624_v14 = vadd.f32 %v1623_v31, %v3180_v20  ;;  %v1625_v17 = vpop.f32.mrb[187].mxu1  ;;  %2230 = vmatmul.mubr.bf16.gmra.mrb[180].mxu0 %v1824_v16  ;;  %v1758_v3 = vmax.f32 %v1620_v61, 0.0 }
 0x2bc   : > { %v1626_v34 = vadd.f32 %v1625_v17, %v3185_v48  ;;  %v1759_v46 = vmax.f32 %v1622_v59, 0.0 }
 0x2bd   : > { %v1760_v43 = vmax.f32 %v1624_v14, 0.0 }
 0x2be   : > { %v1761_v58 = vmax.f32 %v1626_v34, 0.0  ;;  %v2023_v25 = vpop.f32.mrb[76].mxu0 }
 0x2bf   : > { %v1826_v29 = vpack.c.bf16 %v1760_v43, %v1758_v3  ;;  %v2024_v1 = vadd.f32 %v3311_v6, %v2023_v25  ;;  %v2025_v7 = vpop.f32.mrb[77].mxu0 }
 0x2c0   : > { %v1827_v50 = vpack.c.bf16 %v1761_v58, %v1759_v46  ;;  %v1629_v55 = vpop.f32.mrb[188].mxu1  ;;  %v2026_v35 = vpop.f32.mrb[78].mxu0 }
 0x2c1   : > { %2260 = vst [vmem:[%s3318_s10 + $0x30] sm:$0xff] %v2024_v1  ;;  %v1630_v38 = vadd.f32 %v1629_v55, %v3180_v20  ;;  %v2027_v27 = vadd.f32 %v3311_v6, %v2026_v35  ;;  %v1631_v63 = vpop.f32.mrb[189].mxu1  ;;  %v2028_v0 = vpop.f32.mrb[79].mxu0 }
 0x2c2   : > { %v1632_v5 = vadd.f32 %v1631_v63, %v3185_v48  ;;  %v1633_v8 = vpop.f32.mrb[190].mxu1  ;;  %2237 = vmatprep.mubr.bf16.mxu0 %v1827_v50 }
 0x2c3   : > { %2261 = vst [vmem:[%s3318_s10 + $0x38] sm:$0xff] %v2027_v27  ;;  %v1634_v9 = vadd.f32 %v1633_v8, %v3180_v20  ;;  %v1635_v11 = vpop.f32.mrb[191].mxu1  ;;  %2238 = vmatmul.mubr.bf16.gmra.mrb[184].mxu0 %v1826_v29  ;;  %v1762_v12 = vmax.f32 %v1630_v38, 0.0 }
 0x2c4   : > { %v1636_v13 = vadd.f32 %v1635_v11, %v3185_v48  ;;  %v1763_v21 = vmax.f32 %v1632_v5, 0.0 }
 0x2c5   : > { %v1764_v18 = vmax.f32 %v1634_v9, 0.0 }
 0x2c6   : > { %v1765_v24 = vmax.f32 %v1636_v13, 0.0  ;;  %v2031_v10 = vpop.f32.mrb[80].mxu0 }
 0x2c7   : > { %v1828_v28 = vpack.c.bf16 %v1764_v18, %v1762_v12  ;;  %v2032_v30 = vadd.f32 %v3311_v6, %v2031_v10  ;;  %v2033_v32 = vpop.f32.mrb[81].mxu0 }
 0x2c8   : > { %v1829_v33 = vpack.c.bf16 %v1765_v24, %v1763_v21  ;;  %v2034_v36 = vpop.f32.mrb[82].mxu0 }
 0x2c9   : > { %2262 = vst [vmem:[%s3318_s10 + $0x40] sm:$0xff] %v2032_v30  ;;  %v2035_v20 = vadd.f32 %v3311_v6, %v2034_v36  ;;  %v2036_v37 = vpop.f32.mrb[83].mxu0 }
 0x2ca   : > { %2245 = vmatprep.mubr.bf16.mxu0 %v1829_v33 }
 0x2cb   : > { %2263 = vst [vmem:[%s3318_s10 + $0x48] sm:$0xff] %v2035_v20  ;;  %2246 = vmatmul.mubr.bf16.gmra.mrb[188].mxu0 %v1828_v28 }
 0x2ce   : > { %v2039_v48 = vpop.f32.mrb[84].mxu0 }
 0x2cf   : > { %v2040_v39 = vadd.f32 %v3311_v6, %v2039_v48  ;;  %v2041_v40 = vpop.f32.mrb[85].mxu0 }
 0x2d0   : > { %v2042_v41 = vpop.f32.mrb[86].mxu0 }
 0x2d1   : > { %2264 = vst [vmem:[%s3318_s10 + $0x50] sm:$0xff] %v2040_v39  ;;  %v2043_v42 = vadd.f32 %v3311_v6, %v2042_v41  ;;  %v2044_v2 = vpop.f32.mrb[87].mxu0 }
 0x2d3   : > { %2265 = vst [vmem:[%s3318_s10 + $0x58] sm:$0xff] %v2043_v42 }
 0x2d6   : > { %v2047_v44 = vpop.f32.mrb[88].mxu0 }
 0x2d7   : > { %v2048_v45 = vadd.f32 %v3311_v6, %v2047_v44  ;;  %v2049_v4 = vpop.f32.mrb[89].mxu0 }
 0x2d8   : > { %v2050_v47 = vpop.f32.mrb[90].mxu0 }
 0x2d9   : > { %2266 = vst [vmem:[%s3318_s10 + $0x60] sm:$0xff] %v2048_v45  ;;  %v2051_v52 = vadd.f32 %v3311_v6, %v2050_v47  ;;  %v2052_v54 = vpop.f32.mrb[91].mxu0 }
 0x2db   : > { %2267 = vst [vmem:[%s3318_s10 + $0x68] sm:$0xff] %v2051_v52 }
 0x2de   : > { %v2055_v57 = vpop.f32.mrb[92].mxu0 }
 0x2df   : > { %v2056_v60 = vadd.f32 %v3311_v6, %v2055_v57  ;;  %v2057_v19 = vpop.f32.mrb[93].mxu0 }
 0x2e0   : > { %v2058_v51 = vpop.f32.mrb[94].mxu0 }
 0x2e1   : > { %2268 = vst [vmem:[%s3318_s10 + $0x70] sm:$0xff] %v2056_v60  ;;  %v2059_v16 = vadd.f32 %v3311_v6, %v2058_v51  ;;  %v2060_v22 = vpop.f32.mrb[95].mxu0 }
 0x2e3   : > { %2269 = vst [vmem:[%s3318_s10 + $0x78] sm:$0xff] %v2059_v16 }
 0x2e6   : > { %v2063_v49 = vpop.f32.mrb[96].mxu0 }
 0x2e7   : > { %v2064_v62 = vadd.f32 %v3311_v6, %v2063_v49  ;;  %v2065_v53 = vpop.f32.mrb[97].mxu0 }
 0x2e8   : > { %v2066_v23 = vpop.f32.mrb[98].mxu0 }
 0x2e9   : > { %2270 = vst [vmem:[%s3318_s10 + $0x80] sm:$0xff] %v2064_v62  ;;  %v2067_v61 = vadd.f32 %v3311_v6, %v2066_v23  ;;  %v2068_v26 = vpop.f32.mrb[99].mxu0 }
 0x2eb   : > { %2271 = vst [vmem:[%s3318_s10 + $0x88] sm:$0xff] %v2067_v61 }
 0x2ee   : > { %v2071_v56 = vpop.f32.mrb[100].mxu0 }
 0x2ef   : > { %v2072_v15 = vadd.f32 %v3311_v6, %v2071_v56  ;;  %v2073_v59 = vpop.f32.mrb[101].mxu0 }
 0x2f0   : > { %v2074_v31 = vpop.f32.mrb[102].mxu0 }
 0x2f1   : > { %2272 = vst [vmem:[%s3318_s10 + $0x90] sm:$0xff] %v2072_v15  ;;  %v2075_v14 = vadd.f32 %v3311_v6, %v2074_v31  ;;  %v2076_v17 = vpop.f32.mrb[103].mxu0 }
 0x2f3   : > { %2273 = vst [vmem:[%s3318_s10 + $0x98] sm:$0xff] %v2075_v14 }
 0x2f6   : > { %v2079_v34 = vpop.f32.mrb[104].mxu0 }
 0x2f7   : > { %v2080_v3 = vadd.f32 %v3311_v6, %v2079_v34  ;;  %v2081_v43 = vpop.f32.mrb[105].mxu0 }
 0x2f8   : > { %v2082_v46 = vpop.f32.mrb[106].mxu0 }
 0x2f9   : > { %2274 = vst [vmem:[%s3318_s10 + $0xa0] sm:$0xff] %v2080_v3  ;;  %v2083_v58 = vadd.f32 %v3311_v6, %v2082_v46  ;;  %v2084_v25 = vpop.f32.mrb[107].mxu0 }
 0x2fb   : > { %2275 = vst [vmem:[%s3318_s10 + $0xa8] sm:$0xff] %v2083_v58 }
 0x2fe   : > { %v2087_v29 = vpop.f32.mrb[108].mxu0 }
 0x2ff   : > { %v2088_v1 = vadd.f32 %v3311_v6, %v2087_v29  ;;  %v2089_v7 = vpop.f32.mrb[109].mxu0 }
 0x300   : > { %v2090_v50 = vpop.f32.mrb[110].mxu0 }
 0x301   : > { %2276 = vst [vmem:[%s3318_s10 + $0xb0] sm:$0xff] %v2088_v1  ;;  %v2091_v55 = vadd.f32 %v3311_v6, %v2090_v50  ;;  %v2092_v35 = vpop.f32.mrb[111].mxu0 }
 0x303   : > { %2277 = vst [vmem:[%s3318_s10 + $0xb8] sm:$0xff] %v2091_v55 }
 0x306   : > { %v2095_v38 = vpop.f32.mrb[112].mxu0 }
 0x307   : > { %v2096_v27 = vadd.f32 %v3311_v6, %v2095_v38  ;;  %v2097_v63 = vpop.f32.mrb[113].mxu0 }
 0x308   : > { %v2098_v0 = vpop.f32.mrb[114].mxu0 }
 0x309   : > { %2278 = vst [vmem:[%s3318_s10 + $0xc0] sm:$0xff] %v2096_v27  ;;  %v2099_v5 = vadd.f32 %v3311_v6, %v2098_v0  ;;  %v2100_v8 = vpop.f32.mrb[115].mxu0 }
 0x30b   : > { %2279 = vst [vmem:[%s3318_s10 + $0xc8] sm:$0xff] %v2099_v5 }
 0x30e   : > { %v2103_v9 = vpop.f32.mrb[116].mxu0 }
 0x30f   : > { %v2104_v11 = vadd.f32 %v3311_v6, %v2103_v9  ;;  %v2105_v13 = vpop.f32.mrb[117].mxu0 }
 0x310   : > { %v2106_v12 = vpop.f32.mrb[118].mxu0 }
 0x311   : > { %2280 = vst [vmem:[%s3318_s10 + $0xd0] sm:$0xff] %v2104_v11  ;;  %v2107_v18 = vadd.f32 %v3311_v6, %v2106_v12  ;;  %v2108_v21 = vpop.f32.mrb[119].mxu0 }
 0x313   : > { %2281 = vst [vmem:[%s3318_s10 + $0xd8] sm:$0xff] %v2107_v18 }
 0x316   : > { %v2111_v24 = vpop.f32.mrb[120].mxu0 }
 0x317   : > { %v2112_v10 = vadd.f32 %v3311_v6, %v2111_v24  ;;  %v2113_v28 = vpop.f32.mrb[121].mxu0 }
 0x318   : > { %v2114_v30 = vpop.f32.mrb[122].mxu0 }
 0x319   : > { %2282 = vst [vmem:[%s3318_s10 + $0xe0] sm:$0xff] %v2112_v10  ;;  %v2115_v32 = vadd.f32 %v3311_v6, %v2114_v30  ;;  %v2116_v33 = vpop.f32.mrb[123].mxu0 }
 0x31b   : > { %2283 = vst [vmem:[%s3318_s10 + $0xe8] sm:$0xff] %v2115_v32 }
 0x31e   : > { %v2119_v36 = vpop.f32.mrb[124].mxu0 }
 0x31f   : > { %v2120_v20 = vadd.f32 %v3311_v6, %v2119_v36  ;;  %v2121_v37 = vpop.f32.mrb[125].mxu0 }
 0x320   : > { %v2122_v48 = vpop.f32.mrb[126].mxu0 }
 0x321   : > { %2284 = vst [vmem:[%s3318_s10 + $0xf0] sm:$0xff] %v2120_v20  ;;  %v2123_v39 = vadd.f32 %v3311_v6, %v2122_v48  ;;  %v2124_v40 = vpop.f32.mrb[127].mxu0 }
 0x323   : > { %2285 = vst [vmem:[%s3318_s10 + $0xf8] sm:$0xff] %v2123_v39 }
 0x326   : > { %v2127_v41 = vpop.f32.mrb[128].mxu0 }
 0x327   : > { %v2128_v42 = vadd.f32 %v3311_v6, %v2127_v41  ;;  %v2129_v2 = vpop.f32.mrb[129].mxu0 }
 0x328   : > { %v2130_v44 = vpop.f32.mrb[130].mxu0 }
 0x329   : > { %2286 = vst [vmem:[%s3318_s10 + $0x100] sm:$0xff] %v2128_v42  ;;  %v2131_v45 = vadd.f32 %v3311_v6, %v2130_v44  ;;  %v2132_v4 = vpop.f32.mrb[131].mxu0 }
 0x32b   : > { %2287 = vst [vmem:[%s3318_s10 + $0x108] sm:$0xff] %v2131_v45 }
 0x32e   : > { %v2135_v47 = vpop.f32.mrb[132].mxu0 }
 0x32f   : > { %v2136_v52 = vadd.f32 %v3311_v6, %v2135_v47  ;;  %v2137_v54 = vpop.f32.mrb[133].mxu0 }
 0x330   : > { %v2138_v57 = vpop.f32.mrb[134].mxu0 }
 0x331   : > { %2288 = vst [vmem:[%s3318_s10 + $0x110] sm:$0xff] %v2136_v52  ;;  %v2139_v60 = vadd.f32 %v3311_v6, %v2138_v57  ;;  %v2140_v19 = vpop.f32.mrb[135].mxu0 }
 0x333   : > { %2289 = vst [vmem:[%s3318_s10 + $0x118] sm:$0xff] %v2139_v60 }
 0x336   : > { %v2143_v51 = vpop.f32.mrb[136].mxu0 }
 0x337   : > { %v2144_v16 = vadd.f32 %v3311_v6, %v2143_v51  ;;  %v2145_v22 = vpop.f32.mrb[137].mxu0 }
 0x338   : > { %v2146_v49 = vpop.f32.mrb[138].mxu0 }
 0x339   : > { %2290 = vst [vmem:[%s3318_s10 + $0x120] sm:$0xff] %v2144_v16  ;;  %v2147_v62 = vadd.f32 %v3311_v6, %v2146_v49  ;;  %v2148_v53 = vpop.f32.mrb[139].mxu0 }
 0x33b   : > { %2291 = vst [vmem:[%s3318_s10 + $0x128] sm:$0xff] %v2147_v62 }
 0x33e   : > { %v2151_v23 = vpop.f32.mrb[140].mxu0 }
 0x33f   : > { %v2152_v61 = vadd.f32 %v3311_v6, %v2151_v23  ;;  %v2153_v26 = vpop.f32.mrb[141].mxu0 }
 0x340   : > { %v2154_v56 = vpop.f32.mrb[142].mxu0 }
 0x341   : > { %2292 = vst [vmem:[%s3318_s10 + $0x130] sm:$0xff] %v2152_v61  ;;  %v2155_v15 = vadd.f32 %v3311_v6, %v2154_v56  ;;  %v2156_v59 = vpop.f32.mrb[143].mxu0 }
 0x343   : > { %2293 = vst [vmem:[%s3318_s10 + $0x138] sm:$0xff] %v2155_v15 }
 0x346   : > { %v2159_v31 = vpop.f32.mrb[144].mxu0 }
 0x347   : > { %v2160_v14 = vadd.f32 %v3311_v6, %v2159_v31  ;;  %v2161_v17 = vpop.f32.mrb[145].mxu0 }
 0x348   : > { %v2162_v34 = vpop.f32.mrb[146].mxu0 }
 0x349   : > { %2294 = vst [vmem:[%s3318_s10 + $0x140] sm:$0xff] %v2160_v14  ;;  %v2163_v3 = vadd.f32 %v3311_v6, %v2162_v34  ;;  %v2164_v43 = vpop.f32.mrb[147].mxu0 }
 0x34b   : > { %2295 = vst [vmem:[%s3318_s10 + $0x148] sm:$0xff] %v2163_v3 }
 0x34e   : > { %v2167_v46 = vpop.f32.mrb[148].mxu0 }
 0x34f   : > { %v2168_v58 = vadd.f32 %v3311_v6, %v2167_v46  ;;  %v2169_v25 = vpop.f32.mrb[149].mxu0 }
 0x350   : > { %v2170_v29 = vpop.f32.mrb[150].mxu0 }
 0x351   : > { %2296 = vst [vmem:[%s3318_s10 + $0x150] sm:$0xff] %v2168_v58  ;;  %v2171_v1 = vadd.f32 %v3311_v6, %v2170_v29  ;;  %v2172_v7 = vpop.f32.mrb[151].mxu0 }
 0x353   : > { %2297 = vst [vmem:[%s3318_s10 + $0x158] sm:$0xff] %v2171_v1 }
 0x356   : > { %v2175_v50 = vpop.f32.mrb[152].mxu0 }
 0x357   : > { %v2176_v55 = vadd.f32 %v3311_v6, %v2175_v50  ;;  %v2177_v35 = vpop.f32.mrb[153].mxu0 }
 0x358   : > { %v2178_v38 = vpop.f32.mrb[154].mxu0 }
 0x359   : > { %2298 = vst [vmem:[%s3318_s10 + $0x160] sm:$0xff] %v2176_v55  ;;  %v2179_v27 = vadd.f32 %v3311_v6, %v2178_v38  ;;  %v2180_v63 = vpop.f32.mrb[155].mxu0 }
 0x35b   : > { %2299 = vst [vmem:[%s3318_s10 + $0x168] sm:$0xff] %v2179_v27 }
 0x35e   : > { %v2183_v0 = vpop.f32.mrb[156].mxu0 }
 0x35f   : > { %v2184_v5 = vadd.f32 %v3311_v6, %v2183_v0  ;;  %v2185_v8 = vpop.f32.mrb[157].mxu0 }
 0x360   : > { %v2186_v9 = vpop.f32.mrb[158].mxu0 }
 0x361   : > { %2300 = vst [vmem:[%s3318_s10 + $0x170] sm:$0xff] %v2184_v5  ;;  %v2187_v11 = vadd.f32 %v3311_v6, %v2186_v9  ;;  %v2188_v13 = vpop.f32.mrb[159].mxu0 }
 0x363   : > { %2301 = vst [vmem:[%s3318_s10 + $0x178] sm:$0xff] %v2187_v11 }
 0x366   : > { %v2191_v12 = vpop.f32.mrb[160].mxu0 }
 0x367   : > { %v2192_v18 = vadd.f32 %v3311_v6, %v2191_v12  ;;  %v2193_v21 = vpop.f32.mrb[161].mxu0 }
 0x368   : > { %v2194_v24 = vpop.f32.mrb[162].mxu0 }
 0x369   : > { %2302 = vst [vmem:[%s3318_s10 + $0x180] sm:$0xff] %v2192_v18  ;;  %v2195_v10 = vadd.f32 %v3311_v6, %v2194_v24  ;;  %v2196_v28 = vpop.f32.mrb[163].mxu0 }
 0x36b   : > { %2303 = vst [vmem:[%s3318_s10 + $0x188] sm:$0xff] %v2195_v10 }
 0x36e   : > { %v2199_v30 = vpop.f32.mrb[164].mxu0 }
 0x36f   : > { %v2200_v32 = vadd.f32 %v3311_v6, %v2199_v30  ;;  %v2201_v33 = vpop.f32.mrb[165].mxu0 }
 0x370   : > { %v2202_v36 = vpop.f32.mrb[166].mxu0 }
 0x371   : > { %2304 = vst [vmem:[%s3318_s10 + $0x190] sm:$0xff] %v2200_v32  ;;  %v2203_v20 = vadd.f32 %v3311_v6, %v2202_v36  ;;  %v2204_v37 = vpop.f32.mrb[167].mxu0 }
 0x373   : > { %2305 = vst [vmem:[%s3318_s10 + $0x198] sm:$0xff] %v2203_v20 }
 0x376   : > { %v2207_v48 = vpop.f32.mrb[168].mxu0 }
 0x377   : > { %v2208_v39 = vadd.f32 %v3311_v6, %v2207_v48  ;;  %v2209_v40 = vpop.f32.mrb[169].mxu0 }
 0x378   : > { %v2210_v41 = vpop.f32.mrb[170].mxu0 }
 0x379   : > { %2306 = vst [vmem:[%s3318_s10 + $0x1a0] sm:$0xff] %v2208_v39  ;;  %v2211_v42 = vadd.f32 %v3311_v6, %v2210_v41  ;;  %v2212_v2 = vpop.f32.mrb[171].mxu0 }
 0x37b   : > { %2307 = vst [vmem:[%s3318_s10 + $0x1a8] sm:$0xff] %v2211_v42 }
 0x37e   : > { %v2215_v44 = vpop.f32.mrb[172].mxu0 }
 0x37f   : > { %v2216_v45 = vadd.f32 %v3311_v6, %v2215_v44  ;;  %v2217_v4 = vpop.f32.mrb[173].mxu0 }
 0x380   : > { %v2218_v47 = vpop.f32.mrb[174].mxu0 }
 0x381   : > { %2308 = vst [vmem:[%s3318_s10 + $0x1b0] sm:$0xff] %v2216_v45  ;;  %v2219_v52 = vadd.f32 %v3311_v6, %v2218_v47  ;;  %v2220_v54 = vpop.f32.mrb[175].mxu0 }
 0x383   : > { %2309 = vst [vmem:[%s3318_s10 + $0x1b8] sm:$0xff] %v2219_v52 }
 0x386   : > { %v2223_v57 = vpop.f32.mrb[176].mxu0 }
 0x387   : > { %v2224_v60 = vadd.f32 %v3311_v6, %v2223_v57  ;;  %v2225_v19 = vpop.f32.mrb[177].mxu0 }
 0x388   : > { %v2226_v51 = vpop.f32.mrb[178].mxu0 }
 0x389   : > { %2310 = vst [vmem:[%s3318_s10 + $0x1c0] sm:$0xff] %v2224_v60  ;;  %v2227_v16 = vadd.f32 %v3311_v6, %v2226_v51  ;;  %v2228_v22 = vpop.f32.mrb[179].mxu0 }
 0x38b   : > { %2311 = vst [vmem:[%s3318_s10 + $0x1c8] sm:$0xff] %v2227_v16 }
 0x38e   : > { %v2231_v49 = vpop.f32.mrb[180].mxu0 }
 0x38f   : > { %v2232_v62 = vadd.f32 %v3311_v6, %v2231_v49  ;;  %v2233_v53 = vpop.f32.mrb[181].mxu0 }
 0x390   : > { %v2234_v23 = vpop.f32.mrb[182].mxu0 }
 0x391   : > { %2312 = vst [vmem:[%s3318_s10 + $0x1d0] sm:$0xff] %v2232_v62  ;;  %v2235_v61 = vadd.f32 %v3311_v6, %v2234_v23  ;;  %v2236_v26 = vpop.f32.mrb[183].mxu0 }
 0x393   : > { %2313 = vst [vmem:[%s3318_s10 + $0x1d8] sm:$0xff] %v2235_v61 }
 0x396   : > { %v2239_v56 = vpop.f32.mrb[184].mxu0 }
 0x397   : > { %v2240_v15 = vadd.f32 %v3311_v6, %v2239_v56  ;;  %v2241_v59 = vpop.f32.mrb[185].mxu0 }
 0x398   : > { %v2242_v31 = vpop.f32.mrb[186].mxu0 }
 0x399   : > { %2314 = vst [vmem:[%s3318_s10 + $0x1e0] sm:$0xff] %v2240_v15  ;;  %v2243_v14 = vadd.f32 %v3311_v6, %v2242_v31  ;;  %v2244_v17 = vpop.f32.mrb[187].mxu0 }
 0x39b   : > { %2315 = vst [vmem:[%s3318_s10 + $0x1e8] sm:$0xff] %v2243_v14 }
 0x39e   : > { %v2247_v34 = vpop.f32.mrb[188].mxu0 }
 0x39f   : > { %v2248_v3 = vadd.f32 %v3311_v6, %v2247_v34  ;;  %v2249_v43 = vpop.f32.mrb[189].mxu0 }
 0x3a0   : > { %v2250_v46 = vpop.f32.mrb[190].mxu0 }
 0x3a1   : > { %2316 = vst [vmem:[%s3318_s10 + $0x1f0] sm:$0xff] %v2248_v3  ;;  %v2251_v58 = vadd.f32 %v3311_v6, %v2250_v46  ;;  %v2252_v25 = vpop.f32.mrb[191].mxu0 }
 0x3a3   : > { %2317 = vst [vmem:[%s3318_s10 + $0x1f8] sm:$0xff] %v2251_v58 }
 0x3a4 PF: > { %s17_s24 = sadd.s32 1, %s2573_s24  }
 0x3a5   : > { %p14_p4 = scmp.ge.s32.totalorder %s17_s24, 6  }
 0x3a7   :  { %16 = sbr.rel (!%p14_p4) target bundleno = 1 (0x1), region = 78 }

</bundles_post_ra>
